<compile_context>
chip_gen: v5e
topology: v5e:2x2
jax: 0.10.0
libtpu: 0.0.40
codegen_flags: <defaults>
</compile_context>

<pallas_src>
import numpy as np
import jax
import jax.numpy as jnp
from jax import lax
from jax.experimental import pallas as pl
from jax.experimental.pallas import tpu as pltpu

# Module hyper-parameters (input_shape = (d_model, seq_len), n_heads, nlayers=4).
D_MODEL = 32
SEQ = 8
BATCH = 2
N_HEADS = 8
HEAD_DIM = D_MODEL // N_HEADS
N_LAYERS = 4
D_FF = 256            # PyTorch TransformerEncoderLayer(dim_feedforward=256)
EPS = 1e-5
NEG_INF = -1e30

BS = BATCH * SEQ      # 16 flattened tokens
HBS = N_HEADS * BS    # 128 (head, token) key columns


def encoder_kernel(x_ref,
                   wqkv_ref, bqkv_ref,      # (L, D, 3D), (L, 1, 3D)   (Q part pre-scaled)
                   wo_ref, bo_ref,          # (L, D, D),  (L, 1, D)
                   ln1g_ref, ln1b_ref,      # (L, 1, D)
                   w1_ref, b1_ref,          # (L, D, F),  (L, 1, F)
                   w2_ref, b2_ref,          # (L, F, D),  (L, 1, D)
                   ln2g_ref, ln2b_ref,      # (L, 1, D)
                   lnfg_ref, lnfb_ref,      # (1, D) final encoder norm
                   kmask_ref, vmask_ref,    # (D, HBS), (HBS, D) block-diagonal head masks
                   seg_ref, bias_ref,       # (HBS, HBS) segment-ones, (BS, HBS) batch mask
                   o_ref):
    f32 = jnp.float32
    D = D_MODEL

    def layer_norm(z, g, b):
        mu = jnp.mean(z, axis=-1, keepdims=True)
        var = jnp.mean((z - mu) * (z - mu), axis=-1, keepdims=True)
        return (z - mu) * lax.rsqrt(var + EPS) * g + b

    state = x_ref[...].astype(f32)          # (BS, D) flattened (batch, seq) tokens
    kmask = kmask_ref[...]
    vmask = vmask_ref[...]
    seg = seg_ref[...]
    bias = bias_ref[...]

    for l in range(N_LAYERS):
        # ---- fused QKV projection (one MXU pass; 1/sqrt(Dh) folded into Q columns) ----
        qkv = jnp.dot(state, wqkv_ref[l], preferred_element_type=f32) + bqkv_ref[l]
        q = qkv[:, :D]
        k = qkv[:, D:2 * D]
        v = qkv[:, 2 * D:]

        # ---- all heads & all batch rows at once via block-diagonal masked matmuls ----
        kb = jnp.concatenate([k.T] * N_HEADS, axis=1) * kmask      # (D, HBS)
        s = jnp.dot(q, kb, preferred_element_type=f32) + bias      # (BS, HBS)
        s = s - jnp.max(s, axis=-1, keepdims=True)                 # row-constant shift
        p = jnp.exp(s)
        denom = jnp.dot(p, seg, preferred_element_type=f32)        # per-head softmax sums
        p = p * pl.reciprocal(denom, approx=True)                  # EUP reciprocal
        vb = jnp.concatenate([v] * N_HEADS, axis=0) * vmask        # (HBS, D)
        ctx = jnp.dot(p, vb, preferred_element_type=f32)           # (BS, D), heads already concat

        # ---- output projection + residual + LayerNorm1 (post-norm) ----
        attn = jnp.dot(ctx, wo_ref[l], preferred_element_type=f32) + bo_ref[l]
        state = layer_norm(state + attn, ln1g_ref[l], ln1b_ref[l])

        # ---- feed-forward: linear(D->256) -> ReLU -> linear(256->D), residual, LayerNorm2 ----
        h = jnp.dot(state, w1_ref[l], preferred_element_type=f32) + b1_ref[l]
        h = jnp.maximum(h, 0.0)
        ff = jnp.dot(h, w2_ref[l], preferred_element_type=f32) + b2_ref[l]
        state = layer_norm(state + ff, ln2g_ref[l], ln2b_ref[l])

    # ---- final encoder LayerNorm ----
    state = layer_norm(state, lnfg_ref[...], lnfb_ref[...])
    o_ref[...] = state.astype(o_ref.dtype)


def _build_masks():
    """Static masks: head block-diagonal masks, segment-ones for per-head softmax sums,
    and an additive bias that blocks cross-batch attention in the flattened layout."""
    col = np.arange(HBS)
    col_head = col // BS                      # head index of each key column
    col_tok = col % BS                        # flattened (batch*seq) token of each key column
    feat_head = np.arange(D_MODEL) // HEAD_DIM
    kmask = (feat_head[:, None] == col_head[None, :]).astype(np.float32)     # (D, HBS)
    vmask = (col_head[:, None] == feat_head[None, :]).astype(np.float32)     # (HBS, D)
    seg = (col_head[:, None] == col_head[None, :]).astype(np.float32)        # (HBS, HBS)
    row_batch = np.arange(BS) // SEQ
    col_batch = col_tok // SEQ
    bias = np.where(row_batch[:, None] == col_batch[None, :], 0.0, NEG_INF)  # (BS, HBS)
    return (jnp.asarray(kmask), jnp.asarray(vmask),
            jnp.asarray(seg), jnp.asarray(bias.astype(np.float32)))


def init_params(key):
    """Logical per-layer parameters (weights stored transposed so y = x @ w_t + b)."""
    ones = lambda s: jnp.ones(s, jnp.float32)
    zeros = lambda s: jnp.zeros(s, jnp.float32)
    bound = 1.0 / np.sqrt(D_MODEL)
    bound_ff = 1.0 / np.sqrt(D_FF)
    layers = []
    for lk in jax.random.split(key, N_LAYERS):
        ks = jax.random.split(lk, 12)
        u = lambda k, shape, b: jax.random.uniform(k, shape, jnp.float32, -b, b)
        layers.append(dict(
            wq_t=u(ks[0], (D_MODEL, D_MODEL), bound), bq=u(ks[1], (1, D_MODEL), bound),
            wk_t=u(ks[2], (D_MODEL, D_MODEL), bound), bk=u(ks[3], (1, D_MODEL), bound),
            wv_t=u(ks[4], (D_MODEL, D_MODEL), bound), bv=u(ks[5], (1, D_MODEL), bound),
            wo_t=u(ks[6], (D_MODEL, D_MODEL), bound), bo=u(ks[7], (1, D_MODEL), bound),
            w1_t=u(ks[8], (D_MODEL, D_FF), bound),    b1=u(ks[9], (1, D_FF), bound),
            w2_t=u(ks[10], (D_FF, D_MODEL), bound_ff), b2=u(ks[11], (1, D_MODEL), bound_ff),
            ln1_g=ones((1, D_MODEL)), ln1_b=zeros((1, D_MODEL)),
            ln2_g=ones((1, D_MODEL)), ln2_b=zeros((1, D_MODEL))))
    return dict(layers=layers, lnf_g=ones((1, D_MODEL)), lnf_b=zeros((1, D_MODEL)))


def pack_params(params):
    """Stack per-layer params along a leading layer axis; fuse QKV and fold in 1/sqrt(Dh)."""
    scale = 1.0 / np.sqrt(HEAD_DIM)
    cols = {n: [] for n in ("wqkv", "bqkv", "wo", "bo", "g1", "b1n",
                            "w1", "b1f", "w2", "b2f", "g2", "b2n")}
    for lp in params["layers"]:
        cols["wqkv"].append(jnp.concatenate([lp["wq_t"] * scale, lp["wk_t"], lp["wv_t"]], axis=1))
        cols["bqkv"].append(jnp.concatenate([lp["bq"] * scale, lp["bk"], lp["bv"]], axis=1))
        cols["wo"].append(lp["wo_t"]); cols["bo"].append(lp["bo"])
        cols["g1"].append(lp["ln1_g"]); cols["b1n"].append(lp["ln1_b"])
        cols["w1"].append(lp["w1_t"]); cols["b1f"].append(lp["b1"])
        cols["w2"].append(lp["w2_t"]); cols["b2f"].append(lp["b2"])
        cols["g2"].append(lp["ln2_g"]); cols["b2n"].append(lp["ln2_b"])
    stk = lambda n: jnp.stack(cols[n], axis=0)
    return (stk("wqkv"), stk("bqkv"), stk("wo"), stk("bo"), stk("g1"), stk("b1n"),
            stk("w1"), stk("b1f"), stk("w2"), stk("b2f"), stk("g2"), stk("b2n"),
            params["lnf_g"], params["lnf_b"])


def transformer_encoder(x, params):
    """x: (B, d_model, seq_len), exactly like the PyTorch module's forward input."""
    B = x.shape[0]
    xt = jnp.swapaxes(x, -2, -1).reshape(B * SEQ, D_MODEL)     # module's transpose + flatten
    packed = pack_params(params)
    masks = _build_masks()
    n_in = 1 + len(packed) + len(masks)
    vmem = pl.BlockSpec(memory_space=pltpu.MemorySpace.VMEM)   # full arrays, resident in VMEM
    out = pl.pallas_call(
        encoder_kernel,
        out_shape=jax.ShapeDtypeStruct((B * SEQ, D_MODEL), jnp.float32),
        in_specs=[vmem] * n_in,
        out_specs=vmem,
    )(xt, *packed, *masks)
    return jnp.swapaxes(out.reshape(B, SEQ, D_MODEL), -2, -1)  # module's output transpose


def reference(x, params):
    """Pure-JAX reference: 4 post-norm encoder layers + final LayerNorm + transposes."""
    B = x.shape[0]
    state = jnp.swapaxes(x, -2, -1)                            # (B, S, D)

    def layer_norm(z, g, b):
        mu = z.mean(-1, keepdims=True)
        var = ((z - mu) ** 2).mean(-1, keepdims=True)
        return (z - mu) / jnp.sqrt(var + EPS) * g + b

    def split(t):
        return t.reshape(B, SEQ, N_HEADS, HEAD_DIM).transpose(0, 2, 1, 3)

    for lp in params["layers"]:
        q = split(state @ lp["wq_t"] + lp["bq"])
        k = split(state @ lp["wk_t"] + lp["bk"])
        v = split(state @ lp["wv_t"] + lp["bv"])
        s = jnp.einsum("bhqd,bhkd->bhqk", q, k) / np.sqrt(HEAD_DIM)
        p = jax.nn.softmax(s, axis=-1)
        a = jnp.einsum("bhqk,bhkd->bhqd", p, v).transpose(0, 2, 1, 3).reshape(B, SEQ, D_MODEL)
        attn = a @ lp["wo_t"] + lp["bo"]
        state = layer_norm(state + attn, lp["ln1_g"], lp["ln1_b"])
        h = jnp.maximum(state @ lp["w1_t"] + lp["b1"], 0.0)
        ff = h @ lp["w2_t"] + lp["b2"]
        state = layer_norm(state + ff, lp["ln2_g"], lp["ln2_b"])
    state = layer_norm(state, params["lnf_g"], params["lnf_b"])
    return jnp.swapaxes(state, -2, -1)


if __name__ == "__main__":
    key = jax.random.PRNGKey(0)
    kx, kp = jax.random.split(key)
    # Module input convention: (batch, d_model, seq_len)
    x = jax.random.normal(kx, (BATCH, D_MODEL, SEQ), jnp.float32)
    params = init_params(kp)

    out = jax.block_until_ready(transformer_encoder(x, params))
    ref = reference(x, params)
    # Tolerance accounts for the EUP approximate reciprocal (softmax denom) over 4 layers.
    np.testing.assert_allclose(np.asarray(out), np.asarray(ref), atol=3e-3, rtol=3e-3)

    print("KERNEL_OK")
</pallas_src>

<mosaic_0001>
module attributes {stable_mosaic.version = 11 : i64} {
  func.func @encoder_kernel(%arg0: memref<16x32xf32, #tpu.memory_space<vmem>>, %arg1: memref<4x32x96xf32, #tpu.memory_space<vmem>>, %arg2: memref<4x1x96xf32, #tpu.memory_space<vmem>>, %arg3: memref<4x32x32xf32, #tpu.memory_space<vmem>>, %arg4: memref<4x1x32xf32, #tpu.memory_space<vmem>>, %arg5: memref<4x1x32xf32, #tpu.memory_space<vmem>>, %arg6: memref<4x1x32xf32, #tpu.memory_space<vmem>>, %arg7: memref<4x32x256xf32, #tpu.memory_space<vmem>>, %arg8: memref<4x1x256xf32, #tpu.memory_space<vmem>>, %arg9: memref<4x256x32xf32, #tpu.memory_space<vmem>>, %arg10: memref<4x1x32xf32, #tpu.memory_space<vmem>>, %arg11: memref<4x1x32xf32, #tpu.memory_space<vmem>>, %arg12: memref<4x1x32xf32, #tpu.memory_space<vmem>>, %arg13: memref<1x32xf32, #tpu.memory_space<vmem>>, %arg14: memref<1x32xf32, #tpu.memory_space<vmem>>, %arg15: memref<32x128xf32, #tpu.memory_space<vmem>>, %arg16: memref<128x32xf32, #tpu.memory_space<vmem>>, %arg17: memref<128x128xf32, #tpu.memory_space<vmem>>, %arg18: memref<16x128xf32, #tpu.memory_space<vmem>>, %arg19: memref<16x32xf32, #tpu.memory_space<vmem>>) attributes {dimension_semantics = [], scalar_prefetch = 0 : i64, scratch_operands = 0 : i64, tpu.core_type = #tpu.core_type<tc>} {
    %c0 = arith.constant 0 : index
    %c0_0 = arith.constant 0 : index
    %0 = vector.load %arg0[%c0, %c0_0] : memref<16x32xf32, #tpu.memory_space<vmem>>, vector<16x32xf32>
    %c0_1 = arith.constant 0 : index
    %c0_2 = arith.constant 0 : index
    %1 = vector.load %arg15[%c0_1, %c0_2] : memref<32x128xf32, #tpu.memory_space<vmem>>, vector<32x128xf32>
    %c0_3 = arith.constant 0 : index
    %c0_4 = arith.constant 0 : index
    %2 = vector.load %arg16[%c0_3, %c0_4] : memref<128x32xf32, #tpu.memory_space<vmem>>, vector<128x32xf32>
    %c0_5 = arith.constant 0 : index
    %c0_6 = arith.constant 0 : index
    %3 = vector.load %arg17[%c0_5, %c0_6] : memref<128x128xf32, #tpu.memory_space<vmem>>, vector<128x128xf32>
    %c0_7 = arith.constant 0 : index
    %c0_8 = arith.constant 0 : index
    %4 = vector.load %arg18[%c0_7, %c0_8] : memref<16x128xf32, #tpu.memory_space<vmem>>, vector<16x128xf32>
    %c0_9 = arith.constant 0 : index
    %c0_10 = arith.constant 0 : index
    %c0_11 = arith.constant 0 : index
    %5 = vector.load %arg1[%c0_9, %c0_10, %c0_11] : memref<4x32x96xf32, #tpu.memory_space<vmem>>, vector<1x32x96xf32>
    %6 = vector.shape_cast %5 : vector<1x32x96xf32> to vector<32x96xf32>
    %cst = arith.constant dense<0.000000e+00> : vector<16x96xf32>
    %7 = tpu.matmul %0, %6, %cst {dimension_numbers = #tpu.dot_dimension_numbers<[1], [0], [0], [1], [0, 0, 1, 1], [], []>} : vector<16x32xf32>, vector<32x96xf32>, vector<16x96xf32> -> vector<16x96xf32>
    %c0_12 = arith.constant 0 : index
    %c0_13 = arith.constant 0 : index
    %c0_14 = arith.constant 0 : index
    %8 = vector.load %arg2[%c0_12, %c0_13, %c0_14] : memref<4x1x96xf32, #tpu.memory_space<vmem>>, vector<1x1x96xf32>
    %9 = vector.shape_cast %8 : vector<1x1x96xf32> to vector<1x96xf32>
    %10 = vector.broadcast %9 : vector<1x96xf32> to vector<16x96xf32>
    %11 = arith.addf %7, %10 : vector<16x96xf32>
    %12 = vector.extract_strided_slice %11 {offsets = [0, 0], sizes = [16, 32], strides = [1, 1]} : vector<16x96xf32> to vector<16x32xf32>
    %13 = vector.extract_strided_slice %11 {offsets = [0, 32], sizes = [16, 32], strides = [1, 1]} : vector<16x96xf32> to vector<16x32xf32>
    %14 = vector.extract_strided_slice %11 {offsets = [0, 64], sizes = [16, 32], strides = [1, 1]} : vector<16x96xf32> to vector<16x32xf32>
    %15 = tpu.transpose %13, [1, 0] : vector<16x32xf32> -> vector<32x16xf32>
    %16 = tpu.concatenate %15, %15, %15, %15, %15, %15, %15, %15 in 1 : vector<32x16xf32>, vector<32x16xf32>, vector<32x16xf32>, vector<32x16xf32>, vector<32x16xf32>, vector<32x16xf32>, vector<32x16xf32>, vector<32x16xf32> -> vector<32x128xf32>
    %17 = arith.mulf %16, %1 : vector<32x128xf32>
    %cst_15 = arith.constant dense<0.000000e+00> : vector<16x128xf32>
    %18 = tpu.matmul %12, %17, %cst_15 {dimension_numbers = #tpu.dot_dimension_numbers<[1], [0], [0], [1], [0, 0, 1, 1], [], []>} : vector<16x32xf32>, vector<32x128xf32>, vector<16x128xf32> -> vector<16x128xf32>
    %19 = arith.addf %18, %4 : vector<16x128xf32>
    %cst_16 = arith.constant dense<0xFF800000> : vector<16xf32>
    %20 = vector.multi_reduction <maximumf>, %19, %cst_16 [1] : vector<16x128xf32> to vector<16xf32>
    %21 = vector.shape_cast %20 : vector<16xf32> to vector<16x1xf32>
    %22 = vector.broadcast %21 : vector<16x1xf32> to vector<16x128xf32>
    %23 = arith.subf %19, %22 : vector<16x128xf32>
    %24 = math.exp %23 : vector<16x128xf32>
    %cst_17 = arith.constant dense<0.000000e+00> : vector<16x128xf32>
    %25 = tpu.matmul %24, %3, %cst_17 {dimension_numbers = #tpu.dot_dimension_numbers<[1], [0], [0], [1], [0, 0, 1, 1], [], []>} : vector<16x128xf32>, vector<128x128xf32>, vector<16x128xf32> -> vector<16x128xf32>
    %26 = tpu.reciprocal %25 {approx = true} : vector<16x128xf32> -> vector<16x128xf32>
    %27 = arith.mulf %24, %26 : vector<16x128xf32>
    %28 = tpu.concatenate %14, %14, %14, %14, %14, %14, %14, %14 in 0 : vector<16x32xf32>, vector<16x32xf32>, vector<16x32xf32>, vector<16x32xf32>, vector<16x32xf32>, vector<16x32xf32>, vector<16x32xf32>, vector<16x32xf32> -> vector<128x32xf32>
    %29 = arith.mulf %28, %2 : vector<128x32xf32>
    %cst_18 = arith.constant dense<0.000000e+00> : vector<16x32xf32>
    %30 = tpu.matmul %27, %29, %cst_18 {dimension_numbers = #tpu.dot_dimension_numbers<[1], [0], [0], [1], [0, 0, 1, 1], [], []>} : vector<16x128xf32>, vector<128x32xf32>, vector<16x32xf32> -> vector<16x32xf32>
    %c0_19 = arith.constant 0 : index
    %c0_20 = arith.constant 0 : index
    %c0_21 = arith.constant 0 : index
    %31 = vector.load %arg3[%c0_19, %c0_20, %c0_21] : memref<4x32x32xf32, #tpu.memory_space<vmem>>, vector<1x32x32xf32>
    %32 = vector.shape_cast %31 : vector<1x32x32xf32> to vector<32x32xf32>
    %cst_22 = arith.constant dense<0.000000e+00> : vector<16x32xf32>
    %33 = tpu.matmul %30, %32, %cst_22 {dimension_numbers = #tpu.dot_dimension_numbers<[1], [0], [0], [1], [0, 0, 1, 1], [], []>} : vector<16x32xf32>, vector<32x32xf32>, vector<16x32xf32> -> vector<16x32xf32>
    %c0_23 = arith.constant 0 : index
    %c0_24 = arith.constant 0 : index
    %c0_25 = arith.constant 0 : index
    %34 = vector.load %arg4[%c0_23, %c0_24, %c0_25] : memref<4x1x32xf32, #tpu.memory_space<vmem>>, vector<1x1x32xf32>
    %35 = vector.shape_cast %34 : vector<1x1x32xf32> to vector<1x32xf32>
    %36 = vector.broadcast %35 : vector<1x32xf32> to vector<16x32xf32>
    %37 = arith.addf %33, %36 : vector<16x32xf32>
    %38 = arith.addf %0, %37 : vector<16x32xf32>
    %c0_26 = arith.constant 0 : index
    %c0_27 = arith.constant 0 : index
    %c0_28 = arith.constant 0 : index
    %39 = vector.load %arg5[%c0_26, %c0_27, %c0_28] : memref<4x1x32xf32, #tpu.memory_space<vmem>>, vector<1x1x32xf32>
    %40 = vector.shape_cast %39 : vector<1x1x32xf32> to vector<1x32xf32>
    %c0_29 = arith.constant 0 : index
    %c0_30 = arith.constant 0 : index
    %c0_31 = arith.constant 0 : index
    %41 = vector.load %arg6[%c0_29, %c0_30, %c0_31] : memref<4x1x32xf32, #tpu.memory_space<vmem>>, vector<1x1x32xf32>
    %42 = vector.shape_cast %41 : vector<1x1x32xf32> to vector<1x32xf32>
    %cst_32 = arith.constant dense<0.000000e+00> : vector<16xf32>
    %43 = vector.multi_reduction <add>, %38, %cst_32 [1] : vector<16x32xf32> to vector<16xf32>
    %44 = vector.shape_cast %43 : vector<16xf32> to vector<16x1xf32>
    %cst_33 = arith.constant 3.200000e+01 : f32
    %45 = vector.broadcast %cst_33 : f32 to vector<16x1xf32>
    %46 = arith.divf %44, %45 : vector<16x1xf32>
    %47 = vector.broadcast %46 : vector<16x1xf32> to vector<16x32xf32>
    %48 = arith.subf %38, %47 : vector<16x32xf32>
    %49 = vector.broadcast %46 : vector<16x1xf32> to vector<16x32xf32>
    %50 = arith.subf %38, %49 : vector<16x32xf32>
    %51 = arith.mulf %48, %50 : vector<16x32xf32>
    %cst_34 = arith.constant dense<0.000000e+00> : vector<16xf32>
    %52 = vector.multi_reduction <add>, %51, %cst_34 [1] : vector<16x32xf32> to vector<16xf32>
    %53 = vector.shape_cast %52 : vector<16xf32> to vector<16x1xf32>
    %cst_35 = arith.constant 3.200000e+01 : f32
    %54 = vector.broadcast %cst_35 : f32 to vector<16x1xf32>
    %55 = arith.divf %53, %54 : vector<16x1xf32>
    %56 = vector.broadcast %46 : vector<16x1xf32> to vector<16x32xf32>
    %57 = arith.subf %38, %56 : vector<16x32xf32>
    %cst_36 = arith.constant 9.99999974E-6 : f32
    %58 = vector.broadcast %cst_36 : f32 to vector<16x1xf32>
    %59 = arith.addf %55, %58 : vector<16x1xf32>
    %60 = math.rsqrt %59 : vector<16x1xf32>
    %61 = vector.broadcast %60 : vector<16x1xf32> to vector<16x32xf32>
    %62 = arith.mulf %57, %61 : vector<16x32xf32>
    %63 = vector.broadcast %40 : vector<1x32xf32> to vector<16x32xf32>
    %64 = arith.mulf %62, %63 : vector<16x32xf32>
    %65 = vector.broadcast %42 : vector<1x32xf32> to vector<16x32xf32>
    %66 = arith.addf %64, %65 : vector<16x32xf32>
    %c0_37 = arith.constant 0 : index
    %c0_38 = arith.constant 0 : index
    %c0_39 = arith.constant 0 : index
    %67 = vector.load %arg7[%c0_37, %c0_38, %c0_39] : memref<4x32x256xf32, #tpu.memory_space<vmem>>, vector<1x32x256xf32>
    %68 = vector.shape_cast %67 : vector<1x32x256xf32> to vector<32x256xf32>
    %cst_40 = arith.constant dense<0.000000e+00> : vector<16x256xf32>
    %69 = tpu.matmul %66, %68, %cst_40 {dimension_numbers = #tpu.dot_dimension_numbers<[1], [0], [0], [1], [0, 0, 1, 1], [], []>} : vector<16x32xf32>, vector<32x256xf32>, vector<16x256xf32> -> vector<16x256xf32>
    %c0_41 = arith.constant 0 : index
    %c0_42 = arith.constant 0 : index
    %c0_43 = arith.constant 0 : index
    %70 = vector.load %arg8[%c0_41, %c0_42, %c0_43] : memref<4x1x256xf32, #tpu.memory_space<vmem>>, vector<1x1x256xf32>
    %71 = vector.shape_cast %70 : vector<1x1x256xf32> to vector<1x256xf32>
    %72 = vector.broadcast %71 : vector<1x256xf32> to vector<16x256xf32>
    %73 = arith.addf %69, %72 : vector<16x256xf32>
    %cst_44 = arith.constant 0.000000e+00 : f32
    %74 = vector.broadcast %cst_44 : f32 to vector<16x256xf32>
    %75 = arith.maximumf %73, %74 : vector<16x256xf32>
    %c0_45 = arith.constant 0 : index
    %c0_46 = arith.constant 0 : index
    %c0_47 = arith.constant 0 : index
    %76 = vector.load %arg9[%c0_45, %c0_46, %c0_47] : memref<4x256x32xf32, #tpu.memory_space<vmem>>, vector<1x256x32xf32>
    %77 = vector.shape_cast %76 : vector<1x256x32xf32> to vector<256x32xf32>
    %cst_48 = arith.constant dense<0.000000e+00> : vector<16x32xf32>
    %78 = tpu.matmul %75, %77, %cst_48 {dimension_numbers = #tpu.dot_dimension_numbers<[1], [0], [0], [1], [0, 0, 1, 1], [], []>} : vector<16x256xf32>, vector<256x32xf32>, vector<16x32xf32> -> vector<16x32xf32>
    %c0_49 = arith.constant 0 : index
    %c0_50 = arith.constant 0 : index
    %c0_51 = arith.constant 0 : index
    %79 = vector.load %arg10[%c0_49, %c0_50, %c0_51] : memref<4x1x32xf32, #tpu.memory_space<vmem>>, vector<1x1x32xf32>
    %80 = vector.shape_cast %79 : vector<1x1x32xf32> to vector<1x32xf32>
    %81 = vector.broadcast %80 : vector<1x32xf32> to vector<16x32xf32>
    %82 = arith.addf %78, %81 : vector<16x32xf32>
    %83 = arith.addf %66, %82 : vector<16x32xf32>
    %c0_52 = arith.constant 0 : index
    %c0_53 = arith.constant 0 : index
    %c0_54 = arith.constant 0 : index
    %84 = vector.load %arg11[%c0_52, %c0_53, %c0_54] : memref<4x1x32xf32, #tpu.memory_space<vmem>>, vector<1x1x32xf32>
    %85 = vector.shape_cast %84 : vector<1x1x32xf32> to vector<1x32xf32>
    %c0_55 = arith.constant 0 : index
    %c0_56 = arith.constant 0 : index
    %c0_57 = arith.constant 0 : index
    %86 = vector.load %arg12[%c0_55, %c0_56, %c0_57] : memref<4x1x32xf32, #tpu.memory_space<vmem>>, vector<1x1x32xf32>
    %87 = vector.shape_cast %86 : vector<1x1x32xf32> to vector<1x32xf32>
    %cst_58 = arith.constant dense<0.000000e+00> : vector<16xf32>
    %88 = vector.multi_reduction <add>, %83, %cst_58 [1] : vector<16x32xf32> to vector<16xf32>
    %89 = vector.shape_cast %88 : vector<16xf32> to vector<16x1xf32>
    %cst_59 = arith.constant 3.200000e+01 : f32
    %90 = vector.broadcast %cst_59 : f32 to vector<16x1xf32>
    %91 = arith.divf %89, %90 : vector<16x1xf32>
    %92 = vector.broadcast %91 : vector<16x1xf32> to vector<16x32xf32>
    %93 = arith.subf %83, %92 : vector<16x32xf32>
    %94 = vector.broadcast %91 : vector<16x1xf32> to vector<16x32xf32>
    %95 = arith.subf %83, %94 : vector<16x32xf32>
    %96 = arith.mulf %93, %95 : vector<16x32xf32>
    %cst_60 = arith.constant dense<0.000000e+00> : vector<16xf32>
    %97 = vector.multi_reduction <add>, %96, %cst_60 [1] : vector<16x32xf32> to vector<16xf32>
    %98 = vector.shape_cast %97 : vector<16xf32> to vector<16x1xf32>
    %cst_61 = arith.constant 3.200000e+01 : f32
    %99 = vector.broadcast %cst_61 : f32 to vector<16x1xf32>
    %100 = arith.divf %98, %99 : vector<16x1xf32>
    %101 = vector.broadcast %91 : vector<16x1xf32> to vector<16x32xf32>
    %102 = arith.subf %83, %101 : vector<16x32xf32>
    %cst_62 = arith.constant 9.99999974E-6 : f32
    %103 = vector.broadcast %cst_62 : f32 to vector<16x1xf32>
    %104 = arith.addf %100, %103 : vector<16x1xf32>
    %105 = math.rsqrt %104 : vector<16x1xf32>
    %106 = vector.broadcast %105 : vector<16x1xf32> to vector<16x32xf32>
    %107 = arith.mulf %102, %106 : vector<16x32xf32>
    %108 = vector.broadcast %85 : vector<1x32xf32> to vector<16x32xf32>
    %109 = arith.mulf %107, %108 : vector<16x32xf32>
    %110 = vector.broadcast %87 : vector<1x32xf32> to vector<16x32xf32>
    %111 = arith.addf %109, %110 : vector<16x32xf32>
    %c1 = arith.constant 1 : index
    %c0_63 = arith.constant 0 : index
    %c0_64 = arith.constant 0 : index
    %112 = vector.load %arg1[%c1, %c0_63, %c0_64] : memref<4x32x96xf32, #tpu.memory_space<vmem>>, vector<1x32x96xf32>
    %113 = vector.shape_cast %112 : vector<1x32x96xf32> to vector<32x96xf32>
    %cst_65 = arith.constant dense<0.000000e+00> : vector<16x96xf32>
    %114 = tpu.matmul %111, %113, %cst_65 {dimension_numbers = #tpu.dot_dimension_numbers<[1], [0], [0], [1], [0, 0, 1, 1], [], []>} : vector<16x32xf32>, vector<32x96xf32>, vector<16x96xf32> -> vector<16x96xf32>
    %c1_66 = arith.constant 1 : index
    %c0_67 = arith.constant 0 : index
    %c0_68 = arith.constant 0 : index
    %115 = vector.load %arg2[%c1_66, %c0_67, %c0_68] : memref<4x1x96xf32, #tpu.memory_space<vmem>>, vector<1x1x96xf32>
    %116 = vector.shape_cast %115 : vector<1x1x96xf32> to vector<1x96xf32>
    %117 = vector.broadcast %116 : vector<1x96xf32> to vector<16x96xf32>
    %118 = arith.addf %114, %117 : vector<16x96xf32>
    %119 = vector.extract_strided_slice %118 {offsets = [0, 0], sizes = [16, 32], strides = [1, 1]} : vector<16x96xf32> to vector<16x32xf32>
    %120 = vector.extract_strided_slice %118 {offsets = [0, 32], sizes = [16, 32], strides = [1, 1]} : vector<16x96xf32> to vector<16x32xf32>
    %121 = vector.extract_strided_slice %118 {offsets = [0, 64], sizes = [16, 32], strides = [1, 1]} : vector<16x96xf32> to vector<16x32xf32>
    %122 = tpu.transpose %120, [1, 0] : vector<16x32xf32> -> vector<32x16xf32>
    %123 = tpu.concatenate %122, %122, %122, %122, %122, %122, %122, %122 in 1 : vector<32x16xf32>, vector<32x16xf32>, vector<32x16xf32>, vector<32x16xf32>, vector<32x16xf32>, vector<32x16xf32>, vector<32x16xf32>, vector<32x16xf32> -> vector<32x128xf32>
    %124 = arith.mulf %123, %1 : vector<32x128xf32>
    %cst_69 = arith.constant dense<0.000000e+00> : vector<16x128xf32>
    %125 = tpu.matmul %119, %124, %cst_69 {dimension_numbers = #tpu.dot_dimension_numbers<[1], [0], [0], [1], [0, 0, 1, 1], [], []>} : vector<16x32xf32>, vector<32x128xf32>, vector<16x128xf32> -> vector<16x128xf32>
    %126 = arith.addf %125, %4 : vector<16x128xf32>
    %cst_70 = arith.constant dense<0xFF800000> : vector<16xf32>
    %127 = vector.multi_reduction <maximumf>, %126, %cst_70 [1] : vector<16x128xf32> to vector<16xf32>
    %128 = vector.shape_cast %127 : vector<16xf32> to vector<16x1xf32>
    %129 = vector.broadcast %128 : vector<16x1xf32> to vector<16x128xf32>
    %130 = arith.subf %126, %129 : vector<16x128xf32>
    %131 = math.exp %130 : vector<16x128xf32>
    %cst_71 = arith.constant dense<0.000000e+00> : vector<16x128xf32>
    %132 = tpu.matmul %131, %3, %cst_71 {dimension_numbers = #tpu.dot_dimension_numbers<[1], [0], [0], [1], [0, 0, 1, 1], [], []>} : vector<16x128xf32>, vector<128x128xf32>, vector<16x128xf32> -> vector<16x128xf32>
    %133 = tpu.reciprocal %132 {approx = true} : vector<16x128xf32> -> vector<16x128xf32>
    %134 = arith.mulf %131, %133 : vector<16x128xf32>
    %135 = tpu.concatenate %121, %121, %121, %121, %121, %121, %121, %121 in 0 : vector<16x32xf32>, vector<16x32xf32>, vector<16x32xf32>, vector<16x32xf32>, vector<16x32xf32>, vector<16x32xf32>, vector<16x32xf32>, vector<16x32xf32> -> vector<128x32xf32>
    %136 = arith.mulf %135, %2 : vector<128x32xf32>
    %cst_72 = arith.constant dense<0.000000e+00> : vector<16x32xf32>
    %137 = tpu.matmul %134, %136, %cst_72 {dimension_numbers = #tpu.dot_dimension_numbers<[1], [0], [0], [1], [0, 0, 1, 1], [], []>} : vector<16x128xf32>, vector<128x32xf32>, vector<16x32xf32> -> vector<16x32xf32>
    %c1_73 = arith.constant 1 : index
    %c0_74 = arith.constant 0 : index
    %c0_75 = arith.constant 0 : index
    %138 = vector.load %arg3[%c1_73, %c0_74, %c0_75] : memref<4x32x32xf32, #tpu.memory_space<vmem>>, vector<1x32x32xf32>
    %139 = vector.shape_cast %138 : vector<1x32x32xf32> to vector<32x32xf32>
    %cst_76 = arith.constant dense<0.000000e+00> : vector<16x32xf32>
    %140 = tpu.matmul %137, %139, %cst_76 {dimension_numbers = #tpu.dot_dimension_numbers<[1], [0], [0], [1], [0, 0, 1, 1], [], []>} : vector<16x32xf32>, vector<32x32xf32>, vector<16x32xf32> -> vector<16x32xf32>
    %c1_77 = arith.constant 1 : index
    %c0_78 = arith.constant 0 : index
    %c0_79 = arith.constant 0 : index
    %141 = vector.load %arg4[%c1_77, %c0_78, %c0_79] : memref<4x1x32xf32, #tpu.memory_space<vmem>>, vector<1x1x32xf32>
    %142 = vector.shape_cast %141 : vector<1x1x32xf32> to vector<1x32xf32>
    %143 = vector.broadcast %142 : vector<1x32xf32> to vector<16x32xf32>
    %144 = arith.addf %140, %143 : vector<16x32xf32>
    %145 = arith.addf %111, %144 : vector<16x32xf32>
    %c1_80 = arith.constant 1 : index
    %c0_81 = arith.constant 0 : index
    %c0_82 = arith.constant 0 : index
    %146 = vector.load %arg5[%c1_80, %c0_81, %c0_82] : memref<4x1x32xf32, #tpu.memory_space<vmem>>, vector<1x1x32xf32>
    %147 = vector.shape_cast %146 : vector<1x1x32xf32> to vector<1x32xf32>
    %c1_83 = arith.constant 1 : index
    %c0_84 = arith.constant 0 : index
    %c0_85 = arith.constant 0 : index
    %148 = vector.load %arg6[%c1_83, %c0_84, %c0_85] : memref<4x1x32xf32, #tpu.memory_space<vmem>>, vector<1x1x32xf32>
    %149 = vector.shape_cast %148 : vector<1x1x32xf32> to vector<1x32xf32>
    %cst_86 = arith.constant dense<0.000000e+00> : vector<16xf32>
    %150 = vector.multi_reduction <add>, %145, %cst_86 [1] : vector<16x32xf32> to vector<16xf32>
    %151 = vector.shape_cast %150 : vector<16xf32> to vector<16x1xf32>
    %cst_87 = arith.constant 3.200000e+01 : f32
    %152 = vector.broadcast %cst_87 : f32 to vector<16x1xf32>
    %153 = arith.divf %151, %152 : vector<16x1xf32>
    %154 = vector.broadcast %153 : vector<16x1xf32> to vector<16x32xf32>
    %155 = arith.subf %145, %154 : vector<16x32xf32>
    %156 = vector.broadcast %153 : vector<16x1xf32> to vector<16x32xf32>
    %157 = arith.subf %145, %156 : vector<16x32xf32>
    %158 = arith.mulf %155, %157 : vector<16x32xf32>
    %cst_88 = arith.constant dense<0.000000e+00> : vector<16xf32>
    %159 = vector.multi_reduction <add>, %158, %cst_88 [1] : vector<16x32xf32> to vector<16xf32>
    %160 = vector.shape_cast %159 : vector<16xf32> to vector<16x1xf32>
    %cst_89 = arith.constant 3.200000e+01 : f32
    %161 = vector.broadcast %cst_89 : f32 to vector<16x1xf32>
    %162 = arith.divf %160, %161 : vector<16x1xf32>
    %163 = vector.broadcast %153 : vector<16x1xf32> to vector<16x32xf32>
    %164 = arith.subf %145, %163 : vector<16x32xf32>
    %cst_90 = arith.constant 9.99999974E-6 : f32
    %165 = vector.broadcast %cst_90 : f32 to vector<16x1xf32>
    %166 = arith.addf %162, %165 : vector<16x1xf32>
    %167 = math.rsqrt %166 : vector<16x1xf32>
    %168 = vector.broadcast %167 : vector<16x1xf32> to vector<16x32xf32>
    %169 = arith.mulf %164, %168 : vector<16x32xf32>
    %170 = vector.broadcast %147 : vector<1x32xf32> to vector<16x32xf32>
    %171 = arith.mulf %169, %170 : vector<16x32xf32>
    %172 = vector.broadcast %149 : vector<1x32xf32> to vector<16x32xf32>
    %173 = arith.addf %171, %172 : vector<16x32xf32>
    %c1_91 = arith.constant 1 : index
    %c0_92 = arith.constant 0 : index
    %c0_93 = arith.constant 0 : index
    %174 = vector.load %arg7[%c1_91, %c0_92, %c0_93] : memref<4x32x256xf32, #tpu.memory_space<vmem>>, vector<1x32x256xf32>
    %175 = vector.shape_cast %174 : vector<1x32x256xf32> to vector<32x256xf32>
    %cst_94 = arith.constant dense<0.000000e+00> : vector<16x256xf32>
    %176 = tpu.matmul %173, %175, %cst_94 {dimension_numbers = #tpu.dot_dimension_numbers<[1], [0], [0], [1], [0, 0, 1, 1], [], []>} : vector<16x32xf32>, vector<32x256xf32>, vector<16x256xf32> -> vector<16x256xf32>
    %c1_95 = arith.constant 1 : index
    %c0_96 = arith.constant 0 : index
    %c0_97 = arith.constant 0 : index
    %177 = vector.load %arg8[%c1_95, %c0_96, %c0_97] : memref<4x1x256xf32, #tpu.memory_space<vmem>>, vector<1x1x256xf32>
    %178 = vector.shape_cast %177 : vector<1x1x256xf32> to vector<1x256xf32>
    %179 = vector.broadcast %178 : vector<1x256xf32> to vector<16x256xf32>
    %180 = arith.addf %176, %179 : vector<16x256xf32>
    %cst_98 = arith.constant 0.000000e+00 : f32
    %181 = vector.broadcast %cst_98 : f32 to vector<16x256xf32>
    %182 = arith.maximumf %180, %181 : vector<16x256xf32>
    %c1_99 = arith.constant 1 : index
    %c0_100 = arith.constant 0 : index
    %c0_101 = arith.constant 0 : index
    %183 = vector.load %arg9[%c1_99, %c0_100, %c0_101] : memref<4x256x32xf32, #tpu.memory_space<vmem>>, vector<1x256x32xf32>
    %184 = vector.shape_cast %183 : vector<1x256x32xf32> to vector<256x32xf32>
    %cst_102 = arith.constant dense<0.000000e+00> : vector<16x32xf32>
    %185 = tpu.matmul %182, %184, %cst_102 {dimension_numbers = #tpu.dot_dimension_numbers<[1], [0], [0], [1], [0, 0, 1, 1], [], []>} : vector<16x256xf32>, vector<256x32xf32>, vector<16x32xf32> -> vector<16x32xf32>
    %c1_103 = arith.constant 1 : index
    %c0_104 = arith.constant 0 : index
    %c0_105 = arith.constant 0 : index
    %186 = vector.load %arg10[%c1_103, %c0_104, %c0_105] : memref<4x1x32xf32, #tpu.memory_space<vmem>>, vector<1x1x32xf32>
    %187 = vector.shape_cast %186 : vector<1x1x32xf32> to vector<1x32xf32>
    %188 = vector.broadcast %187 : vector<1x32xf32> to vector<16x32xf32>
    %189 = arith.addf %185, %188 : vector<16x32xf32>
    %190 = arith.addf %173, %189 : vector<16x32xf32>
    %c1_106 = arith.constant 1 : index
    %c0_107 = arith.constant 0 : index
    %c0_108 = arith.constant 0 : index
    %191 = vector.load %arg11[%c1_106, %c0_107, %c0_108] : memref<4x1x32xf32, #tpu.memory_space<vmem>>, vector<1x1x32xf32>
    %192 = vector.shape_cast %191 : vector<1x1x32xf32> to vector<1x32xf32>
    %c1_109 = arith.constant 1 : index
    %c0_110 = arith.constant 0 : index
    %c0_111 = arith.constant 0 : index
    %193 = vector.load %arg12[%c1_109, %c0_110, %c0_111] : memref<4x1x32xf32, #tpu.memory_space<vmem>>, vector<1x1x32xf32>
    %194 = vector.shape_cast %193 : vector<1x1x32xf32> to vector<1x32xf32>
    %cst_112 = arith.constant dense<0.000000e+00> : vector<16xf32>
    %195 = vector.multi_reduction <add>, %190, %cst_112 [1] : vector<16x32xf32> to vector<16xf32>
    %196 = vector.shape_cast %195 : vector<16xf32> to vector<16x1xf32>
    %cst_113 = arith.constant 3.200000e+01 : f32
    %197 = vector.broadcast %cst_113 : f32 to vector<16x1xf32>
    %198 = arith.divf %196, %197 : vector<16x1xf32>
    %199 = vector.broadcast %198 : vector<16x1xf32> to vector<16x32xf32>
    %200 = arith.subf %190, %199 : vector<16x32xf32>
    %201 = vector.broadcast %198 : vector<16x1xf32> to vector<16x32xf32>
    %202 = arith.subf %190, %201 : vector<16x32xf32>
    %203 = arith.mulf %200, %202 : vector<16x32xf32>
    %cst_114 = arith.constant dense<0.000000e+00> : vector<16xf32>
    %204 = vector.multi_reduction <add>, %203, %cst_114 [1] : vector<16x32xf32> to vector<16xf32>
    %205 = vector.shape_cast %204 : vector<16xf32> to vector<16x1xf32>
    %cst_115 = arith.constant 3.200000e+01 : f32
    %206 = vector.broadcast %cst_115 : f32 to vector<16x1xf32>
    %207 = arith.divf %205, %206 : vector<16x1xf32>
    %208 = vector.broadcast %198 : vector<16x1xf32> to vector<16x32xf32>
    %209 = arith.subf %190, %208 : vector<16x32xf32>
    %cst_116 = arith.constant 9.99999974E-6 : f32
    %210 = vector.broadcast %cst_116 : f32 to vector<16x1xf32>
    %211 = arith.addf %207, %210 : vector<16x1xf32>
    %212 = math.rsqrt %211 : vector<16x1xf32>
    %213 = vector.broadcast %212 : vector<16x1xf32> to vector<16x32xf32>
    %214 = arith.mulf %209, %213 : vector<16x32xf32>
    %215 = vector.broadcast %192 : vector<1x32xf32> to vector<16x32xf32>
    %216 = arith.mulf %214, %215 : vector<16x32xf32>
    %217 = vector.broadcast %194 : vector<1x32xf32> to vector<16x32xf32>
    %218 = arith.addf %216, %217 : vector<16x32xf32>
    %c2 = arith.constant 2 : index
    %c0_117 = arith.constant 0 : index
    %c0_118 = arith.constant 0 : index
    %219 = vector.load %arg1[%c2, %c0_117, %c0_118] : memref<4x32x96xf32, #tpu.memory_space<vmem>>, vector<1x32x96xf32>
    %220 = vector.shape_cast %219 : vector<1x32x96xf32> to vector<32x96xf32>
    %cst_119 = arith.constant dense<0.000000e+00> : vector<16x96xf32>
    %221 = tpu.matmul %218, %220, %cst_119 {dimension_numbers = #tpu.dot_dimension_numbers<[1], [0], [0], [1], [0, 0, 1, 1], [], []>} : vector<16x32xf32>, vector<32x96xf32>, vector<16x96xf32> -> vector<16x96xf32>
    %c2_120 = arith.constant 2 : index
    %c0_121 = arith.constant 0 : index
    %c0_122 = arith.constant 0 : index
    %222 = vector.load %arg2[%c2_120, %c0_121, %c0_122] : memref<4x1x96xf32, #tpu.memory_space<vmem>>, vector<1x1x96xf32>
    %223 = vector.shape_cast %222 : vector<1x1x96xf32> to vector<1x96xf32>
    %224 = vector.broadcast %223 : vector<1x96xf32> to vector<16x96xf32>
    %225 = arith.addf %221, %224 : vector<16x96xf32>
    %226 = vector.extract_strided_slice %225 {offsets = [0, 0], sizes = [16, 32], strides = [1, 1]} : vector<16x96xf32> to vector<16x32xf32>
    %227 = vector.extract_strided_slice %225 {offsets = [0, 32], sizes = [16, 32], strides = [1, 1]} : vector<16x96xf32> to vector<16x32xf32>
    %228 = vector.extract_strided_slice %225 {offsets = [0, 64], sizes = [16, 32], strides = [1, 1]} : vector<16x96xf32> to vector<16x32xf32>
    %229 = tpu.transpose %227, [1, 0] : vector<16x32xf32> -> vector<32x16xf32>
    %230 = tpu.concatenate %229, %229, %229, %229, %229, %229, %229, %229 in 1 : vector<32x16xf32>, vector<32x16xf32>, vector<32x16xf32>, vector<32x16xf32>, vector<32x16xf32>, vector<32x16xf32>, vector<32x16xf32>, vector<32x16xf32> -> vector<32x128xf32>
    %231 = arith.mulf %230, %1 : vector<32x128xf32>
    %cst_123 = arith.constant dense<0.000000e+00> : vector<16x128xf32>
    %232 = tpu.matmul %226, %231, %cst_123 {dimension_numbers = #tpu.dot_dimension_numbers<[1], [0], [0], [1], [0, 0, 1, 1], [], []>} : vector<16x32xf32>, vector<32x128xf32>, vector<16x128xf32> -> vector<16x128xf32>
    %233 = arith.addf %232, %4 : vector<16x128xf32>
    %cst_124 = arith.constant dense<0xFF800000> : vector<16xf32>
    %234 = vector.multi_reduction <maximumf>, %233, %cst_124 [1] : vector<16x128xf32> to vector<16xf32>
    %235 = vector.shape_cast %234 : vector<16xf32> to vector<16x1xf32>
    %236 = vector.broadcast %235 : vector<16x1xf32> to vector<16x128xf32>
    %237 = arith.subf %233, %236 : vector<16x128xf32>
    %238 = math.exp %237 : vector<16x128xf32>
    %cst_125 = arith.constant dense<0.000000e+00> : vector<16x128xf32>
    %239 = tpu.matmul %238, %3, %cst_125 {dimension_numbers = #tpu.dot_dimension_numbers<[1], [0], [0], [1], [0, 0, 1, 1], [], []>} : vector<16x128xf32>, vector<128x128xf32>, vector<16x128xf32> -> vector<16x128xf32>
    %240 = tpu.reciprocal %239 {approx = true} : vector<16x128xf32> -> vector<16x128xf32>
    %241 = arith.mulf %238, %240 : vector<16x128xf32>
    %242 = tpu.concatenate %228, %228, %228, %228, %228, %228, %228, %228 in 0 : vector<16x32xf32>, vector<16x32xf32>, vector<16x32xf32>, vector<16x32xf32>, vector<16x32xf32>, vector<16x32xf32>, vector<16x32xf32>, vector<16x32xf32> -> vector<128x32xf32>
    %243 = arith.mulf %242, %2 : vector<128x32xf32>
    %cst_126 = arith.constant dense<0.000000e+00> : vector<16x32xf32>
    %244 = tpu.matmul %241, %243, %cst_126 {dimension_numbers = #tpu.dot_dimension_numbers<[1], [0], [0], [1], [0, 0, 1, 1], [], []>} : vector<16x128xf32>, vector<128x32xf32>, vector<16x32xf32> -> vector<16x32xf32>
    %c2_127 = arith.constant 2 : index
    %c0_128 = arith.constant 0 : index
    %c0_129 = arith.constant 0 : index
    %245 = vector.load %arg3[%c2_127, %c0_128, %c0_129] : memref<4x32x32xf32, #tpu.memory_space<vmem>>, vector<1x32x32xf32>
    %246 = vector.shape_cast %245 : vector<1x32x32xf32> to vector<32x32xf32>
    %cst_130 = arith.constant dense<0.000000e+00> : vector<16x32xf32>
    %247 = tpu.matmul %244, %246, %cst_130 {dimension_numbers = #tpu.dot_dimension_numbers<[1], [0], [0], [1], [0, 0, 1, 1], [], []>} : vector<16x32xf32>, vector<32x32xf32>, vector<16x32xf32> -> vector<16x32xf32>
    %c2_131 = arith.constant 2 : index
    %c0_132 = arith.constant 0 : index
    %c0_133 = arith.constant 0 : index
    %248 = vector.load %arg4[%c2_131, %c0_132, %c0_133] : memref<4x1x32xf32, #tpu.memory_space<vmem>>, vector<1x1x32xf32>
    %249 = vector.shape_cast %248 : vector<1x1x32xf32> to vector<1x32xf32>
    %250 = vector.broadcast %249 : vector<1x32xf32> to vector<16x32xf32>
    %251 = arith.addf %247, %250 : vector<16x32xf32>
    %252 = arith.addf %218, %251 : vector<16x32xf32>
    %c2_134 = arith.constant 2 : index
    %c0_135 = arith.constant 0 : index
    %c0_136 = arith.constant 0 : index
    %253 = vector.load %arg5[%c2_134, %c0_135, %c0_136] : memref<4x1x32xf32, #tpu.memory_space<vmem>>, vector<1x1x32xf32>
    %254 = vector.shape_cast %253 : vector<1x1x32xf32> to vector<1x32xf32>
    %c2_137 = arith.constant 2 : index
    %c0_138 = arith.constant 0 : index
    %c0_139 = arith.constant 0 : index
    %255 = vector.load %arg6[%c2_137, %c0_138, %c0_139] : memref<4x1x32xf32, #tpu.memory_space<vmem>>, vector<1x1x32xf32>
    %256 = vector.shape_cast %255 : vector<1x1x32xf32> to vector<1x32xf32>
    %cst_140 = arith.constant dense<0.000000e+00> : vector<16xf32>
    %257 = vector.multi_reduction <add>, %252, %cst_140 [1] : vector<16x32xf32> to vector<16xf32>
    %258 = vector.shape_cast %257 : vector<16xf32> to vector<16x1xf32>
    %cst_141 = arith.constant 3.200000e+01 : f32
    %259 = vector.broadcast %cst_141 : f32 to vector<16x1xf32>
    %260 = arith.divf %258, %259 : vector<16x1xf32>
    %261 = vector.broadcast %260 : vector<16x1xf32> to vector<16x32xf32>
    %262 = arith.subf %252, %261 : vector<16x32xf32>
    %263 = vector.broadcast %260 : vector<16x1xf32> to vector<16x32xf32>
    %264 = arith.subf %252, %263 : vector<16x32xf32>
    %265 = arith.mulf %262, %264 : vector<16x32xf32>
    %cst_142 = arith.constant dense<0.000000e+00> : vector<16xf32>
    %266 = vector.multi_reduction <add>, %265, %cst_142 [1] : vector<16x32xf32> to vector<16xf32>
    %267 = vector.shape_cast %266 : vector<16xf32> to vector<16x1xf32>
    %cst_143 = arith.constant 3.200000e+01 : f32
    %268 = vector.broadcast %cst_143 : f32 to vector<16x1xf32>
    %269 = arith.divf %267, %268 : vector<16x1xf32>
    %270 = vector.broadcast %260 : vector<16x1xf32> to vector<16x32xf32>
    %271 = arith.subf %252, %270 : vector<16x32xf32>
    %cst_144 = arith.constant 9.99999974E-6 : f32
    %272 = vector.broadcast %cst_144 : f32 to vector<16x1xf32>
    %273 = arith.addf %269, %272 : vector<16x1xf32>
    %274 = math.rsqrt %273 : vector<16x1xf32>
    %275 = vector.broadcast %274 : vector<16x1xf32> to vector<16x32xf32>
    %276 = arith.mulf %271, %275 : vector<16x32xf32>
    %277 = vector.broadcast %254 : vector<1x32xf32> to vector<16x32xf32>
    %278 = arith.mulf %276, %277 : vector<16x32xf32>
    %279 = vector.broadcast %256 : vector<1x32xf32> to vector<16x32xf32>
    %280 = arith.addf %278, %279 : vector<16x32xf32>
    %c2_145 = arith.constant 2 : index
    %c0_146 = arith.constant 0 : index
    %c0_147 = arith.constant 0 : index
    %281 = vector.load %arg7[%c2_145, %c0_146, %c0_147] : memref<4x32x256xf32, #tpu.memory_space<vmem>>, vector<1x32x256xf32>
    %282 = vector.shape_cast %281 : vector<1x32x256xf32> to vector<32x256xf32>
    %cst_148 = arith.constant dense<0.000000e+00> : vector<16x256xf32>
    %283 = tpu.matmul %280, %282, %cst_148 {dimension_numbers = #tpu.dot_dimension_numbers<[1], [0], [0], [1], [0, 0, 1, 1], [], []>} : vector<16x32xf32>, vector<32x256xf32>, vector<16x256xf32> -> vector<16x256xf32>
    %c2_149 = arith.constant 2 : index
    %c0_150 = arith.constant 0 : index
    %c0_151 = arith.constant 0 : index
    %284 = vector.load %arg8[%c2_149, %c0_150, %c0_151] : memref<4x1x256xf32, #tpu.memory_space<vmem>>, vector<1x1x256xf32>
    %285 = vector.shape_cast %284 : vector<1x1x256xf32> to vector<1x256xf32>
    %286 = vector.broadcast %285 : vector<1x256xf32> to vector<16x256xf32>
    %287 = arith.addf %283, %286 : vector<16x256xf32>
    %cst_152 = arith.constant 0.000000e+00 : f32
    %288 = vector.broadcast %cst_152 : f32 to vector<16x256xf32>
    %289 = arith.maximumf %287, %288 : vector<16x256xf32>
    %c2_153 = arith.constant 2 : index
    %c0_154 = arith.constant 0 : index
    %c0_155 = arith.constant 0 : index
    %290 = vector.load %arg9[%c2_153, %c0_154, %c0_155] : memref<4x256x32xf32, #tpu.memory_space<vmem>>, vector<1x256x32xf32>
    %291 = vector.shape_cast %290 : vector<1x256x32xf32> to vector<256x32xf32>
    %cst_156 = arith.constant dense<0.000000e+00> : vector<16x32xf32>
    %292 = tpu.matmul %289, %291, %cst_156 {dimension_numbers = #tpu.dot_dimension_numbers<[1], [0], [0], [1], [0, 0, 1, 1], [], []>} : vector<16x256xf32>, vector<256x32xf32>, vector<16x32xf32> -> vector<16x32xf32>
    %c2_157 = arith.constant 2 : index
    %c0_158 = arith.constant 0 : index
    %c0_159 = arith.constant 0 : index
    %293 = vector.load %arg10[%c2_157, %c0_158, %c0_159] : memref<4x1x32xf32, #tpu.memory_space<vmem>>, vector<1x1x32xf32>
    %294 = vector.shape_cast %293 : vector<1x1x32xf32> to vector<1x32xf32>
    %295 = vector.broadcast %294 : vector<1x32xf32> to vector<16x32xf32>
    %296 = arith.addf %292, %295 : vector<16x32xf32>
    %297 = arith.addf %280, %296 : vector<16x32xf32>
    %c2_160 = arith.constant 2 : index
    %c0_161 = arith.constant 0 : index
    %c0_162 = arith.constant 0 : index
    %298 = vector.load %arg11[%c2_160, %c0_161, %c0_162] : memref<4x1x32xf32, #tpu.memory_space<vmem>>, vector<1x1x32xf32>
    %299 = vector.shape_cast %298 : vector<1x1x32xf32> to vector<1x32xf32>
    %c2_163 = arith.constant 2 : index
    %c0_164 = arith.constant 0 : index
    %c0_165 = arith.constant 0 : index
    %300 = vector.load %arg12[%c2_163, %c0_164, %c0_165] : memref<4x1x32xf32, #tpu.memory_space<vmem>>, vector<1x1x32xf32>
    %301 = vector.shape_cast %300 : vector<1x1x32xf32> to vector<1x32xf32>
    %cst_166 = arith.constant dense<0.000000e+00> : vector<16xf32>
    %302 = vector.multi_reduction <add>, %297, %cst_166 [1] : vector<16x32xf32> to vector<16xf32>
    %303 = vector.shape_cast %302 : vector<16xf32> to vector<16x1xf32>
    %cst_167 = arith.constant 3.200000e+01 : f32
    %304 = vector.broadcast %cst_167 : f32 to vector<16x1xf32>
    %305 = arith.divf %303, %304 : vector<16x1xf32>
    %306 = vector.broadcast %305 : vector<16x1xf32> to vector<16x32xf32>
    %307 = arith.subf %297, %306 : vector<16x32xf32>
    %308 = vector.broadcast %305 : vector<16x1xf32> to vector<16x32xf32>
    %309 = arith.subf %297, %308 : vector<16x32xf32>
    %310 = arith.mulf %307, %309 : vector<16x32xf32>
    %cst_168 = arith.constant dense<0.000000e+00> : vector<16xf32>
    %311 = vector.multi_reduction <add>, %310, %cst_168 [1] : vector<16x32xf32> to vector<16xf32>
    %312 = vector.shape_cast %311 : vector<16xf32> to vector<16x1xf32>
    %cst_169 = arith.constant 3.200000e+01 : f32
    %313 = vector.broadcast %cst_169 : f32 to vector<16x1xf32>
    %314 = arith.divf %312, %313 : vector<16x1xf32>
    %315 = vector.broadcast %305 : vector<16x1xf32> to vector<16x32xf32>
    %316 = arith.subf %297, %315 : vector<16x32xf32>
    %cst_170 = arith.constant 9.99999974E-6 : f32
    %317 = vector.broadcast %cst_170 : f32 to vector<16x1xf32>
    %318 = arith.addf %314, %317 : vector<16x1xf32>
    %319 = math.rsqrt %318 : vector<16x1xf32>
    %320 = vector.broadcast %319 : vector<16x1xf32> to vector<16x32xf32>
    %321 = arith.mulf %316, %320 : vector<16x32xf32>
    %322 = vector.broadcast %299 : vector<1x32xf32> to vector<16x32xf32>
    %323 = arith.mulf %321, %322 : vector<16x32xf32>
    %324 = vector.broadcast %301 : vector<1x32xf32> to vector<16x32xf32>
    %325 = arith.addf %323, %324 : vector<16x32xf32>
    %c3 = arith.constant 3 : index
    %c0_171 = arith.constant 0 : index
    %c0_172 = arith.constant 0 : index
    %326 = vector.load %arg1[%c3, %c0_171, %c0_172] : memref<4x32x96xf32, #tpu.memory_space<vmem>>, vector<1x32x96xf32>
    %327 = vector.shape_cast %326 : vector<1x32x96xf32> to vector<32x96xf32>
    %cst_173 = arith.constant dense<0.000000e+00> : vector<16x96xf32>
    %328 = tpu.matmul %325, %327, %cst_173 {dimension_numbers = #tpu.dot_dimension_numbers<[1], [0], [0], [1], [0, 0, 1, 1], [], []>} : vector<16x32xf32>, vector<32x96xf32>, vector<16x96xf32> -> vector<16x96xf32>
    %c3_174 = arith.constant 3 : index
    %c0_175 = arith.constant 0 : index
    %c0_176 = arith.constant 0 : index
    %329 = vector.load %arg2[%c3_174, %c0_175, %c0_176] : memref<4x1x96xf32, #tpu.memory_space<vmem>>, vector<1x1x96xf32>
    %330 = vector.shape_cast %329 : vector<1x1x96xf32> to vector<1x96xf32>
    %331 = vector.broadcast %330 : vector<1x96xf32> to vector<16x96xf32>
    %332 = arith.addf %328, %331 : vector<16x96xf32>
    %333 = vector.extract_strided_slice %332 {offsets = [0, 0], sizes = [16, 32], strides = [1, 1]} : vector<16x96xf32> to vector<16x32xf32>
    %334 = vector.extract_strided_slice %332 {offsets = [0, 32], sizes = [16, 32], strides = [1, 1]} : vector<16x96xf32> to vector<16x32xf32>
    %335 = vector.extract_strided_slice %332 {offsets = [0, 64], sizes = [16, 32], strides = [1, 1]} : vector<16x96xf32> to vector<16x32xf32>
    %336 = tpu.transpose %334, [1, 0] : vector<16x32xf32> -> vector<32x16xf32>
    %337 = tpu.concatenate %336, %336, %336, %336, %336, %336, %336, %336 in 1 : vector<32x16xf32>, vector<32x16xf32>, vector<32x16xf32>, vector<32x16xf32>, vector<32x16xf32>, vector<32x16xf32>, vector<32x16xf32>, vector<32x16xf32> -> vector<32x128xf32>
    %338 = arith.mulf %337, %1 : vector<32x128xf32>
    %cst_177 = arith.constant dense<0.000000e+00> : vector<16x128xf32>
    %339 = tpu.matmul %333, %338, %cst_177 {dimension_numbers = #tpu.dot_dimension_numbers<[1], [0], [0], [1], [0, 0, 1, 1], [], []>} : vector<16x32xf32>, vector<32x128xf32>, vector<16x128xf32> -> vector<16x128xf32>
    %340 = arith.addf %339, %4 : vector<16x128xf32>
    %cst_178 = arith.constant dense<0xFF800000> : vector<16xf32>
    %341 = vector.multi_reduction <maximumf>, %340, %cst_178 [1] : vector<16x128xf32> to vector<16xf32>
    %342 = vector.shape_cast %341 : vector<16xf32> to vector<16x1xf32>
    %343 = vector.broadcast %342 : vector<16x1xf32> to vector<16x128xf32>
    %344 = arith.subf %340, %343 : vector<16x128xf32>
    %345 = math.exp %344 : vector<16x128xf32>
    %cst_179 = arith.constant dense<0.000000e+00> : vector<16x128xf32>
    %346 = tpu.matmul %345, %3, %cst_179 {dimension_numbers = #tpu.dot_dimension_numbers<[1], [0], [0], [1], [0, 0, 1, 1], [], []>} : vector<16x128xf32>, vector<128x128xf32>, vector<16x128xf32> -> vector<16x128xf32>
    %347 = tpu.reciprocal %346 {approx = true} : vector<16x128xf32> -> vector<16x128xf32>
    %348 = arith.mulf %345, %347 : vector<16x128xf32>
    %349 = tpu.concatenate %335, %335, %335, %335, %335, %335, %335, %335 in 0 : vector<16x32xf32>, vector<16x32xf32>, vector<16x32xf32>, vector<16x32xf32>, vector<16x32xf32>, vector<16x32xf32>, vector<16x32xf32>, vector<16x32xf32> -> vector<128x32xf32>
    %350 = arith.mulf %349, %2 : vector<128x32xf32>
    %cst_180 = arith.constant dense<0.000000e+00> : vector<16x32xf32>
    %351 = tpu.matmul %348, %350, %cst_180 {dimension_numbers = #tpu.dot_dimension_numbers<[1], [0], [0], [1], [0, 0, 1, 1], [], []>} : vector<16x128xf32>, vector<128x32xf32>, vector<16x32xf32> -> vector<16x32xf32>
    %c3_181 = arith.constant 3 : index
    %c0_182 = arith.constant 0 : index
    %c0_183 = arith.constant 0 : index
    %352 = vector.load %arg3[%c3_181, %c0_182, %c0_183] : memref<4x32x32xf32, #tpu.memory_space<vmem>>, vector<1x32x32xf32>
    %353 = vector.shape_cast %352 : vector<1x32x32xf32> to vector<32x32xf32>
    %cst_184 = arith.constant dense<0.000000e+00> : vector<16x32xf32>
    %354 = tpu.matmul %351, %353, %cst_184 {dimension_numbers = #tpu.dot_dimension_numbers<[1], [0], [0], [1], [0, 0, 1, 1], [], []>} : vector<16x32xf32>, vector<32x32xf32>, vector<16x32xf32> -> vector<16x32xf32>
    %c3_185 = arith.constant 3 : index
    %c0_186 = arith.constant 0 : index
    %c0_187 = arith.constant 0 : index
    %355 = vector.load %arg4[%c3_185, %c0_186, %c0_187] : memref<4x1x32xf32, #tpu.memory_space<vmem>>, vector<1x1x32xf32>
    %356 = vector.shape_cast %355 : vector<1x1x32xf32> to vector<1x32xf32>
    %357 = vector.broadcast %356 : vector<1x32xf32> to vector<16x32xf32>
    %358 = arith.addf %354, %357 : vector<16x32xf32>
    %359 = arith.addf %325, %358 : vector<16x32xf32>
    %c3_188 = arith.constant 3 : index
    %c0_189 = arith.constant 0 : index
    %c0_190 = arith.constant 0 : index
    %360 = vector.load %arg5[%c3_188, %c0_189, %c0_190] : memref<4x1x32xf32, #tpu.memory_space<vmem>>, vector<1x1x32xf32>
    %361 = vector.shape_cast %360 : vector<1x1x32xf32> to vector<1x32xf32>
    %c3_191 = arith.constant 3 : index
    %c0_192 = arith.constant 0 : index
    %c0_193 = arith.constant 0 : index
    %362 = vector.load %arg6[%c3_191, %c0_192, %c0_193] : memref<4x1x32xf32, #tpu.memory_space<vmem>>, vector<1x1x32xf32>
    %363 = vector.shape_cast %362 : vector<1x1x32xf32> to vector<1x32xf32>
    %cst_194 = arith.constant dense<0.000000e+00> : vector<16xf32>
    %364 = vector.multi_reduction <add>, %359, %cst_194 [1] : vector<16x32xf32> to vector<16xf32>
    %365 = vector.shape_cast %364 : vector<16xf32> to vector<16x1xf32>
    %cst_195 = arith.constant 3.200000e+01 : f32
    %366 = vector.broadcast %cst_195 : f32 to vector<16x1xf32>
    %367 = arith.divf %365, %366 : vector<16x1xf32>
    %368 = vector.broadcast %367 : vector<16x1xf32> to vector<16x32xf32>
    %369 = arith.subf %359, %368 : vector<16x32xf32>
    %370 = vector.broadcast %367 : vector<16x1xf32> to vector<16x32xf32>
    %371 = arith.subf %359, %370 : vector<16x32xf32>
    %372 = arith.mulf %369, %371 : vector<16x32xf32>
    %cst_196 = arith.constant dense<0.000000e+00> : vector<16xf32>
    %373 = vector.multi_reduction <add>, %372, %cst_196 [1] : vector<16x32xf32> to vector<16xf32>
    %374 = vector.shape_cast %373 : vector<16xf32> to vector<16x1xf32>
    %cst_197 = arith.constant 3.200000e+01 : f32
    %375 = vector.broadcast %cst_197 : f32 to vector<16x1xf32>
    %376 = arith.divf %374, %375 : vector<16x1xf32>
    %377 = vector.broadcast %367 : vector<16x1xf32> to vector<16x32xf32>
    %378 = arith.subf %359, %377 : vector<16x32xf32>
    %cst_198 = arith.constant 9.99999974E-6 : f32
    %379 = vector.broadcast %cst_198 : f32 to vector<16x1xf32>
    %380 = arith.addf %376, %379 : vector<16x1xf32>
    %381 = math.rsqrt %380 : vector<16x1xf32>
    %382 = vector.broadcast %381 : vector<16x1xf32> to vector<16x32xf32>
    %383 = arith.mulf %378, %382 : vector<16x32xf32>
    %384 = vector.broadcast %361 : vector<1x32xf32> to vector<16x32xf32>
    %385 = arith.mulf %383, %384 : vector<16x32xf32>
    %386 = vector.broadcast %363 : vector<1x32xf32> to vector<16x32xf32>
    %387 = arith.addf %385, %386 : vector<16x32xf32>
    %c3_199 = arith.constant 3 : index
    %c0_200 = arith.constant 0 : index
    %c0_201 = arith.constant 0 : index
    %388 = vector.load %arg7[%c3_199, %c0_200, %c0_201] : memref<4x32x256xf32, #tpu.memory_space<vmem>>, vector<1x32x256xf32>
    %389 = vector.shape_cast %388 : vector<1x32x256xf32> to vector<32x256xf32>
    %cst_202 = arith.constant dense<0.000000e+00> : vector<16x256xf32>
    %390 = tpu.matmul %387, %389, %cst_202 {dimension_numbers = #tpu.dot_dimension_numbers<[1], [0], [0], [1], [0, 0, 1, 1], [], []>} : vector<16x32xf32>, vector<32x256xf32>, vector<16x256xf32> -> vector<16x256xf32>
    %c3_203 = arith.constant 3 : index
    %c0_204 = arith.constant 0 : index
    %c0_205 = arith.constant 0 : index
    %391 = vector.load %arg8[%c3_203, %c0_204, %c0_205] : memref<4x1x256xf32, #tpu.memory_space<vmem>>, vector<1x1x256xf32>
    %392 = vector.shape_cast %391 : vector<1x1x256xf32> to vector<1x256xf32>
    %393 = vector.broadcast %392 : vector<1x256xf32> to vector<16x256xf32>
    %394 = arith.addf %390, %393 : vector<16x256xf32>
    %cst_206 = arith.constant 0.000000e+00 : f32
    %395 = vector.broadcast %cst_206 : f32 to vector<16x256xf32>
    %396 = arith.maximumf %394, %395 : vector<16x256xf32>
    %c3_207 = arith.constant 3 : index
    %c0_208 = arith.constant 0 : index
    %c0_209 = arith.constant 0 : index
    %397 = vector.load %arg9[%c3_207, %c0_208, %c0_209] : memref<4x256x32xf32, #tpu.memory_space<vmem>>, vector<1x256x32xf32>
    %398 = vector.shape_cast %397 : vector<1x256x32xf32> to vector<256x32xf32>
    %cst_210 = arith.constant dense<0.000000e+00> : vector<16x32xf32>
    %399 = tpu.matmul %396, %398, %cst_210 {dimension_numbers = #tpu.dot_dimension_numbers<[1], [0], [0], [1], [0, 0, 1, 1], [], []>} : vector<16x256xf32>, vector<256x32xf32>, vector<16x32xf32> -> vector<16x32xf32>
    %c3_211 = arith.constant 3 : index
    %c0_212 = arith.constant 0 : index
    %c0_213 = arith.constant 0 : index
    %400 = vector.load %arg10[%c3_211, %c0_212, %c0_213] : memref<4x1x32xf32, #tpu.memory_space<vmem>>, vector<1x1x32xf32>
    %401 = vector.shape_cast %400 : vector<1x1x32xf32> to vector<1x32xf32>
    %402 = vector.broadcast %401 : vector<1x32xf32> to vector<16x32xf32>
    %403 = arith.addf %399, %402 : vector<16x32xf32>
    %404 = arith.addf %387, %403 : vector<16x32xf32>
    %c3_214 = arith.constant 3 : index
    %c0_215 = arith.constant 0 : index
    %c0_216 = arith.constant 0 : index
    %405 = vector.load %arg11[%c3_214, %c0_215, %c0_216] : memref<4x1x32xf32, #tpu.memory_space<vmem>>, vector<1x1x32xf32>
    %406 = vector.shape_cast %405 : vector<1x1x32xf32> to vector<1x32xf32>
    %c3_217 = arith.constant 3 : index
    %c0_218 = arith.constant 0 : index
    %c0_219 = arith.constant 0 : index
    %407 = vector.load %arg12[%c3_217, %c0_218, %c0_219] : memref<4x1x32xf32, #tpu.memory_space<vmem>>, vector<1x1x32xf32>
    %408 = vector.shape_cast %407 : vector<1x1x32xf32> to vector<1x32xf32>
    %cst_220 = arith.constant dense<0.000000e+00> : vector<16xf32>
    %409 = vector.multi_reduction <add>, %404, %cst_220 [1] : vector<16x32xf32> to vector<16xf32>
    %410 = vector.shape_cast %409 : vector<16xf32> to vector<16x1xf32>
    %cst_221 = arith.constant 3.200000e+01 : f32
    %411 = vector.broadcast %cst_221 : f32 to vector<16x1xf32>
    %412 = arith.divf %410, %411 : vector<16x1xf32>
    %413 = vector.broadcast %412 : vector<16x1xf32> to vector<16x32xf32>
    %414 = arith.subf %404, %413 : vector<16x32xf32>
    %415 = vector.broadcast %412 : vector<16x1xf32> to vector<16x32xf32>
    %416 = arith.subf %404, %415 : vector<16x32xf32>
    %417 = arith.mulf %414, %416 : vector<16x32xf32>
    %cst_222 = arith.constant dense<0.000000e+00> : vector<16xf32>
    %418 = vector.multi_reduction <add>, %417, %cst_222 [1] : vector<16x32xf32> to vector<16xf32>
    %419 = vector.shape_cast %418 : vector<16xf32> to vector<16x1xf32>
    %cst_223 = arith.constant 3.200000e+01 : f32
    %420 = vector.broadcast %cst_223 : f32 to vector<16x1xf32>
    %421 = arith.divf %419, %420 : vector<16x1xf32>
    %422 = vector.broadcast %412 : vector<16x1xf32> to vector<16x32xf32>
    %423 = arith.subf %404, %422 : vector<16x32xf32>
    %cst_224 = arith.constant 9.99999974E-6 : f32
    %424 = vector.broadcast %cst_224 : f32 to vector<16x1xf32>
    %425 = arith.addf %421, %424 : vector<16x1xf32>
    %426 = math.rsqrt %425 : vector<16x1xf32>
    %427 = vector.broadcast %426 : vector<16x1xf32> to vector<16x32xf32>
    %428 = arith.mulf %423, %427 : vector<16x32xf32>
    %429 = vector.broadcast %406 : vector<1x32xf32> to vector<16x32xf32>
    %430 = arith.mulf %428, %429 : vector<16x32xf32>
    %431 = vector.broadcast %408 : vector<1x32xf32> to vector<16x32xf32>
    %432 = arith.addf %430, %431 : vector<16x32xf32>
    %c0_225 = arith.constant 0 : index
    %c0_226 = arith.constant 0 : index
    %433 = vector.load %arg13[%c0_225, %c0_226] : memref<1x32xf32, #tpu.memory_space<vmem>>, vector<1x32xf32>
    %c0_227 = arith.constant 0 : index
    %c0_228 = arith.constant 0 : index
    %434 = vector.load %arg14[%c0_227, %c0_228] : memref<1x32xf32, #tpu.memory_space<vmem>>, vector<1x32xf32>
    %cst_229 = arith.constant dense<0.000000e+00> : vector<16xf32>
    %435 = vector.multi_reduction <add>, %432, %cst_229 [1] : vector<16x32xf32> to vector<16xf32>
    %436 = vector.shape_cast %435 : vector<16xf32> to vector<16x1xf32>
    %cst_230 = arith.constant 3.200000e+01 : f32
    %437 = vector.broadcast %cst_230 : f32 to vector<16x1xf32>
    %438 = arith.divf %436, %437 : vector<16x1xf32>
    %439 = vector.broadcast %438 : vector<16x1xf32> to vector<16x32xf32>
    %440 = arith.subf %432, %439 : vector<16x32xf32>
    %441 = vector.broadcast %438 : vector<16x1xf32> to vector<16x32xf32>
    %442 = arith.subf %432, %441 : vector<16x32xf32>
    %443 = arith.mulf %440, %442 : vector<16x32xf32>
    %cst_231 = arith.constant dense<0.000000e+00> : vector<16xf32>
    %444 = vector.multi_reduction <add>, %443, %cst_231 [1] : vector<16x32xf32> to vector<16xf32>
    %445 = vector.shape_cast %444 : vector<16xf32> to vector<16x1xf32>
    %cst_232 = arith.constant 3.200000e+01 : f32
    %446 = vector.broadcast %cst_232 : f32 to vector<16x1xf32>
    %447 = arith.divf %445, %446 : vector<16x1xf32>
    %448 = vector.broadcast %438 : vector<16x1xf32> to vector<16x32xf32>
    %449 = arith.subf %432, %448 : vector<16x32xf32>
    %cst_233 = arith.constant 9.99999974E-6 : f32
    %450 = vector.broadcast %cst_233 : f32 to vector<16x1xf32>
    %451 = arith.addf %447, %450 : vector<16x1xf32>
    %452 = math.rsqrt %451 : vector<16x1xf32>
    %453 = vector.broadcast %452 : vector<16x1xf32> to vector<16x32xf32>
    %454 = arith.mulf %449, %453 : vector<16x32xf32>
    %455 = vector.broadcast %433 : vector<1x32xf32> to vector<16x32xf32>
    %456 = arith.mulf %454, %455 : vector<16x32xf32>
    %457 = vector.broadcast %434 : vector<1x32xf32> to vector<16x32xf32>
    %458 = arith.addf %456, %457 : vector<16x32xf32>
    %c0_234 = arith.constant 0 : index
    %c0_235 = arith.constant 0 : index
    %459 = vector.load %arg19[%c0_234, %c0_235] : memref<16x32xf32, #tpu.memory_space<vmem>>, vector<16x32xf32>
    tpu.vector_store %arg19[%c0_234, %c0_235], %458 {strides = array<i32>} : memref<16x32xf32, #tpu.memory_space<vmem>>, vector<16x32xf32>,
    return
  }
}

</mosaic_0001>

<bundles_post_ra>
// kernel: tpu_custom_call.1
= control target key start
LH: loop header
LB: loop body
LE: loop exit
PB: predicated region body
PF: predicated region fallthrough
CT: control target
= control target key end

     0   :  { %s5439_s0 = inlined_call_operand.vmem [shape: f32[16,32], index: 0, kind: input, shape index: {}]   ;;  %s5440_s1 = inlined_call_operand.vmem [shape: f32[4,32,96], index: 1, kind: input, shape index: {}]   ;;  %s5441_s2 = inlined_call_operand.vmem [shape: f32[4,1,96], index: 2, kind: input, shape index: {}]   ;;  %s5442_s3 = inlined_call_operand.vmem [shape: f32[4,32,32], index: 3, kind: input, shape index: {}]   ;;  %s5443_s4 = inlined_call_operand.vmem [shape: f32[4,1,32], index: 4, kind: input, shape index: {}]   ;;  %s5444_s5 = inlined_call_operand.vmem [shape: f32[4,1,32], index: 5, kind: input, shape index: {}]   ;;  %s5445_s6 = inlined_call_operand.vmem [shape: f32[4,1,32], index: 6, kind: input, shape index: {}]   ;;  %s5446_s7 = inlined_call_operand.vmem [shape: f32[4,32,256], index: 7, kind: input, shape index: {}]   ;;  %s5447_s8 = inlined_call_operand.vmem [shape: f32[4,1,256], index: 8, kind: input, shape index: {}]   ;;  %s5448_s9 = inlined_call_operand.vmem [shape: f32[4,256,32], index: 9, kind: input, shape index: {}]   ;;  %s5449_s10 = inlined_call_operand.vmem [shape: f32[4,1,32], index: 10, kind: input, shape index: {}]   ;;  %s5450_s11 = inlined_call_operand.vmem [shape: f32[4,1,32], index: 11, kind: input, shape index: {}]   ;;  %s5451_s12 = inlined_call_operand.vmem [shape: f32[4,1,32], index: 12, kind: input, shape index: {}]   ;;  %s5452_s13 = inlined_call_operand.vmem [shape: f32[1,32], index: 13, kind: input, shape index: {}]   ;;  %s5453_s14 = inlined_call_operand.vmem [shape: f32[1,32], index: 14, kind: input, shape index: {}]   ;;  %s5454_s15 = inlined_call_operand.vmem [shape: f32[32,128], index: 15, kind: input, shape index: {}]   ;;  %s5455_s16 = inlined_call_operand.vmem [shape: f32[128,32], index: 16, kind: input, shape index: {}]   ;;  %s5456_s17 = inlined_call_operand.vmem [shape: f32[128,128], index: 17, kind: input, shape index: {}]   ;;  %s5457_s18 = inlined_call_operand.vmem [shape: f32[16,128], index: 18, kind: input, shape index: {}]   ;;  %s5458_s19 = inlined_call_operand.hbm [shape: f32[16,32], index: 19, kind: output, shape index: {}]  }
   0x1   :  { %5487 = sst [smem:[#allocation15_spill]] %s5439_s0 }
   0x2   :  { %5488 = sst [smem:[#allocation16_spill]] %s5440_s1 }
   0x3   :  { %5489 = sst [smem:[#allocation17_spill]] %s5441_s2 }
   0x4   :  { %5490 = sst [smem:[#allocation18_spill]] %s5442_s3 }
   0x5   :  { %5491 = sst [smem:[#allocation19_spill]] %s5452_s13 }
   0x6   :  { %5492 = sst [smem:[#allocation20_spill]] %s5453_s14 }
   0x7   :  { %5493 = sst [smem:[#allocation21_spill]] %s5458_s19 }
   0x8   :  { %s5494_s20 = sld [smem:[#allocation16_spill]]  ;;  %vm111_vm0 = vcmask 261120  }
   0x9   :  { %s5495_s26 = sld [smem:[#allocation15_spill]] }
   0xe   :  { %v106_v0 = vld [vmem:[%s5494_s20 + $0x18] sm:$0xff]  ;;  %v105_v1 = vld [vmem:[%s5494_s20 + $0x10] sm:$0xff]  ;;  %v104_v2 = vld [vmem:[%s5494_s20 + $0x8] sm:$0xff] }
   0xf   :  { %130 = vmatpush.msra.mxu2 %v106_v0  ;;  %v103_v3 = vld [vmem:[%s5494_s20] sm:$0xff] }
  0x10   :  { %v3629_v4 = vld [vmem:[%s5495_s26] sm:$0xff] }
  0x11   :  { %131 = vmatpush.msra.mxu2 %v105_v1 }
  0x13   :  { %132 = vmatpush.msra.mxu2 %v104_v2 }
  0x15   :  { %133 = vmatpush.msra.mxu2 %v103_v3 }
  0x16   :  { %2969 = vmatmul.msk.f32.vlgmr.msra.gmra.mxu2 %vm111_vm0, %v3629_v4 }
  0x17   :  { %24 = vsyncpa [#allocation3], 0  ;;  %v3636_v5 = vld [vmem:[%s5495_s26 + $0x8] sm:$0xff]  ;;  %s5496_s30 = sld [smem:[#allocation17_spill]]  ;;  %s5475_s21 = smov 96   ;;  %v84_v17 = vld [vmem:[%s5455_s16 + $0x78] sm:$0xff] }
  0x18   :  { %s5473_s1 = smov 16   ;;  %s5471_s22 = smov 48   ;;  %v83_v18 = vld [vmem:[%s5455_s16 + $0x70] sm:$0xff]  ;;  %v82_v19 = vld [vmem:[%s5455_s16 + $0x68] sm:$0xff]  ;;  %v81_v20 = vld [vmem:[%s5455_s16 + $0x60] sm:$0xff]  ;;  %vm269_vm1 = vcmask 130048  }
  0x19   :  { %s5469_s24 = smov 32   ;;  %s5467_s25 = smov 64   ;;  %v79_v21 = vld [vmem:[%s5455_s16 + $0x50] sm:$0xff]  ;;  %v77_v22 = vld [vmem:[%s5455_s16 + $0x40] sm:$0xff]  ;;  %v76_v23 = vld [vmem:[%s5455_s16 + $0x38] sm:$0xff]  ;;  %vm278_vm2 = vcmask 392192  }
  0x1a   :  { %s5463_s3 = smov 112   ;;  %s5465_s28 = smov 80   ;;  %v74_v24 = vld [vmem:[%s5455_s16 + $0x28] sm:$0xff]  ;;  %v71_v25 = vld [vmem:[%s5455_s16 + $0x10] sm:$0xff]  ;;  %vm283_vm3 = vcmask 523264   ;;  %vm288_vm4 = vcmask 654336  }
  0x1b   :  { %vm293_vm5 = vcmask 785408   ;;  %vm298_vm6 = vcmask 916480   ;;  %s5505_s26 = sld [smem:[#allocation18_spill]]  ;;  %s5506_s0 = smov 32  }
  0x1c   :  { %s5509_s2 = smov 112   ;;  %s5514_s23 = smov 48  }
  0x1d   :  { %v3349_v6 = vld [vmem:[%s5496_s30] ss:$0 sm:$0xff]  ;;  %s3511_s13 = smov [#allocation2]  }
  0x1e   :  { %2970 = vmatmul.msk.f32.gmra.mxu2 %vm111_vm0, %v3636_v5  ;;  %s2955_s14 = sshll.u32 %s3511_s13, 4  ;;  %s2956_s14 = int_to_ptr.vmem [resolvable:$true] %s2955_s14 }
  0x99   :  { %v135_v7 = vpop.f32.mrf.mxu2 }
  0x9a   :  { %v3643_v8 = vadd.f32 %v3349_v6, %v135_v7 }
  0x9c   :  { %143 = vrot.lane.b32.xlu0 %v3643_v8, %s5475_s21 }
  0xa1   :  { %v138_v9 = vpop.f32.mrf.mxu2 }
  0xa2   :  { %v3647_v10 = vadd.f32 %v3349_v6, %v138_v9 }
  0xa4   :  { %145 = vrot.lane.b32.xlu0 %v3647_v10, %s5475_s21 }
 0x10e   :  { %v144_v11 = vpop.permute.xlu0 %143 }
 0x10f   :  { %149 = vxpose.xlu1.b32.start [1/2] (short) (narrow) %v144_v11, 32 }
 0x116   :  { %v146_v12 = vpop.permute.xlu0 %145 }
 0x117   :  { %150 = vxpose.xlu1.b32.end [2/2] (short) (narrow) %v146_v12, 32 }
 0x1b3   :  { %v3651_v13 = vpop.trf.xlu1 }
 0x1bb   :  { %v3653_v14 = vpop.trf.xlu1 }
 0x1c3   :  { %v3655_v15 = vpop.trf.xlu1 }
 0x1c4   :  { %189 = vrot.lane.b32.xlu0 %v3655_v15, %s5473_s1 }
 0x1cb   :  { %v3659_v16 = vpop.trf.xlu1 }
 0x1cc   :  { %213 = vrot.lane.b32.xlu0 %v3655_v15, %s5471_s22  ;;  %215 = vrot.lane.b32.xlu1 %v3659_v16, %s5471_s22 }
 0x1cd   :  { %191 = vrot.lane.b32.xlu2 %v3659_v16, %s5473_s1 }
 0x1d4   :  { %199 = vrot.lane.b32.xlu0 %v3653_v14, %s5469_s24  ;;  %417 = vrot.lane.b32.xlu1 %v84_v17, %s5467_s25 }
 0x1d5   :  { %203 = vrot.lane.b32.xlu2 %v3659_v16, %s5469_s24 }
 0x1dc   :  { %211 = vrot.lane.b32.xlu0 %v3653_v14, %s5471_s22  ;;  %415 = vrot.lane.b32.xlu1 %v83_v18, %s5467_s25 }
 0x1dd   :  { %201 = vrot.lane.b32.xlu2 %v3655_v15, %s5469_s24 }
 0x1e4   :  { %223 = vrot.lane.b32.xlu0 %v3653_v14, %s5467_s25  ;;  %413 = vrot.lane.b32.xlu1 %v82_v19, %s5467_s25 }
 0x1e5   :  { %187 = vrot.lane.b32.xlu2 %v3653_v14, %s5473_s1 }
 0x1ec   :  { %209 = vrot.lane.b32.xlu0 %v3651_v13, %s5471_s22  ;;  %411 = vrot.lane.b32.xlu1 %v81_v20, %s5467_s25  ;;  %v67_v20 = vld [vmem:[%s5454_s15 + $0x10] sm:$0xff] }
 0x1ed   :  { %225 = vrot.lane.b32.xlu2 %v3655_v15, %s5467_s25 }
 0x1f4   :  { %261 = vrot.lane.b32.xlu0 %v3655_v15, %s5463_s3  ;;  %407 = vrot.lane.b32.xlu1 %v79_v21, %s5467_s25 }
 0x1f5   :  { %185 = vrot.lane.b32.xlu2 %v3651_v13, %s5473_s1 }
 0x1fc   :  { %247 = vrot.lane.b32.xlu0 %v3653_v14, %s5475_s21  ;;  %403 = vrot.lane.b32.xlu1 %v77_v22, %s5467_s25 }
 0x1fd   :  { %237 = vrot.lane.b32.xlu2 %v3655_v15, %s5465_s28 }
 0x204   :  { %259 = vrot.lane.b32.xlu0 %v3653_v14, %s5463_s3  ;;  %401 = vrot.lane.b32.xlu1 %v76_v23, %s5467_s25 }
 0x205   :  { %197 = vrot.lane.b32.xlu2 %v3651_v13, %s5469_s24 }
 0x20c   :  { %227 = vrot.lane.b32.xlu0 %v3659_v16, %s5467_s25  ;;  %397 = vrot.lane.b32.xlu1 %v74_v24, %s5467_s25 }
 0x20d   :  { %249 = vrot.lane.b32.xlu2 %v3655_v15, %s5475_s21 }
 0x214   :  { %251 = vrot.lane.b32.xlu0 %v3659_v16, %s5475_s21  ;;  %391 = vrot.lane.b32.xlu1 %v71_v25, %s5467_s25 }
 0x215   :  { %235 = vrot.lane.b32.xlu2 %v3653_v14, %s5465_s28 }
 0x21c   :  { %263 = vrot.lane.b32.xlu0 %v3659_v16, %s5463_s3 }
 0x21d   :  { %221 = vrot.lane.b32.xlu2 %v3651_v13, %s5467_s25 }
 0x224   :  { %257 = vrot.lane.b32.xlu0 %v3651_v13, %s5463_s3  ;;  %s5507_s3 = smov 64  }
 0x225   :  { %233 = vrot.lane.b32.xlu2 %v3651_v13, %s5465_s28 }
 0x227   :  { %v192_v26 = vpop.permute.xlu2 %191 }
 0x228   :  { %v273_v57 = vsel %vm269_vm1, %v3659_v16, %v192_v26  ;;  %v66_v26 = vld [vmem:[%s5454_s15 + $0x8] sm:$0xff] }
 0x22d   :  { %239 = vrot.lane.b32.xlu2 %v3659_v16, %s5465_s28  ;;  %s5508_s28 = smov 80  }
 0x22f   :  { %v204_v27 = vpop.permute.xlu2 %203 }
 0x230   :  { %v277_v58 = vsel %vm111_vm0, %v273_v57, %v204_v27  ;;  %v3845_v57 = vld [vmem:[%s5456_s17 + $0x68] sm:$0xff] }
 0x235   :  { %245 = vrot.lane.b32.xlu2 %v3651_v13, %s5475_s21 }
 0x236   :  { %v190_v28 = vpop.permute.xlu0 %189 }
 0x237   :  { %v202_v29 = vpop.permute.xlu2 %201  ;;  %v272_v55 = vsel %vm269_vm1, %v3655_v15, %v190_v28  ;;  %v68_v15 = vld [vmem:[%s5454_s15 + $0x18] sm:$0xff] }
 0x238   :  { %v276_v59 = vsel %vm111_vm0, %v272_v55, %v202_v29  ;;  %v3836_v55 = vld [vmem:[%s5456_s17 + $0x70] sm:$0xff] }
 0x23e   :  { %v214_v30 = vpop.permute.xlu0 %213  ;;  %v216_v31 = vpop.permute.xlu1 %215 }
 0x23f   :  { %v188_v32 = vpop.permute.xlu2 %187  ;;  %v281_v61 = vsel %vm278_vm2, %v276_v59, %v214_v30  ;;  %v282_v62 = vsel %vm278_vm2, %v277_v58, %v216_v31  ;;  %v3852_v58 = vld [vmem:[%s5456_s17 + $0x60] sm:$0xff]  ;;  %v78_v59 = vld [vmem:[%s5455_s16 + $0x48] sm:$0xff] }
 0x240   :  { %v271_v63 = vsel %vm269_vm1, %v3653_v14, %v188_v32 }
 0x246   :  { %v200_v33 = vpop.permute.xlu0 %199  ;;  %v3751_v34 = vpop.permute.xlu1 %417 }
 0x247   :  { %v226_v35 = vpop.permute.xlu2 %225  ;;  %v450_v40 = vmul.f32 %v3751_v34, %v3647_v10  ;;  %v275_v0 = vsel %vm111_vm0, %v271_v63, %v200_v33  ;;  %v65_v33 = vld [vmem:[%s5454_s15] sm:$0xff]  ;;  %v3877_v63 = vld [vmem:[%s5456_s17 + $0x48] sm:$0xff] }
 0x248   :  { %v286_v1 = vsel %vm283_vm3, %v281_v61, %v226_v35  ;;  %v3868_v61 = vld [vmem:[%s5456_s17 + $0x50] sm:$0xff] }
 0x24e   :  { %v212_v36 = vpop.permute.xlu0 %211  ;;  %v3753_v37 = vpop.permute.xlu1 %415 }
 0x24f   :  { %v186_v38 = vpop.permute.xlu2 %185  ;;  %v449_v39 = vmul.f32 %v3753_v37, %v3643_v8  ;;  %v280_v3 = vsel %vm278_vm2, %v275_v0, %v212_v36  ;;  %v3884_v0 = vld [vmem:[%s5456_s17 + $0x40] sm:$0xff] }
 0x250   :  { %v270_v18 = vsel %vm269_vm1, %v3651_v13, %v186_v38 }
 0x251   :  { %v3189_v41 = vpack.i.bf16 %v449_v39, %v450_v40 }
 0x253   :  { %3190 = vrot.lane.b32.xlu1 %v3189_v41, %s5467_s25 }
 0x256   :  { %v224_v42 = vpop.permute.xlu0 %223  ;;  %v3760_v54 = vpop.permute.xlu1 %413 }
 0x257   :  { %v238_v43 = vpop.permute.xlu2 %237  ;;  %5497 = vst [vmem:[#allocation5_spill] sm:$0xff] %v3760_v54  ;;  %v285_v11 = vsel %vm283_vm3, %v280_v3, %v224_v42  ;;  %v3900_v3 = vld [vmem:[%s5456_s17 + $0x30] sm:$0xff] }
 0x258   :  { %v291_v6 = vsel %vm288_vm4, %v286_v1, %v238_v43  ;;  %v73_v1 = vld [vmem:[%s5455_s16 + $0x20] sm:$0xff] }
 0x25e   :  { %v210_v44 = vpop.permute.xlu0 %209  ;;  %v3777_v7 = vpop.permute.xlu1 %411 }
 0x25f   :  { %v198_v45 = vpop.permute.xlu2 %197  ;;  %5498 = vst [vmem:[#allocation6_spill] sm:$0xff] %v3777_v7 }
 0x260   :  { %v274_v22 = vsel %vm111_vm0, %v270_v18, %v198_v45  ;;  %v3936_v18 = vld [vmem:[%s5456_s17 + $0x18] sm:$0xff] }
 0x261   :  { %v279_v27 = vsel %vm278_vm2, %v274_v22, %v210_v44 }
 0x266   :  { %v262_v46 = vpop.permute.xlu0 %261  ;;  %v3802_v31 = vpop.permute.xlu1 %407 }
 0x267   :  { %v250_v47 = vpop.permute.xlu2 %249 }
 0x268   :  { %v296_v12 = vsel %vm293_vm5, %v291_v6, %v250_v47  ;;  %v101_v47 = vld [vmem:[%s5457_s18] sm:$0xff]  ;;  %v72_v6 = vld [vmem:[%s5455_s16 + $0x18] sm:$0xff] }
 0x269   :  { %v301_v21 = vsel %vm298_vm6, %v296_v12, %v262_v46  ;;  %v447_v12 = vmul.f32 %v3777_v7, %v3643_v8 }
 0x26a   :  { %v305_v13 = vmul.f32 %v301_v21, %v67_v20  ;;  %v3948_v20 = vld [vmem:[%s5456_s17 + $0x8] sm:$0xff]  ;;  %v3954_v21 = vld [vmem:[%s5456_s17] sm:$0xff] }
 0x26e   :  { %v248_v48 = vpop.permute.xlu0 %247  ;;  %v3812_v40 = vpop.permute.xlu1 %403 }
 0x26f   :  { %v236_v49 = vpop.permute.xlu2 %235  ;;  %5499 = vst [vmem:[#allocation7_spill] sm:$0xff] %v3812_v40 }
 0x270   :  { %v290_v14 = vsel %vm288_vm4, %v285_v11, %v236_v49  ;;  %v69_v11 = vld [vmem:[%s5455_s16] sm:$0xff] }
 0x271   :  { %v295_v23 = vsel %vm293_vm5, %v290_v14, %v248_v48  ;;  %v448_v14 = vmul.f32 %v3760_v54, %v3647_v10 }
 0x276   :  { %v260_v50 = vpop.permute.xlu0 %259  ;;  %v3816_v41 = vpop.permute.xlu1 %401 }
 0x277   :  { %v222_v51 = vpop.permute.xlu2 %221  ;;  %v300_v25 = vsel %vm298_vm6, %v295_v23, %v260_v50  ;;  %5500 = vst [vmem:[#allocation8_spill] sm:$0xff] %v3816_v41  ;;  %v102_v50 = vld [vmem:[%s5457_s18 + $0x8] sm:$0xff] }
 0x278   :  { %v284_v29 = vsel %vm283_vm3, %v279_v27, %v222_v51  ;;  %v304_v30 = vmul.f32 %v300_v25, %v66_v26  ;;  %v445_v27 = vmul.f32 %v3802_v31, %v3643_v8 }
 0x27e   :  { %v228_v52 = vpop.permute.xlu0 %227  ;;  %v3818_v42 = vpop.permute.xlu1 %397 }
 0x27f   :  { %v234_v53 = vpop.permute.xlu2 %233  ;;  %v287_v2 = vsel %vm283_vm3, %v282_v62, %v228_v52  ;;  %v75_v62 = vld [vmem:[%s5455_s16 + $0x30] sm:$0xff] }
 0x280   :  { %v289_v32 = vsel %vm288_vm4, %v284_v29, %v234_v53  ;;  %v3831_v53 = vld [vmem:[%s5456_s17 + $0x78] sm:$0xff] }
 0x281   :  { %344 = vmatpush.msrb.mxu2 %v3831_v53 }
 0x283   :  { %345 = vmatpush.msrb.mxu2 %v3836_v55 }
 0x285   :  { %346 = vmatpush.msrb.mxu2 %v3845_v57 }
 0x286   :  { %v252_v56 = vpop.permute.xlu0 %251  ;;  %v3820_v43 = vpop.permute.xlu1 %391 }
 0x287   :  { %v240_v60 = vpop.permute.xlu2 %239  ;;  %347 = vmatpush.msrb.mxu2 %v3852_v58 }
 0x288   :  { %v292_v9 = vsel %vm288_vm4, %v287_v2, %v240_v60  ;;  %v3861_v60 = vld [vmem:[%s5456_s17 + $0x58] sm:$0xff] }
 0x289   :  { %v297_v17 = vsel %vm293_vm5, %v292_v9, %v252_v56  ;;  %v80_v56 = vld [vmem:[%s5455_s16 + $0x58] sm:$0xff]  ;;  %348 = vmatpush.msrb.mxu2 %v3861_v60  ;;  %v70_v9 = vld [vmem:[%s5455_s16 + $0x8] sm:$0xff]  ;;  %s5513_s16 = smov 16  }
 0x28a   :  { %v3893_v2 = vld [vmem:[%s5456_s17 + $0x38] sm:$0xff] }
 0x28b   :  { %349 = vmatpush.msrb.mxu2 %v3868_v61 }
 0x28d   :  { %350 = vmatpush.msrb.mxu2 %v3877_v63 }
 0x28e   :  { %v264_v16 = vpop.permute.xlu0 %263 }
 0x28f   :  { %v302_v19 = vsel %vm298_vm6, %v297_v17, %v264_v16  ;;  %v246_v28 = vpop.permute.xlu2 %245  ;;  %351 = vmatpush.msrb.mxu2 %v3884_v0  ;;  %v3924_v16 = vld [vmem:[%s5456_s17 + $0x28] sm:$0xff]  ;;  %v3930_v17 = vld [vmem:[%s5456_s17 + $0x20] sm:$0xff] }
 0x290   :  { %v306_v24 = vmul.f32 %v302_v19, %v68_v15  ;;  %v294_v35 = vsel %vm293_vm5, %v289_v32, %v246_v28  ;;  %v3194_v15 = vpack.i.bf16 %v447_v12, %v448_v14  ;;  %v3941_v19 = vld [vmem:[%s5456_s17 + $0x10] sm:$0xff] }
 0x291   :  { %352 = vmatpush.msrb.mxu2 %v3893_v2 }
 0x292   :  { %323 = vmatpush.msra.mxu3 %v306_v24 }
 0x293   :  { %353 = vmatpush.msrb.mxu2 %v3900_v3 }
 0x294   :  { %324 = vmatpush.msra.mxu3 %v305_v13 }
 0x295   :  { %354 = vmatpush.msrb.mxu2 %v3924_v16 }
 0x296   :  { %v258_v36 = vpop.permute.xlu0 %257  ;;  %325 = vmatpush.msra.mxu3 %v304_v30 }
 0x297   :  { %v299_v38 = vsel %vm298_vm6, %v294_v35, %v258_v36  ;;  %355 = vmatpush.msrb.mxu2 %v3930_v17  ;;  %v442_v36 = vmul.f32 %v3816_v41, %v3647_v10 }
 0x298   :  { %v303_v39 = vmul.f32 %v299_v38, %v65_v33 }
 0x299   :  { %356 = vmatpush.msrb.mxu2 %v3936_v18 }
 0x29a   :  { %326 = vmatpush.msra.mxu3 %v303_v39 }
 0x29b   :  { %2971 = vmatmul.msk.f32.vlgmr.msra.gmra.mxu3 %vm111_vm0, %v3643_v8  ;;  %357 = vmatpush.msrb.mxu2 %v3941_v19 }
 0x29d   :  { %358 = vmatpush.msrb.mxu2 %v3948_v20 }
 0x29f   :  { %359 = vmatpush.msrb.mxu2 %v3954_v21 }
 0x2a3   :  { %2972 = vmatmul.msk.f32.gmra.mxu3 %vm111_vm0, %v3647_v10 }
 0x2c5   :  { %v3191_v44 = vpop.permute.xlu1 %3190 }
 0x2c6   :  { %v3192_v45 = vunpack.i.l.bf16 %v3191_v44  ;;  %v3193_v46 = vunpack.i.h.bf16 %v3191_v44 }
 0x2c8   :  { %515 = vmatpush.msrb.mxu3 %v3192_v45  ;;  %v443_v45 = vmul.f32 %v3812_v40, %v3643_v8 }
 0x2ca   :  { %516 = vmatpush.msrb.mxu3 %v3193_v46 }
 0x31e   :  { %v328_v48 = vpop.f32.mrf.mxu3 }
 0x31f   :  { %v329_v49 = vadd.f32 %v328_v48, %v101_v47 }
 0x321   :  { %334 = vmax.xlane.f32.xlu2 %v329_v49 }
 0x326   :  { %v331_v51 = vpop.f32.mrf.mxu3 }
 0x327   :  { %v332_v52 = vadd.f32 %v331_v51, %v102_v50 }
 0x329   :  { %336 = vmax.xlane.f32.xlu0 %v332_v52 }
 0x339   :  { %409 = vrot.lane.b32.xlu2 %v80_v56, %s5467_s25  ;;  %v437_v56 = vmul.f32 %v3820_v43, %v3643_v8 }
 0x33d   :  { %405 = vrot.lane.b32.xlu0 %v78_v59, %s5467_s25 }
 0x341   :  { %399 = vrot.lane.b32.xlu2 %v75_v62, %s5467_s25 }
 0x345   :  { %395 = vrot.lane.b32.xlu0 %v73_v1, %s5467_s25 }
 0x349   :  { %393 = vrot.lane.b32.xlu2 %v72_v6, %s5467_s25 }
 0x34d   :  { %389 = vrot.lane.b32.xlu0 %v70_v9, %s5467_s25 }
 0x351   :  { %387 = vrot.lane.b32.xlu2 %v69_v11, %s5467_s25 }
 0x355   :  { %3195 = vrot.lane.b32.xlu0 %v3194_v15, %s5467_s25 }
 0x394   :  { %v335_v22 = vpop.xlane.xlu2 %334 }
 0x395   :  { %v338_v23 = vsub.f32 %v329_v49, %v335_v22 }
 0x397   :  { %v340_v24 = vmul.f32 1.442695, %v338_v23 }
 0x399   :  { %3379 = vpow2.f32 %v340_v24 }
 0x39c   :  { %v337_v25 = vpop.xlane.xlu0 %336  ;;  %v3957_v26 = vpop.permute.xlu2 %409 }
 0x39d   :  { %v339_v13 = vsub.f32 %v332_v52, %v337_v25  ;;  %v446_v28 = vmul.f32 %v3957_v26, %v3647_v10  ;;  %v440_v52 = vmul.f32 %v3818_v42, %v3647_v10 }
 0x39f   :  { %v3963_v29 = vpop.eup %3379  ;;  %v342_v30 = vmul.f32 1.442695, %v339_v13  ;;  %v3199_v32 = vpack.i.bf16 %v445_v27, %v446_v28  ;;  %v539_v27 = vld [vmem:[%s5505_s26 + $0x8] sm:$0xff] }
 0x3a0   :  { %360 = vmatmul.f32.vlgmr.msrb.gmra.mxu2 %v3963_v29 }
 0x3a1   :  { %3381 = vpow2.f32 %v342_v30  ;;  %3200 = vrot.lane.b32.xlu2 %v3199_v32, %s5467_s25 }
 0x3a4   :  { %v3967_v33 = vpop.permute.xlu2 %399 }
 0x3a5   :  { %5501 = vst [vmem:[#allocation9_spill] sm:$0xff] %v3967_v33  ;;  %v441_v35 = vmul.f32 %v3967_v33, %v3643_v8 }
 0x3a7   :  { %v3973_v38 = vpop.eup %3381  ;;  %v3209_v39 = vpack.i.bf16 %v441_v35, %v442_v36 }
 0x3a8   :  { %363 = vmatmul.f32.gmra.mxu2 %v3973_v38 }
 0x3a9   :  { %3210 = vrot.lane.b32.xlu0 %v3209_v39, %s5467_s25 }
 0x3ac   :  { %v3983_v48 = vpop.permute.xlu2 %393 }
 0x3ad   :  { %v438_v49 = vmul.f32 %v3983_v48, %v3647_v10 }
 0x3af   :  { %v3977_v44 = vpop.permute.xlu0 %405  ;;  %v3219_v62 = vpack.i.bf16 %v437_v56, %v438_v49 }
 0x3b0   :  { %5502 = vst [vmem:[#allocation10_spill] sm:$0xff] %v3977_v44  ;;  %v444_v46 = vmul.f32 %v3977_v44, %v3647_v10 }
 0x3b2   :  { %v3204_v47 = vpack.i.bf16 %v443_v45, %v444_v46 }
 0x3b4   :  { %3205 = vrot.lane.b32.xlu1 %v3204_v47, %s5467_s25  ;;  %v3998_v1 = vpop.permute.xlu2 %387 }
 0x3b5   :  { %5503 = vst [vmem:[#allocation11_spill] sm:$0xff] %v3998_v1  ;;  %v435_v11 = vmul.f32 %v3998_v1, %v3643_v8 }
 0x3b7   :  { %v3988_v50 = vpop.permute.xlu0 %395 }
 0x3b8   :  { %v439_v51 = vmul.f32 %v3988_v50, %v3643_v8  ;;  %v540_v8 = vld [vmem:[%s5505_s26 + $0x10] sm:$0xff] }
 0x3ba   :  { %v3214_v59 = vpack.i.bf16 %v439_v51, %v440_v52 }
 0x3bc   :  { %3215 = vrot.lane.b32.xlu2 %v3214_v59, %s5467_s25  ;;  %3220 = vrot.lane.b32.xlu1 %v3219_v62, %s5467_s25 }
 0x3bf   :  { %v4000_v6 = vpop.permute.xlu0 %389 }
 0x3c0   :  { %5504 = vst [vmem:[#allocation12_spill] sm:$0xff] %v4000_v6  ;;  %v436_v9 = vmul.f32 %v4000_v6, %v3647_v10  ;;  %v541_v10 = vld [vmem:[%s5505_s26 + $0x18] sm:$0xff] }
 0x3c1   :  { %564 = vmatpush.msra.mxu0 %v541_v10 }
 0x3c2   :  { %v3224_v12 = vpack.i.bf16 %v435_v11, %v436_v9 }
 0x3c3   :  { %565 = vmatpush.msra.mxu0 %v540_v8 }
 0x3c4   :  { %3225 = vrot.lane.b32.xlu0 %v3224_v12, %s5467_s25  ;;  %s5512_s25 = smov 96  }
 0x3c5   :  { %566 = vmatpush.msra.mxu0 %v539_v27 }
 0x3c7   :  { %v3196_v14 = vpop.permute.xlu0 %3195 }
 0x3c8   :  { %v3197_v15 = vunpack.i.l.bf16 %v3196_v14  ;;  %v3198_v22 = vunpack.i.h.bf16 %v3196_v14 }
 0x3ca   :  { %517 = vmatpush.msrb.mxu3 %v3197_v15 }
 0x3cc   :  { %518 = vmatpush.msrb.mxu3 %v3198_v22  ;;  %v538_v22 = vld [vmem:[%s5505_s26] sm:$0xff] }
 0x3cd   :  { %567 = vmatpush.msra.mxu0 %v538_v22  ;;  %v645_v22 = vld [vmem:[%s5446_s7 + $0x28] sm:$0xff] }
 0x3fb   :  { %v3201_v23 = vpop.permute.xlu2 %3200 }
 0x3fc   :  { %v3202_v24 = vunpack.i.l.bf16 %v3201_v23  ;;  %v3203_v25 = vunpack.i.h.bf16 %v3201_v23 }
 0x3fe   :  { %519 = vmatpush.msrb.mxu3 %v3202_v24 }
 0x400   :  { %520 = vmatpush.msrb.mxu3 %v3203_v25 }
 0x416   :  { %v3216_v36 = vpop.permute.xlu2 %3215 }
 0x417   :  { %v3217_v46 = vunpack.i.l.bf16 %v3216_v36  ;;  %v3218_v49 = vunpack.i.h.bf16 %v3216_v36 }
 0x41b   :  { %v3211_v30 = vpop.permute.xlu0 %3210 }
 0x41c   :  { %v3212_v35 = vunpack.i.l.bf16 %v3211_v30  ;;  %v3213_v45 = vunpack.i.h.bf16 %v3211_v30 }
 0x423   :  { %v361_v39 = vpop.f32.mrf.mxu2 }
 0x424   :  { %3383 = vrcp.f32 %v361_v39 }
 0x426   :  { %v3206_v13 = vpop.permute.xlu1 %3205 }
 0x427   :  { %v3207_v28 = vunpack.i.l.bf16 %v3206_v13  ;;  %v3208_v32 = vunpack.i.h.bf16 %v3206_v13 }
 0x429   :  { %521 = vmatpush.msrb.mxu3 %v3207_v28 }
 0x42a   :  { %v3384_v62 = vpop.eup %3383 }
 0x42b   :  { %522 = vmatpush.msrb.mxu3 %v3208_v32  ;;  %v364_v56 = vpop.f32.mrf.mxu2  ;;  %v369_v12 = vmul.f32 %v3384_v62, %v3963_v29  ;;  %v3350_v29 = vld [vmem:[%s5443_s4] ss:$0 sm:$0xff]  ;;  %v3510_v32 = vmov 32.0  }
 0x42c   :  { %3385 = vrcp.f32 %v364_v56 }
 0x42d   :  { %523 = vmatpush.msrb.mxu3 %v3212_v35  ;;  %3387 = vrcp.f32 %v3510_v32  ;;  %v723_v32 = vld [vmem:[%s5448_s9 + $0x68] sm:$0xff] }
 0x42e   :  { %v3221_v47 = vpop.permute.xlu1 %3220 }
 0x42f   :  { %524 = vmatpush.msrb.mxu3 %v3213_v45  ;;  %v3222_v51 = vunpack.i.l.bf16 %v3221_v47  ;;  %v3223_v52 = vunpack.i.h.bf16 %v3221_v47 }
 0x431   :  { %525 = vmatpush.msrb.mxu3 %v3217_v46 }
 0x432   :  { %v3386_v14 = vpop.eup %3385 }
 0x433   :  { %526 = vmatpush.msrb.mxu3 %v3218_v49  ;;  %v370_v15 = vmul.f32 %v3386_v14, %v3973_v38  ;;  %v3388_v35 = vpop.eup %3387  ;;  %v646_v14 = vld [vmem:[%s5446_s7 + $0x30] sm:$0xff] }
 0x434   :  { %v586_v36 = vmul.f32 32.0, %v3388_v35  ;;  %vm590_vm7 = vweird.f32 %v3388_v35  ;;  %672 = vmatpush.msra.mxu1 %v646_v14  ;;  %v735_v14 = vld [vmem:[%s5448_s9 + $0xc8] sm:$0xff] }
 0x435   :  { %527 = vmatpush.msrb.mxu3 %v3222_v51 }
 0x436   :  { %v3226_v59 = vpop.permute.xlu0 %3225  ;;  %v587_v39 = vsub.f32 1.0, %v586_v36 }
 0x437   :  { %528 = vmatpush.msrb.mxu3 %v3223_v52  ;;  %v3227_v9 = vunpack.i.l.bf16 %v3226_v59  ;;  %v3228_v11 = vunpack.i.h.bf16 %v3226_v59 }
 0x438   :  { %v588_v45 = vmul.f32 %v3388_v35, %v587_v39 }
 0x439   :  { %529 = vmatpush.msrb.mxu3 %v3227_v9 }
 0x43a   :  { %v589_v46 = vadd.f32 %v3388_v35, %v588_v45  ;;  %v722_v45 = vld [vmem:[%s5448_s9 + $0x60] sm:$0xff] }
 0x43b   :  { %530 = vmatpush.msrb.mxu3 %v3228_v11 }
 0x43c   :  { %531 = vmatmul.f32.vlgmr.msrb.gmra.mxu3 %v369_v12  ;;  %v4030_v47 = vsel %vm590_vm7, %v3388_v35, %v589_v46  ;;  %v647_v12 = vld [vmem:[%s5446_s7 + $0x38] sm:$0xff]  ;;  %v739_v35 = vld [vmem:[%s5448_s9 + $0xe8] sm:$0xff]  ;;  %v738_v46 = vld [vmem:[%s5448_s9 + $0xe0] sm:$0xff] }
 0x43d   :  { %695 = vmatpush.msrb.mxu0 %v647_v12  ;;  %v719_v12 = vld [vmem:[%s5448_s9 + $0x48] sm:$0xff] }
 0x43f   :  { %696 = vmatpush.msrb.mxu0 %v645_v22  ;;  %v718_v22 = vld [vmem:[%s5448_s9 + $0x40] sm:$0xff] }
 0x444   :  { %534 = vmatmul.f32.gmra.mxu3 %v370_v15  ;;  %v644_v15 = vld [vmem:[%s5446_s7 + $0x20] sm:$0xff] }
 0x445   :  { %673 = vmatpush.msra.mxu1 %v644_v15 }
 0x4bf   :  { %v532_v23 = vpop.f32.mrf.mxu3 }
 0x4c0   :  { %2973 = vmatmul.msk.f32.vlgmr.msra.gmra.mxu0 %vm111_vm0, %v532_v23  ;;  %v642_v23 = vld [vmem:[%s5446_s7 + $0x10] sm:$0xff] }
 0x4c1   :  { %674 = vmatpush.msra.mxu1 %v642_v23  ;;  %v734_v23 = vld [vmem:[%s5448_s9 + $0xc0] sm:$0xff] }
 0x4c7   :  { %v535_v24 = vpop.f32.mrf.mxu3 }
 0x4c8   :  { %2974 = vmatmul.msk.f32.gmra.mxu0 %vm111_vm0, %v535_v24  ;;  %v643_v24 = vld [vmem:[%s5446_s7 + $0x18] sm:$0xff] }
 0x4c9   :  { %697 = vmatpush.msrb.mxu0 %v643_v24 }
 0x53d   :  { %v569_v25 = vpop.f32.mrf.mxu0 }
 0x53e   :  { %v570_v10 = vadd.f32 %v3350_v29, %v569_v25  ;;  %v641_v25 = vld [vmem:[%s5446_s7 + $0x8] sm:$0xff] }
 0x53f   :  { %698 = vmatpush.msrb.mxu0 %v641_v25  ;;  %v717_v25 = vld [vmem:[%s5448_s9 + $0x38] sm:$0xff] }
 0x540   :  { %v575_v38 = vadd.f32 %v570_v10, %v3629_v4 }
 0x542   :  { %v579_v8 = vsel %vm111_vm0, %v575_v38, 0.0 }
 0x543   :  { %580 = vadd.xlane.f32.xlu2 %v579_v8 }
 0x545   :  { %v572_v13 = vpop.f32.mrf.mxu0 }
 0x546   :  { %v573_v27 = vadd.f32 %v3350_v29, %v572_v13  ;;  %v640_v29 = vld [vmem:[%s5446_s7] sm:$0xff]  ;;  %v725_v13 = vld [vmem:[%s5448_s9 + $0x78] sm:$0xff] }
 0x547   :  { %675 = vmatpush.msra.mxu1 %v640_v29 }
 0x548   :  { %v576_v28 = vadd.f32 %v573_v27, %v3636_v5  ;;  %v741_v27 = vld [vmem:[%s5448_s9 + $0xf8] sm:$0xff] }
 0x549   :  { %746 = vmatpush.msrb.mxu1 %v725_v13  ;;  %769 = vmatpush.msra.mxu2 %v741_v27  ;;  %v3351_v27 = vld [vmem:[%s5444_s5] ss:$0 sm:$0xff] }
 0x54a   :  { %v582_v30 = vsel %vm111_vm0, %v576_v28, 0.0 }
 0x54b   :  { %583 = vadd.xlane.f32.xlu1 %v582_v30  ;;  %v740_v30 = vld [vmem:[%s5448_s9 + $0xf0] sm:$0xff] }
 0x54c   :  { %770 = vmatpush.msra.mxu2 %v740_v30  ;;  %v732_v30 = vld [vmem:[%s5448_s9 + $0xb0] sm:$0xff] }
 0x54e   :  { %771 = vmatpush.msra.mxu2 %v739_v35 }
 0x550   :  { %772 = vmatpush.msra.mxu2 %v738_v46 }
 0x5b6   :  { %v581_v4 = vpop.xlane.xlu2 %580 }
 0x5b7   :  { %v592_v49 = vmul.f32 %v4030_v47, %v581_v4 }
 0x5b9   :  { %v4033_v51 = vsub.f32 %v575_v38, %v592_v49 }
 0x5bb   :  { %v596_v5 = vmul.f32 %v4033_v51, %v4033_v51 }
 0x5bd   :  { %v598_v52 = vsel %vm111_vm0, %v596_v5, 0.0  ;;  %v721_v5 = vld [vmem:[%s5448_s9 + $0x58] sm:$0xff] }
 0x5be   :  { %599 = vadd.xlane.f32.xlu0 %v598_v52  ;;  %v584_v56 = vpop.xlane.xlu1 %583  ;;  %v737_v52 = vld [vmem:[%s5448_s9 + $0xd8] sm:$0xff] }
 0x5bf   :  { %v593_v59 = vmul.f32 %v4030_v47, %v584_v56  ;;  %773 = vmatpush.msra.mxu2 %v737_v52 }
 0x5c1   :  { %v4039_v62 = vsub.f32 %v576_v28, %v593_v59  ;;  %v724_v28 = vld [vmem:[%s5448_s9 + $0x70] sm:$0xff] }
 0x5c2   :  { %747 = vmatpush.msrb.mxu1 %v724_v28  ;;  %v720_v59 = vld [vmem:[%s5448_s9 + $0x50] sm:$0xff] }
 0x5c3   :  { %v597_v9 = vmul.f32 %v4039_v62, %v4039_v62  ;;  %v716_v28 = vld [vmem:[%s5448_s9 + $0x30] sm:$0xff] }
 0x5c4   :  { %748 = vmatpush.msrb.mxu1 %v723_v32 }
 0x5c5   :  { %v601_v11 = vsel %vm111_vm0, %v597_v9, 0.0  ;;  %v736_v9 = vld [vmem:[%s5448_s9 + $0xd0] sm:$0xff] }
 0x5c6   :  { %602 = vadd.xlane.f32.xlu2 %v601_v11  ;;  %749 = vmatpush.msrb.mxu1 %v722_v45  ;;  %v731_v45 = vld [vmem:[%s5448_s9 + $0xa8] sm:$0xff] }
 0x5c7   :  { %774 = vmatpush.msra.mxu2 %v736_v9  ;;  %v729_v9 = vld [vmem:[%s5448_s9 + $0x98] sm:$0xff] }
 0x5c8   :  { %750 = vmatpush.msrb.mxu1 %v721_v5  ;;  %v730_v5 = vld [vmem:[%s5448_s9 + $0xa0] sm:$0xff] }
 0x5c9   :  { %775 = vmatpush.msra.mxu2 %v735_v14 }
 0x5ca   :  { %751 = vmatpush.msrb.mxu1 %v720_v59  ;;  %v713_v59 = vld [vmem:[%s5448_s9 + $0x18] sm:$0xff] }
 0x5cb   :  { %776 = vmatpush.msra.mxu2 %v734_v23  ;;  %v728_v23 = vld [vmem:[%s5448_s9 + $0x90] sm:$0xff] }
 0x5cc   :  { %752 = vmatpush.msrb.mxu1 %v719_v12 }
 0x5ce   :  { %753 = vmatpush.msrb.mxu1 %v718_v22 }
 0x5d0   :  { %754 = vmatpush.msrb.mxu1 %v717_v25  ;;  %v726_v25 = vld [vmem:[%s5448_s9 + $0x80] sm:$0xff] }
 0x5d2   :  { %755 = vmatpush.msrb.mxu1 %v716_v28 }
 0x631   :  { %v600_v10 = vpop.xlane.xlu0 %599 }
 0x632   :  { %v604_v38 = vmul.f32 %v600_v10, %v4030_v47  ;;  %v733_v10 = vld [vmem:[%s5448_s9 + $0xb8] sm:$0xff] }
 0x633   :  { %777 = vmatpush.msra.mxu2 %v733_v10  ;;  %v648_v10 = vld [vmem:[%s5447_s8] sm:$0x3] }
 0x634   :  { %v606_v8 = vadd.f32 1e-05, %v604_v38 }
 0x635   :  { %778 = vmatpush.msra.mxu2 %v732_v30 }
 0x636   :  { %3389 = vrsqrt.f32 %v606_v8  ;;  %vm614_vm9 = vweird.f32 %v606_v8 }
 0x637   :  { %779 = vmatpush.msra.mxu2 %v731_v45 }
 0x639   :  { %v603_v36 = vpop.xlane.xlu2 %602  ;;  %780 = vmatpush.msra.mxu2 %v730_v5 }
 0x63a   :  { %v605_v39 = vmul.f32 %v603_v36, %v4030_v47  ;;  %v3352_v36 = vld [vmem:[%s5445_s6] ss:$0 sm:$0xff] }
 0x63b   :  { %781 = vmatpush.msra.mxu2 %v729_v9 }
 0x63c   :  { %v3390_v4 = vpop.eup %3389  ;;  %v607_v49 = vadd.f32 1e-05, %v605_v39  ;;  %v715_v39 = vld [vmem:[%s5448_s9 + $0x28] sm:$0xff] }
 0x63d   :  { %v609_v56 = vmul.f32 %v3390_v4, %v606_v8  ;;  %vm615_vm8 = vweird.f32 %v3390_v4  ;;  %756 = vmatpush.msrb.mxu1 %v715_v39  ;;  %782 = vmatpush.msra.mxu2 %v728_v23 }
 0x63e   :  { %3391 = vrsqrt.f32 %v607_v49  ;;  %vm616_vm10 = vmor %vm614_vm9, %vm615_vm8  ;;  %vm624_vm12 = vweird.f32 %v607_v49 }
 0x63f   :  { %v610_v11 = vmul.f32 %v3390_v4, %v609_v56 }
 0x641   :  { %v611_v15 = vmul.f32 0.5, %v610_v11 }
 0x643   :  { %v612_v24 = vsub.f32 1.5, %v611_v15 }
 0x644   :  { %v3392_v29 = vpop.eup %3391 }
 0x645   :  { %v613_v38 = vmul.f32 %v3390_v4, %v612_v24  ;;  %v619_v13 = vmul.f32 %v3392_v29, %v607_v49  ;;  %vm625_vm11 = vweird.f32 %v3392_v29  ;;  %v712_v49 = vld [vmem:[%s5448_s9 + $0x10] sm:$0xff]  ;;  %v727_v24 = vld [vmem:[%s5448_s9 + $0x88] sm:$0xff] }
 0x646   :  { %vm626_vm13 = vmor %vm624_vm12, %vm625_vm11  ;;  %783 = vmatpush.msra.mxu2 %v727_v24 }
 0x647   :  { %v620_v32 = vmul.f32 %v3392_v29, %v619_v13  ;;  %v617_v35 = vsel %vm616_vm10, %v3390_v4, %v613_v38  ;;  %v650_v38 = vperm.slane %v648_v10, 0  ;;  %v651_v13 = vperm.slane %v648_v10, 1 }
 0x648   :  { %v628_v8 = vmul.f32 %v617_v35, %v4033_v51  ;;  %v714_v51 = vld [vmem:[%s5448_s9 + $0x20] sm:$0xff]  ;;  %784 = vmatpush.msra.mxu2 %v726_v25 }
 0x649   :  { %v621_v46 = vmul.f32 0.5, %v620_v32  ;;  %757 = vmatpush.msrb.mxu1 %v714_v51 }
 0x64a   :  { %v633_v4 = vmul.f32 %v3351_v27, %v628_v8 }
 0x64b   :  { %v622_v52 = vsub.f32 1.5, %v621_v46  ;;  %758 = vmatpush.msrb.mxu1 %v713_v59 }
 0x64c   :  { %v638_v56 = vadd.f32 %v3352_v36, %v633_v4 }
 0x64d   :  { %v623_v11 = vmul.f32 %v3392_v29, %v622_v52  ;;  %759 = vmatpush.msrb.mxu1 %v712_v49  ;;  %v3353_v52 = vld [vmem:[%s5449_s10] ss:$0 sm:$0xff] }
 0x64e   :  { %2975 = vmatmul.msk.f32.vlgmr.msra.gmra.mxu1 %vm111_vm0, %v638_v56  ;;  %2977 = vmatmul.msk.f32.vlgmr.msrb.gmra.mxu0 %vm111_vm0, %v638_v56 }
 0x64f   :  { %v627_v12 = vsel %vm626_vm13, %v3392_v29, %v623_v11  ;;  %v710_v29 = vld [vmem:[%s5448_s9] sm:$0xff] }
 0x650   :  { %v629_v14 = vmul.f32 %v627_v12, %v4039_v62  ;;  %v711_v62 = vld [vmem:[%s5448_s9 + $0x8] sm:$0xff] }
 0x651   :  { %760 = vmatpush.msrb.mxu1 %v711_v62 }
 0x652   :  { %v634_v15 = vmul.f32 %v3351_v27, %v629_v14 }
 0x653   :  { %761 = vmatpush.msrb.mxu1 %v710_v29 }
 0x654   :  { %v639_v22 = vadd.f32 %v3352_v36, %v634_v15 }
 0x656   :  { %2976 = vmatmul.msk.f32.gmra.mxu1 %vm111_vm0, %v639_v22  ;;  %2978 = vmatmul.msk.f32.gmra.mxu0 %vm111_vm0, %v639_v22 }
 0x6cb   :  { %v677_v27 = vpop.f32.mrf.mxu1  ;;  %v700_v28 = vpop.f32.mrf.mxu0 }
 0x6cc   :  { %v678_v30 = vadd.f32 %v677_v27, %v650_v38  ;;  %v701_v32 = vadd.f32 %v700_v28, %v651_v13 }
 0x6ce   :  { %v706_v35 = vmax.f32 %v678_v30, 0.0  ;;  %v707_v8 = vmax.f32 %v701_v32, 0.0 }
 0x6d0   :  { %762 = vmatmul.f32.vlgmr.msrb.gmra.mxu1 %v706_v35  ;;  %785 = vmatmul.f32.vlgmr.msra.gmra.mxu2 %v707_v8  ;;  %v2982_v35 = vld [vmem:[%s5494_s20 + $0x38] sm:$0xff]  ;;  %v2981_v8 = vld [vmem:[%s5494_s20 + $0x30] sm:$0xff] }
 0x6d1   :  { %878 = vmatpush.msra.mxu3 %v2982_v35 }
 0x6d3   :  { %v680_v36 = vpop.f32.mrf.mxu1  ;;  %v703_v39 = vpop.f32.mrf.mxu0  ;;  %879 = vmatpush.msra.mxu3 %v2981_v8 }
 0x6d4   :  { %v681_v45 = vadd.f32 %v680_v36, %v650_v38  ;;  %v704_v46 = vadd.f32 %v703_v39, %v651_v13  ;;  %v2980_v36 = vld [vmem:[%s5494_s20 + $0x28] sm:$0xff]  ;;  %v2979_v39 = vld [vmem:[%s5494_s20 + $0x20] sm:$0xff] }
 0x6d5   :  { %880 = vmatpush.msra.mxu3 %v2980_v36 }
 0x6d6   :  { %v708_v4 = vmax.f32 %v681_v45, 0.0  ;;  %v709_v51 = vmax.f32 %v704_v46, 0.0 }
 0x6d7   :  { %881 = vmatpush.msra.mxu3 %v2979_v39 }
 0x6d8   :  { %765 = vmatmul.f32.gmra.mxu1 %v708_v4  ;;  %788 = vmatmul.f32.gmra.mxu2 %v709_v51 }
 0x6d9   :  { %1086 = vmatpush.msrb.mxu3 %v3831_v53 }
 0x6db   :  { %1087 = vmatpush.msrb.mxu3 %v3836_v55 }
 0x6dd   :  { %1088 = vmatpush.msrb.mxu3 %v3845_v57 }
 0x6df   :  { %1089 = vmatpush.msrb.mxu3 %v3852_v58 }
 0x6e1   :  { %1090 = vmatpush.msrb.mxu3 %v3861_v60 }
 0x6e3   :  { %1091 = vmatpush.msrb.mxu3 %v3868_v61 }
 0x6e5   :  { %1092 = vmatpush.msrb.mxu3 %v3877_v63 }
 0x6e7   :  { %1093 = vmatpush.msrb.mxu3 %v3884_v0  ;;  %v3354_v0 = vld [vmem:[%s5450_s11] ss:$0 sm:$0xff] }
 0x6e9   :  { %1094 = vmatpush.msrb.mxu3 %v3893_v2 }
 0x6eb   :  { %1095 = vmatpush.msrb.mxu3 %v3900_v3 }
 0x6ed   :  { %1096 = vmatpush.msrb.mxu3 %v3924_v16  ;;  %v3355_v16 = vld [vmem:[%s5451_s12] ss:$0 sm:$0xff] }
 0x6ef   :  { %1097 = vmatpush.msrb.mxu3 %v3930_v17 }
 0x6f1   :  { %1098 = vmatpush.msrb.mxu3 %v3936_v18 }
 0x6f3   :  { %1099 = vmatpush.msrb.mxu3 %v3941_v19 }
 0x6f5   :  { %1100 = vmatpush.msrb.mxu3 %v3948_v20  ;;  %v3356_v20 = vld [vmem:[%s5496_s30 + $0x1] ss:$0 sm:$0xff] }
 0x6f7   :  { %1101 = vmatpush.msrb.mxu3 %v3954_v21 }
 0x74d   :  { %v763_v5 = vpop.f32.mrf.mxu1 }
 0x74e   :  { %v764_v59 = vadd.f32 %v3353_v52, %v763_v5 }
 0x753   :  { %v786_v9 = vpop.f32.mrf.mxu2 }
 0x754   :  { %v787_v11 = vadd.f32 %v786_v9, %v764_v59 }
 0x755   :  { %v766_v14 = vpop.f32.mrf.mxu1 }
 0x756   :  { %v792_v12 = vadd.f32 %v787_v11, %v638_v56  ;;  %v767_v49 = vadd.f32 %v3353_v52, %v766_v14 }
 0x758   :  { %v796_v15 = vsel %vm111_vm0, %v792_v12, 0.0 }
 0x759   :  { %797 = vadd.xlane.f32.xlu1 %v796_v15 }
 0x75b   :  { %v789_v23 = vpop.f32.mrf.mxu2 }
 0x75c   :  { %v790_v62 = vadd.f32 %v789_v23, %v767_v49 }
 0x75e   :  { %v793_v24 = vadd.f32 %v790_v62, %v639_v22 }
 0x760   :  { %v799_v29 = vsel %vm111_vm0, %v793_v24, 0.0 }
 0x761   :  { %800 = vadd.xlane.f32.xlu0 %v799_v29 }
 0x7cc   :  { %v798_v25 = vpop.xlane.xlu1 %797 }
 0x7cd   :  { %v802_v10 = vmul.f32 %v798_v25, %v4030_v47 }
 0x7cf   :  { %v804_v38 = vsub.f32 %v792_v12, %v802_v10 }
 0x7d1   :  { %v806_v13 = vmul.f32 %v804_v38, %v804_v38 }
 0x7d3   :  { %v808_v27 = vsel %vm111_vm0, %v806_v13, 0.0 }
 0x7d4   :  { %809 = vadd.xlane.f32.xlu2 %v808_v27  ;;  %v801_v56 = vpop.xlane.xlu0 %800 }
 0x7d5   :  { %v803_v28 = vmul.f32 %v801_v56, %v4030_v47 }
 0x7d7   :  { %v4189_v30 = vsub.f32 %v793_v24, %v803_v28 }
 0x7d9   :  { %v807_v32 = vmul.f32 %v4189_v30, %v4189_v30 }
 0x7db   :  { %v811_v22 = vsel %vm111_vm0, %v807_v32, 0.0 }
 0x7dc   :  { %812 = vadd.xlane.f32.xlu1 %v811_v22 }
 0x847   :  { %v810_v45 = vpop.xlane.xlu2 %809 }
 0x848   :  { %v814_v46 = vmul.f32 %v810_v45, %v4030_v47 }
 0x84a   :  { %v816_v4 = vadd.f32 1e-05, %v814_v46 }
 0x84c   :  { %3393 = vrsqrt.f32 %v816_v4  ;;  %vm824_vm15 = vweird.f32 %v816_v4 }
 0x84f   :  { %v813_v51 = vpop.xlane.xlu1 %812 }
 0x850   :  { %v815_v5 = vmul.f32 %v813_v51, %v4030_v47 }
 0x852   :  { %v3394_v53 = vpop.eup %3393  ;;  %v817_v52 = vadd.f32 1e-05, %v815_v5 }
 0x853   :  { %v819_v55 = vmul.f32 %v3394_v53, %v816_v4  ;;  %vm825_vm14 = vweird.f32 %v3394_v53 }
 0x854   :  { %3395 = vrsqrt.f32 %v817_v52  ;;  %vm826_vm7 = vmor %vm824_vm15, %vm825_vm14  ;;  %vm834_vm9 = vweird.f32 %v817_v52 }
 0x855   :  { %v820_v57 = vmul.f32 %v3394_v53, %v819_v55 }
 0x857   :  { %v821_v58 = vmul.f32 0.5, %v820_v57 }
 0x859   :  { %v822_v60 = vsub.f32 1.5, %v821_v58 }
 0x85a   :  { %v3396_v61 = vpop.eup %3395 }
 0x85b   :  { %v823_v59 = vmul.f32 %v3394_v53, %v822_v60  ;;  %v829_v63 = vmul.f32 %v3396_v61, %v817_v52  ;;  %vm835_vm8 = vweird.f32 %v3396_v61 }
 0x85c   :  { %vm836_vm10 = vmor %vm834_vm9, %vm835_vm8 }
 0x85d   :  { %v827_v9 = vsel %vm826_vm7, %v3394_v53, %v823_v59  ;;  %v830_v2 = vmul.f32 %v3396_v61, %v829_v63 }
 0x85e   :  { %v838_v3 = vmul.f32 %v827_v9, %v804_v38 }
 0x85f   :  { %v831_v11 = vmul.f32 0.5, %v830_v2 }
 0x860   :  { %v843_v12 = vmul.f32 %v3354_v0, %v838_v3 }
 0x861   :  { %v832_v14 = vsub.f32 1.5, %v831_v11 }
 0x862   :  { %v4229_v17 = vadd.f32 %v3355_v16, %v843_v12 }
 0x863   :  { %v833_v15 = vmul.f32 %v3396_v61, %v832_v14 }
 0x864   :  { %2984 = vmatmul.msk.f32.vlgmr.msra.gmra.mxu3 %vm111_vm0, %v4229_v17 }
 0x865   :  { %v837_v18 = vsel %vm836_vm10, %v3396_v61, %v833_v15 }
 0x866   :  { %v839_v49 = vmul.f32 %v837_v18, %v4189_v30 }
 0x868   :  { %v844_v23 = vmul.f32 %v3354_v0, %v839_v49 }
 0x86a   :  { %v4235_v19 = vadd.f32 %v3355_v16, %v844_v23 }
 0x86c   :  { %2985 = vmatmul.msk.f32.gmra.mxu3 %vm111_vm0, %v4235_v19 }
 0x8e7   :  { %v883_v62 = vpop.f32.mrf.mxu3 }
 0x8e8   :  { %v4242_v24 = vadd.f32 %v3356_v20, %v883_v62 }
 0x8ea   :  { %891 = vrot.lane.b32.xlu0 %v4242_v24, %s5475_s21  ;;  %v1123_v56 = vmul.f32 %v4242_v24, %v3802_v31  ;;  %v1121_v32 = vmul.f32 %v4242_v24, %v3812_v40  ;;  %v1119_v8 = vmul.f32 %v4242_v24, %v3967_v33  ;;  %v1113_v45 = vmul.f32 %v4242_v24, %v3998_v1 }
 0x8ef   :  { %v886_v21 = vpop.f32.mrf.mxu3 }
 0x8f0   :  { %v4246_v29 = vadd.f32 %v3356_v20, %v886_v21 }
 0x8f2   :  { %893 = vrot.lane.b32.xlu2 %v4246_v29, %s5475_s21  ;;  %v1124_v27 = vmul.f32 %v4246_v29, %v3957_v26  ;;  %v1122_v30 = vmul.f32 %v4246_v29, %v3977_v44  ;;  %v1120_v35 = vmul.f32 %v4246_v29, %v3816_v41  ;;  %v1114_v39 = vmul.f32 %v4246_v29, %v4000_v6 }
 0x8f4   :  { %v3239_v28 = vpack.i.bf16 %v1123_v56, %v1124_v27  ;;  %v3244_v22 = vpack.i.bf16 %v1121_v32, %v1122_v30  ;;  %v3249_v36 = vpack.i.bf16 %v1119_v8, %v1120_v35  ;;  %v3264_v46 = vpack.i.bf16 %v1113_v45, %v1114_v39 }
 0x94c   :  { %v894_v10 = vpop.permute.xlu2 %893 }
 0x95c   :  { %v892_v25 = vpop.permute.xlu0 %891 }
 0x95d   :  { %897 = vxpose.xlu1.b32.start [1/2] (short) (narrow) %v892_v25, 32 }
 0x965   :  { %898 = vxpose.xlu1.b32.end [2/2] (short) (narrow) %v894_v10, 32 }
 0xa01   :  { %v4250_v38 = vpop.trf.xlu1 }
 0xa02   :  { %933 = vrot.lane.b32.xlu0 %v4250_v38, %s5473_s1 }
 0xa09   :  { %v4254_v13 = vpop.trf.xlu1 }
 0xa0a   :  { %959 = vrot.lane.b32.xlu1 %v4254_v13, %s5471_s22  ;;  %947 = vrot.lane.b32.xlu2 %v4254_v13, %s5506_s0 }
 0xa0b   :  { %935 = vrot.lane.b32.xlu0 %v4254_v13, %s5473_s1 }
 0xa11   :  { %v915_v4 = vpop.trf.xlu1 }
 0xa12   :  { %3240 = vrot.lane.b32.xlu1 %v3239_v28, %s5507_s3  ;;  %945 = vrot.lane.b32.xlu2 %v4250_v38, %s5506_s0 }
 0xa13   :  { %957 = vrot.lane.b32.xlu0 %v4250_v38, %s5471_s22 }
 0xa19   :  { %v916_v51 = vpop.trf.xlu1 }
 0xa1a   :  { %3245 = vrot.lane.b32.xlu1 %v3244_v22, %s5507_s3  ;;  %969 = vrot.lane.b32.xlu2 %v4250_v38, %s5507_s3 }
 0xa1b   :  { %971 = vrot.lane.b32.xlu0 %v4254_v13, %s5507_s3 }
 0xa22   :  { %3250 = vrot.lane.b32.xlu1 %v3249_v36, %s5507_s3  ;;  %981 = vrot.lane.b32.xlu2 %v4250_v38, %s5508_s28 }
 0xa23   :  { %995 = vrot.lane.b32.xlu0 %v4254_v13, %s5475_s21 }
 0xa2a   :  { %3265 = vrot.lane.b32.xlu1 %v3264_v46, %s5507_s3  ;;  %983 = vrot.lane.b32.xlu2 %v4254_v13, %s5508_s28 }
 0xa2b   :  { %1007 = vrot.lane.b32.xlu0 %v4254_v13, %s5509_s2 }
 0xa32   :  { %961 = vrot.lane.b32.xlu2 %v915_v4, %s5471_s22 }
 0xa33   :  { %937 = vrot.lane.b32.xlu0 %v915_v4, %s5473_s1 }
 0xa3a   :  { %985 = vrot.lane.b32.xlu2 %v915_v4, %s5508_s28 }
 0xa3b   :  { %949 = vrot.lane.b32.xlu0 %v915_v4, %s5506_s0 }
 0xa42   :  { %997 = vrot.lane.b32.xlu2 %v915_v4, %s5475_s21 }
 0xa43   :  { %973 = vrot.lane.b32.xlu0 %v915_v4, %s5507_s3 }
 0xa4a   :  { %951 = vrot.lane.b32.xlu2 %v916_v51, %s5506_s0 }
 0xa4b   :  { %1009 = vrot.lane.b32.xlu0 %v915_v4, %s5509_s2 }
 0xa52   :  { %963 = vrot.lane.b32.xlu2 %v916_v51, %s5471_s22 }
 0xa53   :  { %939 = vrot.lane.b32.xlu0 %v916_v51, %s5473_s1  ;;  %s5527_s1 = sld [smem:[#allocation21_spill]] }
 0xa5a   :  { %975 = vrot.lane.b32.xlu2 %v916_v51, %s5507_s3 }
 0xa5b   :  { %987 = vrot.lane.b32.xlu0 %v916_v51, %s5508_s28 }
 0xa62   :  { %999 = vrot.lane.b32.xlu2 %v916_v51, %s5475_s21 }
 0xa63   :  { %1011 = vrot.lane.b32.xlu0 %v916_v51, %s5509_s2 }
 0xa64   :  { %v948_v5 = vpop.permute.xlu2 %947 }
 0xa6a   :  { %993 = vrot.lane.b32.xlu2 %v4250_v38, %s5475_s21 }
 0xa6b   :  { %1005 = vrot.lane.b32.xlu0 %v4250_v38, %s5509_s2 }
 0xa6c   :  { %v946_v53 = vpop.permute.xlu2 %945 }
 0xa74   :  { %v934_v52 = vpop.permute.xlu0 %933  ;;  %v970_v55 = vpop.permute.xlu2 %969 }
 0xa75   :  { %v1017_v36 = vsel %vm269_vm1, %v4250_v38, %v934_v52 }
 0xa7c   :  { %v982_v58 = vpop.permute.xlu2 %981  ;;  %v960_v35 = vpop.permute.xlu1 %959 }
 0xa7d   :  { %v936_v57 = vpop.permute.xlu0 %935 }
 0xa7e   :  { %v1018_v10 = vsel %vm269_vm1, %v4254_v13, %v936_v57 }
 0xa7f   :  { %v1022_v30 = vsel %vm111_vm0, %v1018_v10, %v948_v5 }
 0xa80   :  { %v1026_v39 = vsel %vm278_vm2, %v1022_v30, %v960_v35  ;;  %v1126_v30 = vmul.f32 %v4246_v29, %v3760_v54  ;;  %v1116_v35 = vmul.f32 %v4246_v29, %v3983_v48 }
 0xa84   :  { %v984_v61 = vpop.permute.xlu2 %983 }
 0xa85   :  { %v958_v60 = vpop.permute.xlu0 %957 }
 0xa8c   :  { %v962_v63 = vpop.permute.xlu2 %961 }
 0xa8d   :  { %v972_v59 = vpop.permute.xlu0 %971 }
 0xa8e   :  { %v1030_v46 = vsel %vm283_vm3, %v1026_v39, %v972_v59  ;;  %v4344_v59 = vld [vmem:[%s5454_s15 + $0x18] sm:$0xff]  ;;  %v1118_v39 = vmul.f32 %v4246_v29, %v3818_v42 }
 0xa94   :  { %v986_v2 = vpop.permute.xlu2 %985 }
 0xa95   :  { %v996_v0 = vpop.permute.xlu0 %995 }
 0xa9c   :  { %v998_v16 = vpop.permute.xlu2 %997 }
 0xa9d   :  { %v1008_v9 = vpop.permute.xlu0 %1007 }
 0xaa4   :  { %v952_v12 = vpop.permute.xlu2 %951 }
 0xaa5   :  { %v938_v3 = vpop.permute.xlu0 %937 }
 0xaa6   :  { %v1019_v62 = vsel %vm269_vm1, %v915_v4, %v938_v3  ;;  %v1021_v4 = vsel %vm111_vm0, %v1017_v36, %v946_v53  ;;  %v1034_v3 = vsel %vm288_vm4, %v1030_v46, %v984_v61 }
 0xaac   :  { %v964_v15 = vpop.permute.xlu2 %963 }
 0xaad   :  { %v950_v11 = vpop.permute.xlu0 %949 }
 0xaae   :  { %v1023_v21 = vsel %vm111_vm0, %v1019_v62, %v950_v11 }
 0xaaf   :  { %v1027_v56 = vsel %vm278_vm2, %v1023_v21, %v962_v63  ;;  %v1025_v63 = vsel %vm278_vm2, %v1021_v4, %v958_v60  ;;  %v4352_v60 = vld [vmem:[%s5454_s15 + $0x10] sm:$0xff] }
 0xab0   :  { %v1029_v11 = vsel %vm283_vm3, %v1025_v63, %v970_v55 }
 0xab4   :  { %v976_v23 = vpop.permute.xlu2 %975 }
 0xab5   :  { %v974_v14 = vpop.permute.xlu0 %973 }
 0xab6   :  { %v1031_v32 = vsel %vm283_vm3, %v1027_v56, %v974_v14  ;;  %v1127_v56 = vmul.f32 %v4242_v24, %v3753_v37 }
 0xab7   :  { %v1035_v13 = vsel %vm288_vm4, %v1031_v32, %v986_v2  ;;  %v1038_v2 = vsel %vm293_vm5, %v1034_v3, %v996_v0  ;;  %v1125_v32 = vmul.f32 %v4242_v24, %v3777_v7 }
 0xabc   :  { %v1000_v22 = vpop.permute.xlu2 %999 }
 0xabd   :  { %v1010_v18 = vpop.permute.xlu0 %1009 }
 0xac4   :  { %v994_v0 = vpop.permute.xlu2 %993 }
 0xac5   :  { %v940_v49 = vpop.permute.xlu0 %939 }
 0xac6   :  { %v1020_v20 = vsel %vm269_vm1, %v916_v51, %v940_v49  ;;  %v1039_v51 = vsel %vm293_vm5, %v1035_v13, %v998_v16  ;;  %v1042_v16 = vsel %vm298_vm6, %v1038_v2, %v1008_v9  ;;  %v1033_v9 = vsel %vm288_vm4, %v1029_v11, %v982_v58  ;;  %v4367_v49 = vld [vmem:[%s5454_s15] sm:$0xff] }
 0xac7   :  { %v1024_v25 = vsel %vm111_vm0, %v1020_v20, %v952_v12  ;;  %v1043_v38 = vsel %vm298_vm6, %v1039_v51, %v1010_v18  ;;  %v4358_v12 = vld [vmem:[%s5454_s15 + $0x8] sm:$0xff]  ;;  %v1037_v55 = vsel %vm293_vm5, %v1033_v9, %v994_v0  ;;  %v4377_v20 = vld [vmem:[%s5457_s18] sm:$0xff]  ;;  %v1117_v13 = vmul.f32 %v4242_v24, %v3988_v50 }
 0xac8   :  { %v1028_v28 = vsel %vm278_vm2, %v1024_v25, %v964_v15  ;;  %v1047_v61 = vmul.f32 %v4352_v60, %v1043_v38  ;;  %v1046_v14 = vmul.f32 %v4358_v12, %v1042_v16  ;;  %v4383_v25 = vld [vmem:[%s5457_s18 + $0x8] sm:$0xff] }
 0xac9   :  { %v1032_v8 = vsel %vm283_vm3, %v1028_v28, %v976_v23 }
 0xacd   :  { %v988_v27 = vpop.permute.xlu0 %987 }
 0xace   :  { %v1036_v45 = vsel %vm288_vm4, %v1032_v8, %v988_v27  ;;  %v1128_v27 = vmul.f32 %v4246_v29, %v3751_v34  ;;  %v1115_v8 = vmul.f32 %v4242_v24, %v3820_v43 }
 0xacf   :  { %v1040_v5 = vsel %vm293_vm5, %v1036_v45, %v1000_v22  ;;  %v3234_v22 = vpack.i.bf16 %v1125_v32, %v1126_v30  ;;  %v3254_v45 = vpack.i.bf16 %v1117_v13, %v1118_v39 }
 0xad0   :  { %v3229_v28 = vpack.i.bf16 %v1127_v56, %v1128_v27  ;;  %v3259_v36 = vpack.i.bf16 %v1115_v8, %v1116_v35  ;;  %v2990_v35 = vld [vmem:[%s5505_s26 + $0x30] sm:$0xff]  ;;  %v2989_v8 = vld [vmem:[%s5505_s26 + $0x28] sm:$0xff] }
 0xad5   :  { %v1012_v57 = vpop.permute.xlu0 %1011 }
 0xad6   :  { %v1044_v52 = vsel %vm298_vm6, %v1040_v5, %v1012_v57 }
 0xad7   :  { %v1048_v53 = vmul.f32 %v4344_v59, %v1044_v52 }
 0xad9   :  { %1065 = vmatpush.msra.mxu0 %v1048_v53 }
 0xadb   :  { %1066 = vmatpush.msra.mxu0 %v1047_v61 }
 0xadd   :  { %v1006_v15 = vpop.permute.xlu0 %1005  ;;  %1067 = vmatpush.msra.mxu0 %v1046_v14 }
 0xade   :  { %v1041_v18 = vsel %vm298_vm6, %v1037_v55, %v1006_v15 }
 0xadf   :  { %v1045_v23 = vmul.f32 %v4367_v49, %v1041_v18 }
 0xae1   :  { %1068 = vmatpush.msra.mxu0 %v1045_v23 }
 0xae2   :  { %2986 = vmatmul.msk.f32.vlgmr.msra.gmra.mxu0 %vm111_vm0, %v4242_v24 }
 0xaea   :  { %2987 = vmatmul.msk.f32.gmra.mxu0 %vm111_vm0, %v4246_v29  ;;  %v3241_v29 = vpop.permute.xlu1 %3240 }
 0xaeb   :  { %v3242_v0 = vunpack.i.l.bf16 %v3241_v29  ;;  %v3243_v14 = vunpack.i.h.bf16 %v3241_v29 }
 0xaf2   :  { %v3246_v53 = vpop.permute.xlu1 %3245 }
 0xaf3   :  { %v3247_v9 = vunpack.i.l.bf16 %v3246_v53  ;;  %v3248_v15 = vunpack.i.h.bf16 %v3246_v53 }
 0xafa   :  { %v3251_v55 = vpop.permute.xlu1 %3250 }
 0xafb   :  { %v3252_v18 = vunpack.i.l.bf16 %v3251_v55 }
 0xb02   :  { %v3266_v56 = vpop.permute.xlu1 %3265 }
 0xb03   :  { %v3267_v30 = vunpack.i.l.bf16 %v3266_v56  ;;  %v3268_v32 = vunpack.i.h.bf16 %v3266_v56  ;;  %v2997_v56 = vld [vmem:[%s5446_s7 + $0x40] sm:$0xff] }
 0xb5f   :  { %v1070_v58 = vpop.f32.mrf.mxu0 }
 0xb60   :  { %v1071_v62 = vadd.f32 %v4377_v20, %v1070_v58  ;;  %v3253_v58 = vunpack.i.h.bf16 %v3251_v55 }
 0xb62   :  { %1076 = vmax.xlane.f32.xlu2 %v1071_v62 }
 0xb67   :  { %v1073_v21 = vpop.f32.mrf.mxu0 }
 0xb68   :  { %v1074_v10 = vadd.f32 %v4383_v25, %v1073_v21 }
 0xb6a   :  { %1078 = vmax.xlane.f32.xlu0 %v1074_v10 }
 0xb7a   :  { %3230 = vrot.lane.b32.xlu2 %v3229_v28, %s5507_s3 }
 0xb7e   :  { %3235 = vrot.lane.b32.xlu0 %v3234_v22, %s5507_s3  ;;  %v2991_v22 = vld [vmem:[%s5505_s26 + $0x38] sm:$0xff] }
 0xb7f   :  { %1244 = vmatpush.msra.mxu1 %v2991_v22 }
 0xb81   :  { %1245 = vmatpush.msra.mxu1 %v2990_v35  ;;  %v3041_v35 = vld [vmem:[%s5448_s9 + $0x1f8] sm:$0xff] }
 0xb82   :  { %3260 = vrot.lane.b32.xlu2 %v3259_v36, %s5507_s3  ;;  %1448 = vmatpush.msra.mxu3 %v3041_v35  ;;  %v3030_v35 = vld [vmem:[%s5448_s9 + $0x1a0] sm:$0xff] }
 0xb83   :  { %1246 = vmatpush.msra.mxu1 %v2989_v8  ;;  %v3040_v8 = vld [vmem:[%s5448_s9 + $0x1f0] sm:$0xff] }
 0xb84   :  { %1449 = vmatpush.msra.mxu3 %v3040_v8 }
 0xb86   :  { %3255 = vrot.lane.b32.xlu0 %v3254_v45, %s5507_s3 }
 0xbd5   :  { %v1077_v46 = vpop.xlane.xlu2 %1076 }
 0xbd6   :  { %v1080_v4 = vsub.f32 %v1071_v62, %v1077_v46 }
 0xbd8   :  { %v1082_v51 = vmul.f32 1.442695, %v1080_v4 }
 0xbda   :  { %3397 = vpow2.f32 %v1082_v51  ;;  %v2988_v51 = vld [vmem:[%s5505_s26 + $0x20] sm:$0xff] }
 0xbdb   :  { %1247 = vmatpush.msra.mxu1 %v2988_v51  ;;  %v3038_v51 = vld [vmem:[%s5448_s9 + $0x1e0] sm:$0xff] }
 0xbdd   :  { %v1079_v5 = vpop.xlane.xlu0 %1078  ;;  %v3231_v57 = vpop.permute.xlu2 %3230 }
 0xbde   :  { %v1081_v63 = vsub.f32 %v1074_v10, %v1079_v5  ;;  %v3232_v3 = vunpack.i.l.bf16 %v3231_v57  ;;  %v3233_v2 = vunpack.i.h.bf16 %v3231_v57 }
 0xbe0   :  { %v3398_v38 = vpop.eup %3397  ;;  %v1084_v52 = vmul.f32 1.442695, %v1081_v63  ;;  %1193 = vmatpush.msrb.mxu0 %v3232_v3  ;;  %v3357_v63 = vld [vmem:[%s5443_s4 + $0x1] ss:$0 sm:$0xff] }
 0xbe1   :  { %1102 = vmatmul.f32.vlgmr.msrb.gmra.mxu3 %v3398_v38 }
 0xbe2   :  { %3399 = vpow2.f32 %v1084_v52  ;;  %1194 = vmatpush.msrb.mxu0 %v3233_v2 }
 0xbe5   :  { %v3261_v21 = vpop.permute.xlu2 %3260 }
 0xbe6   :  { %v3262_v27 = vunpack.i.l.bf16 %v3261_v21  ;;  %v3263_v28 = vunpack.i.h.bf16 %v3261_v21  ;;  %v3002_v21 = vld [vmem:[%s5446_s7 + $0x68] sm:$0xff] }
 0xbe8   :  { %v3400_v24 = vpop.eup %3399 }
 0xbe9   :  { %1105 = vmatmul.f32.gmra.mxu3 %v3400_v24 }
 0xbf0   :  { %v3236_v16 = vpop.permute.xlu0 %3235 }
 0xbf1   :  { %v3237_v11 = vunpack.i.l.bf16 %v3236_v16  ;;  %v3238_v61 = vunpack.i.h.bf16 %v3236_v16 }
 0xbf3   :  { %1195 = vmatpush.msrb.mxu0 %v3237_v11 }
 0xbf5   :  { %1196 = vmatpush.msrb.mxu0 %v3238_v61 }
 0xbf7   :  { %1197 = vmatpush.msrb.mxu0 %v3242_v0 }
 0xbf8   :  { %v3256_v23 = vpop.permute.xlu0 %3255 }
 0xbf9   :  { %1198 = vmatpush.msrb.mxu0 %v3243_v14  ;;  %v3257_v62 = vunpack.i.l.bf16 %v3256_v23  ;;  %v3258_v10 = vunpack.i.h.bf16 %v3256_v23  ;;  %v3003_v23 = vld [vmem:[%s5446_s7 + $0x70] sm:$0xff] }
 0xbfa   :  { %1349 = vmatpush.msrb.mxu2 %v3003_v23  ;;  %v3017_v23 = vld [vmem:[%s5448_s9 + $0x138] sm:$0xff] }
 0xbfb   :  { %1199 = vmatpush.msrb.mxu0 %v3247_v9 }
 0xbfd   :  { %1200 = vmatpush.msrb.mxu0 %v3248_v15 }
 0xbff   :  { %1201 = vmatpush.msrb.mxu0 %v3252_v18 }
 0xc01   :  { %1202 = vmatpush.msrb.mxu0 %v3253_v58  ;;  %v3004_v58 = vld [vmem:[%s5446_s7 + $0x78] sm:$0xff] }
 0xc02   :  { %1372 = vmatpush.msrb.mxu1 %v3004_v58  ;;  %v3358_v58 = vld [vmem:[%s5444_s5 + $0x1] ss:$0 sm:$0xff] }
 0xc03   :  { %1203 = vmatpush.msrb.mxu0 %v3257_v62  ;;  %v3001_v62 = vld [vmem:[%s5446_s7 + $0x60] sm:$0xff] }
 0xc04   :  { %1350 = vmatpush.msrb.mxu2 %v3001_v62  ;;  %1373 = vmatpush.msrb.mxu1 %v3002_v21  ;;  %v3032_v62 = vld [vmem:[%s5448_s9 + $0x1b0] sm:$0xff] }
 0xc05   :  { %1204 = vmatpush.msrb.mxu0 %v3258_v10  ;;  %v2999_v10 = vld [vmem:[%s5446_s7 + $0x50] sm:$0xff] }
 0xc06   :  { %1351 = vmatpush.msrb.mxu2 %v2999_v10 }
 0xc07   :  { %1205 = vmatpush.msrb.mxu0 %v3262_v27  ;;  %v3000_v27 = vld [vmem:[%s5446_s7 + $0x58] sm:$0xff] }
 0xc08   :  { %1374 = vmatpush.msrb.mxu1 %v3000_v27  ;;  %1352 = vmatpush.msrb.mxu2 %v2997_v56  ;;  %v3016_v27 = vld [vmem:[%s5448_s9 + $0x130] sm:$0xff] }
 0xc09   :  { %1206 = vmatpush.msrb.mxu0 %v3263_v28  ;;  %v2998_v28 = vld [vmem:[%s5446_s7 + $0x48] sm:$0xff] }
 0xc0a   :  { %1375 = vmatpush.msrb.mxu1 %v2998_v28  ;;  %v3359_v28 = vld [vmem:[%s5445_s6 + $0x1] ss:$0 sm:$0xff] }
 0xc0b   :  { %1207 = vmatpush.msrb.mxu0 %v3267_v30 }
 0xc0d   :  { %1208 = vmatpush.msrb.mxu0 %v3268_v32 }
 0xc64   :  { %v1103_v36 = vpop.f32.mrf.mxu3 }
 0xc65   :  { %3401 = vrcp.f32 %v1103_v36  ;;  %v3025_v36 = vld [vmem:[%s5448_s9 + $0x178] sm:$0xff] }
 0xc66   :  { %1425 = vmatpush.msra.mxu2 %v3025_v36  ;;  %v3029_v36 = vld [vmem:[%s5448_s9 + $0x198] sm:$0xff] }
 0xc6b   :  { %v3402_v39 = vpop.eup %3401 }
 0xc6c   :  { %v1106_v13 = vpop.f32.mrf.mxu3  ;;  %v1111_v45 = vmul.f32 %v3402_v39, %v3398_v38  ;;  %v3024_v39 = vld [vmem:[%s5448_s9 + $0x170] sm:$0xff] }
 0xc6d   :  { %3403 = vrcp.f32 %v1106_v13  ;;  %v3039_v13 = vld [vmem:[%s5448_s9 + $0x1e8] sm:$0xff]  ;;  %1426 = vmatpush.msra.mxu2 %v3024_v39 }
 0xc6e   :  { %1209 = vmatmul.f32.vlgmr.msrb.gmra.mxu0 %v1111_v45  ;;  %1450 = vmatpush.msra.mxu3 %v3039_v13 }
 0xc70   :  { %1451 = vmatpush.msra.mxu3 %v3038_v51  ;;  %v3015_v51 = vld [vmem:[%s5448_s9 + $0x128] sm:$0xff] }
 0xc73   :  { %v3404_v46 = vpop.eup %3403 }
 0xc74   :  { %v1112_v4 = vmul.f32 %v3404_v46, %v3400_v24  ;;  %v3023_v46 = vld [vmem:[%s5448_s9 + $0x168] sm:$0xff] }
 0xc75   :  { %1427 = vmatpush.msra.mxu2 %v3023_v46 }
 0xc76   :  { %1212 = vmatmul.f32.gmra.mxu0 %v1112_v4 }
 0xceb   :  { %v1210_v5 = vpop.f32.mrf.mxu0 }
 0xcec   :  { %2993 = vmatmul.msk.f32.vlgmr.msra.gmra.mxu1 %vm111_vm0, %v1210_v5  ;;  %v3022_v5 = vld [vmem:[%s5448_s9 + $0x160] sm:$0xff] }
 0xced   :  { %1428 = vmatpush.msra.mxu2 %v3022_v5  ;;  %v3028_v5 = vld [vmem:[%s5448_s9 + $0x190] sm:$0xff] }
 0xcf3   :  { %v1213_v57 = vpop.f32.mrf.mxu0 }
 0xcf4   :  { %2994 = vmatmul.msk.f32.gmra.mxu1 %vm111_vm0, %v1213_v57 }
 0xd69   :  { %v1249_v3 = vpop.f32.mrf.mxu1 }
 0xd6a   :  { %v1250_v38 = vadd.f32 %v3357_v63, %v1249_v3  ;;  %v3037_v3 = vld [vmem:[%s5448_s9 + $0x1d8] sm:$0xff] }
 0xd6b   :  { %1452 = vmatpush.msra.mxu3 %v3037_v3  ;;  %v3026_v3 = vld [vmem:[%s5448_s9 + $0x180] sm:$0xff] }
 0xd6c   :  { %v1255_v52 = vadd.f32 %v1250_v38, %v4229_v17 }
 0xd6e   :  { %v1261_v2 = vsel %vm111_vm0, %v1255_v52, 0.0 }
 0xd6f   :  { %1262 = vadd.xlane.f32.xlu0 %v1261_v2  ;;  %v3036_v2 = vld [vmem:[%s5448_s9 + $0x1d0] sm:$0xff] }
 0xd70   :  { %1453 = vmatpush.msra.mxu3 %v3036_v2  ;;  %v3010_v2 = vld [vmem:[%s5448_s9 + $0x100] sm:$0xff] }
 0xd71   :  { %v1252_v29 = vpop.f32.mrf.mxu1 }
 0xd72   :  { %v1253_v24 = vadd.f32 %v3357_v63, %v1252_v29 }
 0xd74   :  { %v1256_v53 = vadd.f32 %v1253_v24, %v4235_v19  ;;  %v3020_v24 = vld [vmem:[%s5448_s9 + $0x150] sm:$0xff] }
 0xd76   :  { %v1264_v16 = vsel %vm111_vm0, %v1256_v53, 0.0 }
 0xd77   :  { %1265 = vadd.xlane.f32.xlu2 %v1264_v16 }
 0xde2   :  { %v1263_v11 = vpop.xlane.xlu0 %1262 }
 0xde3   :  { %v1267_v61 = vmul.f32 %v1263_v11, %v4030_v47  ;;  %v3019_v11 = vld [vmem:[%s5448_s9 + $0x148] sm:$0xff] }
 0xde5   :  { %v4428_v0 = vsub.f32 %v1255_v52, %v1267_v61  ;;  %v3021_v52 = vld [vmem:[%s5448_s9 + $0x158] sm:$0xff]  ;;  %v3034_v61 = vld [vmem:[%s5448_s9 + $0x1c0] sm:$0xff] }
 0xde6   :  { %1429 = vmatpush.msra.mxu2 %v3021_v52  ;;  %v3011_v52 = vld [vmem:[%s5448_s9 + $0x108] sm:$0xff] }
 0xde7   :  { %v1271_v14 = vmul.f32 %v4428_v0, %v4428_v0 }
 0xde8   :  { %1430 = vmatpush.msra.mxu2 %v3020_v24 }
 0xde9   :  { %v1273_v17 = vsel %vm111_vm0, %v1271_v14, 0.0 }
 0xdea   :  { %1274 = vadd.xlane.f32.xlu1 %v1273_v17  ;;  %v1266_v9 = vpop.xlane.xlu2 %1265  ;;  %v3018_v17 = vld [vmem:[%s5448_s9 + $0x140] sm:$0xff]  ;;  %1431 = vmatpush.msra.mxu2 %v3019_v11 }
 0xdeb   :  { %v1268_v55 = vmul.f32 %v1266_v9, %v4030_v47 }
 0xdec   :  { %1432 = vmatpush.msra.mxu2 %v3018_v17 }
 0xded   :  { %v4434_v15 = vsub.f32 %v1256_v53, %v1268_v55  ;;  %v3035_v53 = vld [vmem:[%s5448_s9 + $0x1c8] sm:$0xff]  ;;  %v3033_v55 = vld [vmem:[%s5448_s9 + $0x1b8] sm:$0xff] }
 0xdee   :  { %1454 = vmatpush.msra.mxu3 %v3035_v53  ;;  %1433 = vmatpush.msra.mxu2 %v3017_v23 }
 0xdef   :  { %v1272_v19 = vmul.f32 %v4434_v15, %v4434_v15 }
 0xdf0   :  { %1455 = vmatpush.msra.mxu3 %v3034_v61  ;;  %1434 = vmatpush.msra.mxu2 %v3016_v27 }
 0xdf1   :  { %v1276_v18 = vsel %vm111_vm0, %v1272_v19, 0.0 }
 0xdf2   :  { %1277 = vadd.xlane.f32.xlu0 %v1276_v18  ;;  %1456 = vmatpush.msra.mxu3 %v3033_v55 }
 0xdf3   :  { %1435 = vmatpush.msra.mxu2 %v3015_v51 }
 0xdf4   :  { %1457 = vmatpush.msra.mxu3 %v3032_v62 }
 0xe5d   :  { %v1275_v30 = vpop.xlane.xlu1 %1274 }
 0xe5e   :  { %v1279_v32 = vmul.f32 %v1275_v30, %v4030_v47  ;;  %v3031_v30 = vld [vmem:[%s5448_s9 + $0x1a8] sm:$0xff] }
 0xe5f   :  { %1458 = vmatpush.msra.mxu3 %v3031_v30 }
 0xe60   :  { %v1281_v22 = vadd.f32 1e-05, %v1279_v32 }
 0xe61   :  { %1459 = vmatpush.msra.mxu3 %v3030_v35 }
 0xe62   :  { %3405 = vrsqrt.f32 %v1281_v22  ;;  %vm1289_vm12 = vweird.f32 %v1281_v22 }
 0xe63   :  { %1460 = vmatpush.msra.mxu3 %v3029_v36 }
 0xe65   :  { %v1278_v45 = vpop.xlane.xlu0 %1277  ;;  %1461 = vmatpush.msra.mxu3 %v3028_v5 }
 0xe66   :  { %v1280_v4 = vmul.f32 %v1278_v45, %v4030_v47 }
 0xe68   :  { %v3406_v57 = vpop.eup %3405  ;;  %v1282_v63 = vadd.f32 1e-05, %v1280_v4 }
 0xe69   :  { %v1284_v38 = vmul.f32 %v3406_v57, %v1281_v22  ;;  %vm1290_vm11 = vweird.f32 %v3406_v57 }
 0xe6a   :  { %3407 = vrsqrt.f32 %v1282_v63  ;;  %vm1291_vm13 = vmor %vm1289_vm12, %vm1290_vm11  ;;  %vm1299_vm15 = vweird.f32 %v1282_v63 }
 0xe6b   :  { %v1285_v29 = vmul.f32 %v3406_v57, %v1284_v38  ;;  %v3012_v38 = vld [vmem:[%s5448_s9 + $0x110] sm:$0xff] }
 0xe6d   :  { %v1286_v16 = vmul.f32 0.5, %v1285_v29  ;;  %v3005_v29 = vld [vmem:[%s5447_s8 + $0x2] sm:$0x3] }
 0xe6e   :  { %v1328_v24 = vperm.slane %v3005_v29, 1  ;;  %v1327_v61 = vperm.slane %v3005_v29, 0  ;;  %v3045_v29 = vld [vmem:[%s5494_s20 + $0x40] sm:$0xff] }
 0xe6f   :  { %v1287_v14 = vsub.f32 1.5, %v1286_v16 }
 0xe70   :  { %v3408_v9 = vpop.eup %3407 }
 0xe71   :  { %v1288_v19 = vmul.f32 %v3406_v57, %v1287_v14  ;;  %v1294_v18 = vmul.f32 %v3408_v9, %v1282_v63  ;;  %vm1300_vm14 = vweird.f32 %v3408_v9  ;;  %v3013_v63 = vld [vmem:[%s5448_s9 + $0x118] sm:$0xff] }
 0xe72   :  { %vm1301_vm7 = vmor %vm1299_vm15, %vm1300_vm14 }
 0xe73   :  { %v1292_v21 = vsel %vm1291_vm13, %v3406_v57, %v1288_v19  ;;  %v1295_v10 = vmul.f32 %v3408_v9, %v1294_v18  ;;  %v3027_v57 = vld [vmem:[%s5448_s9 + $0x188] sm:$0xff] }
 0xe74   :  { %v1303_v56 = vmul.f32 %v1292_v21, %v4428_v0  ;;  %1462 = vmatpush.msra.mxu3 %v3027_v57  ;;  %v3360_v21 = vld [vmem:[%s5449_s10 + $0x1] ss:$0 sm:$0xff] }
 0xe75   :  { %v1296_v32 = vmul.f32 0.5, %v1295_v10 }
 0xe76   :  { %v1308_v22 = vmul.f32 %v3358_v58, %v1303_v56  ;;  %1463 = vmatpush.msra.mxu3 %v3026_v3 }
 0xe77   :  { %v1297_v8 = vsub.f32 1.5, %v1296_v32 }
 0xe78   :  { %v1313_v0 = vadd.f32 %v3359_v28, %v1308_v22 }
 0xe79   :  { %v1298_v39 = vmul.f32 %v3408_v9, %v1297_v8 }
 0xe7a   :  { %3006 = vmatmul.msk.f32.vlgmr.msrb.gmra.mxu2 %vm111_vm0, %v1313_v0  ;;  %3008 = vmatmul.msk.f32.vlgmr.msrb.gmra.mxu1 %vm111_vm0, %v1313_v0 }
 0xe7b   :  { %v1302_v13 = vsel %vm1301_vm7, %v3408_v9, %v1298_v39 }
 0xe7c   :  { %v1304_v45 = vmul.f32 %v1302_v13, %v4434_v15  ;;  %v3014_v15 = vld [vmem:[%s5448_s9 + $0x120] sm:$0xff] }
 0xe7d   :  { %1436 = vmatpush.msra.mxu2 %v3014_v15 }
 0xe7e   :  { %v1309_v46 = vmul.f32 %v3358_v58, %v1304_v45 }
 0xe7f   :  { %1437 = vmatpush.msra.mxu2 %v3013_v63 }
 0xe80   :  { %v1314_v4 = vadd.f32 %v3359_v28, %v1309_v46 }
 0xe81   :  { %1438 = vmatpush.msra.mxu2 %v3012_v38  ;;  %v3048_v38 = vld [vmem:[%s5494_s20 + $0x58] sm:$0xff] }
 0xe82   :  { %3007 = vmatmul.msk.f32.gmra.mxu2 %vm111_vm0, %v1314_v4  ;;  %3009 = vmatmul.msk.f32.gmra.mxu1 %vm111_vm0, %v1314_v4 }
 0xe83   :  { %1439 = vmatpush.msra.mxu2 %v3011_v52  ;;  %1559 = vmatpush.msra.mxu0 %v3048_v38  ;;  %v3047_v52 = vld [vmem:[%s5494_s20 + $0x50] sm:$0xff]  ;;  %v4701_v38 = vld [vmem:[%s5456_s17 + $0x8] sm:$0xff] }
 0xe84   :  { %5510 = vst [vmem:[#allocation13_spill] sm:$0xff] %v4701_v38 }
 0xe85   :  { %1440 = vmatpush.msra.mxu2 %v3010_v2  ;;  %1560 = vmatpush.msra.mxu0 %v3047_v52  ;;  %v3046_v2 = vld [vmem:[%s5494_s20 + $0x48] sm:$0xff] }
 0xe87   :  { %1561 = vmatpush.msra.mxu0 %v3046_v2  ;;  %v4709_v2 = vld [vmem:[%s5456_s17] sm:$0xff] }
 0xe88   :  { %5511 = vst [vmem:[#allocation14_spill] sm:$0xff] %v4709_v2 }
 0xe89   :  { %1562 = vmatpush.msra.mxu0 %v3045_v29 }
 0xef7   :  { %v1377_v53 = vpop.f32.mrf.mxu1 }
 0xef8   :  { %v1378_v16 = vadd.f32 %v1377_v53, %v1328_v24  ;;  %v4614_v53 = vld [vmem:[%s5456_s17 + $0x70] sm:$0xff] }
 0xefa   :  { %v1384_v11 = vmax.f32 %v1378_v16, 0.0 }
 0xefc   :  { %1464 = vmatmul.f32.vlgmr.msra.gmra.mxu3 %v1384_v11 }
 0xefd   :  { %v1354_v14 = vpop.f32.mrf.mxu2 }
 0xefe   :  { %v1355_v17 = vadd.f32 %v1354_v14, %v1327_v61 }
 0xeff   :  { %v1380_v9 = vpop.f32.mrf.mxu1 }
 0xf00   :  { %v1383_v55 = vmax.f32 %v1355_v17, 0.0  ;;  %v1381_v19 = vadd.f32 %v1380_v9, %v1328_v24  ;;  %v4608_v24 = vld [vmem:[%s5456_s17 + $0x78] sm:$0xff]  ;;  %v4627_v17 = vld [vmem:[%s5456_s17 + $0x60] sm:$0xff] }
 0xf01   :  { %1767 = vmatpush.msrb.mxu0 %v4608_v24  ;;  %v4633_v9 = vld [vmem:[%s5456_s17 + $0x58] sm:$0xff] }
 0xf02   :  { %v1386_v18 = vmax.f32 %v1381_v19, 0.0  ;;  %1441 = vmatmul.f32.vlgmr.msra.gmra.mxu2 %v1383_v55  ;;  %v4639_v55 = vld [vmem:[%s5456_s17 + $0x50] sm:$0xff] }
 0xf03   :  { %1768 = vmatpush.msrb.mxu0 %v4614_v53 }
 0xf04   :  { %1467 = vmatmul.f32.gmra.mxu3 %v1386_v18 }
 0xf05   :  { %v1357_v23 = vpop.f32.mrf.mxu2 }
 0xf06   :  { %v1358_v58 = vadd.f32 %v1357_v23, %v1327_v61  ;;  %v4621_v61 = vld [vmem:[%s5456_s17 + $0x68] sm:$0xff] }
 0xf07   :  { %1769 = vmatpush.msrb.mxu0 %v4621_v61  ;;  %v4646_v23 = vld [vmem:[%s5456_s17 + $0x48] sm:$0xff] }
 0xf08   :  { %v1385_v62 = vmax.f32 %v1358_v58, 0.0 }
 0xf09   :  { %1770 = vmatpush.msrb.mxu0 %v4627_v17 }
 0xf0a   :  { %1444 = vmatmul.f32.gmra.mxu2 %v1385_v62 }
 0xf0b   :  { %1771 = vmatpush.msrb.mxu0 %v4633_v9 }
 0xf0d   :  { %1772 = vmatpush.msrb.mxu0 %v4639_v55 }
 0xf0f   :  { %1773 = vmatpush.msrb.mxu0 %v4646_v23 }
 0xf7f   :  { %v1465_v10 = vpop.f32.mrf.mxu3 }
 0xf85   :  { %v1442_v27 = vpop.f32.mrf.mxu2 }
 0xf86   :  { %v1443_v56 = vadd.f32 %v3360_v21, %v1442_v27  ;;  %v4658_v27 = vld [vmem:[%s5456_s17 + $0x38] sm:$0xff] }
 0xf87   :  { %v1468_v8 = vpop.f32.mrf.mxu3 }
 0xf88   :  { %v1466_v28 = vadd.f32 %v1465_v10, %v1443_v56 }
 0xf8a   :  { %v1471_v30 = vadd.f32 %v1466_v28, %v1313_v0  ;;  %v4664_v28 = vld [vmem:[%s5456_s17 + $0x30] sm:$0xff] }
 0xf8c   :  { %v1477_v32 = vsel %vm111_vm0, %v1471_v30, 0.0 }
 0xf8d   :  { %1478 = vadd.xlane.f32.xlu2 %v1477_v32  ;;  %v1445_v22 = vpop.f32.mrf.mxu2  ;;  %v4670_v32 = vld [vmem:[%s5456_s17 + $0x28] sm:$0xff] }
 0xf8e   :  { %v1446_v35 = vadd.f32 %v3360_v21, %v1445_v22  ;;  %v4652_v21 = vld [vmem:[%s5456_s17 + $0x40] sm:$0xff] }
 0xf8f   :  { %1774 = vmatpush.msrb.mxu0 %v4652_v21 }
 0xf90   :  { %v1469_v36 = vadd.f32 %v1468_v8, %v1446_v35  ;;  %v4676_v8 = vld [vmem:[%s5456_s17 + $0x20] sm:$0xff] }
 0xf91   :  { %1775 = vmatpush.msrb.mxu0 %v4658_v27 }
 0xf92   :  { %v1472_v39 = vadd.f32 %v1469_v36, %v1314_v4 }
 0xf93   :  { %1776 = vmatpush.msrb.mxu0 %v4664_v28 }
 0xf94   :  { %v1480_v13 = vsel %vm111_vm0, %v1472_v39, 0.0 }
 0xf95   :  { %1481 = vadd.xlane.f32.xlu1 %v1480_v13  ;;  %1777 = vmatpush.msrb.mxu0 %v4670_v32  ;;  %v3361_v13 = vld [vmem:[%s5450_s11 + $0x1] ss:$0 sm:$0xff] }
 0xf97   :  { %1778 = vmatpush.msrb.mxu0 %v4676_v8 }
0x1000   :  { %v1479_v45 = vpop.xlane.xlu2 %1478 }
0x1001   :  { %v1483_v46 = vmul.f32 %v1479_v45, %v4030_v47  ;;  %v4685_v45 = vld [vmem:[%s5456_s17 + $0x18] sm:$0xff] }
0x1002   :  { %1779 = vmatpush.msrb.mxu0 %v4685_v45 }
0x1003   :  { %v4582_v51 = vsub.f32 %v1471_v30, %v1483_v46 }
0x1005   :  { %v1487_v5 = vmul.f32 %v4582_v51, %v4582_v51 }
0x1007   :  { %v1489_v0 = vsel %vm111_vm0, %v1487_v5, 0.0 }
0x1008   :  { %1490 = vadd.xlane.f32.xlu0 %v1489_v0  ;;  %v1482_v15 = vpop.xlane.xlu1 %1481 }
0x1009   :  { %v1484_v57 = vmul.f32 %v1482_v15, %v4030_v47  ;;  %v3362_v15 = vld [vmem:[%s5451_s12 + $0x1] ss:$0 sm:$0xff] }
0x100b   :  { %v4588_v63 = vsub.f32 %v1472_v39, %v1484_v57  ;;  %v4695_v57 = vld [vmem:[%s5456_s17 + $0x10] sm:$0xff] }
0x100c   :  { %1780 = vmatpush.msrb.mxu0 %v4695_v57 }
0x100d   :  { %v1488_v4 = vmul.f32 %v4588_v63, %v4588_v63 }
0x100e   :  { %1781 = vmatpush.msrb.mxu0 %v4701_v38 }
0x100f   :  { %v1492_v3 = vsel %vm111_vm0, %v1488_v4, 0.0 }
0x1010   :  { %1493 = vadd.xlane.f32.xlu2 %v1492_v3  ;;  %1782 = vmatpush.msrb.mxu0 %v4709_v2 }
0x107b   :  { %v1491_v16 = vpop.xlane.xlu0 %1490 }
0x107c   :  { %v1495_v11 = vmul.f32 %v1491_v16, %v4030_v47 }
0x107e   :  { %v1497_v14 = vadd.f32 1e-05, %v1495_v11 }
0x1080   :  { %3409 = vrsqrt.f32 %v1497_v14  ;;  %vm1505_vm9 = vweird.f32 %v1497_v14 }
0x1083   :  { %v1494_v19 = vpop.xlane.xlu2 %1493 }
0x1084   :  { %v1496_v18 = vmul.f32 %v1494_v19, %v4030_v47 }
0x1086   :  { %v3410_v58 = vpop.eup %3409  ;;  %v1498_v62 = vadd.f32 1e-05, %v1496_v18  ;;  %v3363_v18 = vld [vmem:[%s5496_s30 + $0x2] ss:$0 sm:$0xff] }
0x1087   :  { %v1500_v10 = vmul.f32 %v3410_v58, %v1497_v14  ;;  %vm1506_vm8 = vweird.f32 %v3410_v58 }
0x1088   :  { %3411 = vrsqrt.f32 %v1498_v62  ;;  %vm1507_vm10 = vmor %vm1505_vm9, %vm1506_vm8  ;;  %vm1515_vm12 = vweird.f32 %v1498_v62 }
0x1089   :  { %v1501_v56 = vmul.f32 %v3410_v58, %v1500_v10 }
0x108b   :  { %v1502_v30 = vmul.f32 0.5, %v1501_v56 }
0x108d   :  { %v1503_v22 = vsub.f32 1.5, %v1502_v30 }
0x108e   :  { %v3412_v35 = vpop.eup %3411 }
0x108f   :  { %v1504_v36 = vmul.f32 %v3410_v58, %v1503_v22  ;;  %v1510_v39 = vmul.f32 %v3412_v35, %v1498_v62  ;;  %vm1516_vm11 = vweird.f32 %v3412_v35 }
0x1090   :  { %vm1517_vm13 = vmor %vm1515_vm12, %vm1516_vm11 }
0x1091   :  { %v1508_v46 = vsel %vm1507_vm10, %v3410_v58, %v1504_v36  ;;  %v1511_v5 = vmul.f32 %v3412_v35, %v1510_v39 }
0x1092   :  { %v1519_v0 = vmul.f32 %v1508_v46, %v4582_v51 }
0x1093   :  { %v1512_v4 = vmul.f32 0.5, %v1511_v5 }
0x1094   :  { %v1524_v3 = vmul.f32 %v3361_v13, %v1519_v0 }
0x1095   :  { %v1513_v51 = vsub.f32 1.5, %v1512_v4 }
0x1096   :  { %v4704_v52 = vadd.f32 %v3362_v15, %v1524_v3 }
0x1097   :  { %v1514_v29 = vmul.f32 %v3412_v35, %v1513_v51 }
0x1098   :  { %3050 = vmatmul.msk.f32.vlgmr.msra.gmra.mxu0 %vm111_vm0, %v4704_v52 }
0x1099   :  { %v1518_v16 = vsel %vm1517_vm13, %v3412_v35, %v1514_v29 }
0x109a   :  { %v1520_v11 = vmul.f32 %v1518_v16, %v4588_v63 }
0x109c   :  { %v1525_v14 = vmul.f32 %v3361_v13, %v1520_v11 }
0x109e   :  { %v4715_v19 = vadd.f32 %v3362_v15, %v1525_v14 }
0x10a0   :  { %3051 = vmatmul.msk.f32.gmra.mxu0 %vm111_vm0, %v4715_v19 }
0x1115   :  { %v1564_v58 = vpop.f32.mrf.mxu0 }
0x1116   :  { %v4722_v10 = vadd.f32 %v3363_v18, %v1564_v58 }
0x1118   :  { %1572 = vrot.lane.b32.xlu1 %v4722_v10, %s5512_s25  ;;  %v1806_v46 = vmul.f32 %v4722_v10, %v3777_v7  ;;  %v1802_v15 = vmul.f32 %v4722_v10, %v3812_v40  ;;  %v1800_v51 = vmul.f32 %v4722_v10, %v3967_v33  ;;  %v1794_v11 = vmul.f32 %v4722_v10, %v3998_v1 }
0x111d   :  { %v1567_v62 = vpop.f32.mrf.mxu0 }
0x111e   :  { %v4726_v56 = vadd.f32 %v3363_v18, %v1567_v62 }
0x1120   :  { %1574 = vrot.lane.b32.xlu0 %v4726_v56, %s5512_s25  ;;  %v1807_v13 = vmul.f32 %v4726_v56, %v3760_v54  ;;  %v1803_v0 = vmul.f32 %v4726_v56, %v3977_v44  ;;  %v1801_v3 = vmul.f32 %v4726_v56, %v3816_v41  ;;  %v1795_v16 = vmul.f32 %v4726_v56, %v4000_v6 }
0x1122   :  { %v3274_v5 = vpack.i.bf16 %v1806_v46, %v1807_v13  ;;  %v3284_v4 = vpack.i.bf16 %v1802_v15, %v1803_v0  ;;  %v3289_v29 = vpack.i.bf16 %v1800_v51, %v1801_v3  ;;  %v3304_v14 = vpack.i.bf16 %v1794_v11, %v1795_v16 }
0x118a   :  { %v1573_v63 = vpop.permute.xlu1 %1572 }
0x118b   :  { %1578 = vxpose.xlu2.b32.start [1/2] (short) (narrow) %v1573_v63, 32 }
0x1192   :  { %v1575_v30 = vpop.permute.xlu0 %1574 }
0x1193   :  { %1579 = vxpose.xlu2.b32.end [2/2] (short) (narrow) %v1575_v30, 32 }
0x1224   :  { %v4730_v22 = vpop.trf.xlu2 }
0x122c   :  { %v4732_v35 = vpop.trf.xlu2 }
0x122d   :  { %1616 = vrot.lane.b32.xlu0 %v4732_v35, %s5513_s16 }
0x1234   :  { %v1596_v36 = vpop.trf.xlu2 }
0x1235   :  { %1642 = vrot.lane.b32.xlu1 %v1596_v36, %s5514_s23  ;;  %1618 = vrot.lane.b32.xlu0 %v1596_v36, %s5513_s16 }
0x123c   :  { %v1597_v39 = vpop.trf.xlu2 }
0x123d   :  { %1630 = vrot.lane.b32.xlu0 %v1596_v36, %s5506_s0  ;;  %1668 = vrot.lane.b32.xlu2 %v1597_v39, %s5508_s28 }
0x123e   :  { %1632 = vrot.lane.b32.xlu1 %v1597_v39, %s5506_s0 }
0x1245   :  { %3275 = vrot.lane.b32.xlu2 %v3274_v5, %s5507_s3  ;;  %1620 = vrot.lane.b32.xlu0 %v1597_v39, %s5513_s16 }
0x1246   :  { %1644 = vrot.lane.b32.xlu1 %v1597_v39, %s5514_s23 }
0x124d   :  { %3285 = vrot.lane.b32.xlu2 %v3284_v4, %s5507_s3  ;;  %1628 = vrot.lane.b32.xlu0 %v4732_v35, %s5506_s0 }
0x124e   :  { %1656 = vrot.lane.b32.xlu1 %v1597_v39, %s5507_s3 }
0x1255   :  { %3290 = vrot.lane.b32.xlu2 %v3289_v29, %s5507_s3  ;;  %1640 = vrot.lane.b32.xlu0 %v4732_v35, %s5514_s23 }
0x1256   :  { %1654 = vrot.lane.b32.xlu1 %v1596_v36, %s5507_s3 }
0x125d   :  { %3305 = vrot.lane.b32.xlu2 %v3304_v14, %s5507_s3  ;;  %1652 = vrot.lane.b32.xlu0 %v4732_v35, %s5507_s3 }
0x125e   :  { %1614 = vrot.lane.b32.xlu1 %v4730_v22, %s5513_s16 }
0x1265   :  { %1638 = vrot.lane.b32.xlu0 %v4730_v22, %s5514_s23 }
0x1266   :  { %1666 = vrot.lane.b32.xlu1 %v1596_v36, %s5508_s28 }
0x126d   :  { %1690 = vrot.lane.b32.xlu0 %v1596_v36, %s5509_s2 }
0x126e   :  { %1626 = vrot.lane.b32.xlu1 %v4730_v22, %s5506_s0 }
0x1275   :  { %1676 = vrot.lane.b32.xlu0 %v4732_v35, %s5512_s25 }
0x1276   :  { %1678 = vrot.lane.b32.xlu1 %v1596_v36, %s5512_s25 }
0x127d   :  { %1688 = vrot.lane.b32.xlu0 %v4732_v35, %s5509_s2 }
0x127e   :  { %1664 = vrot.lane.b32.xlu1 %v4732_v35, %s5508_s28 }
0x1285   :  { %1680 = vrot.lane.b32.xlu0 %v1597_v39, %s5512_s25 }
0x1286   :  { %1650 = vrot.lane.b32.xlu1 %v4730_v22, %s5507_s3 }
0x128d   :  { %1692 = vrot.lane.b32.xlu0 %v1597_v39, %s5509_s2 }
0x128e   :  { %1662 = vrot.lane.b32.xlu1 %v4730_v22, %s5508_s28 }
0x1295   :  { %1686 = vrot.lane.b32.xlu0 %v4730_v22, %s5509_s2 }
0x1296   :  { %1674 = vrot.lane.b32.xlu1 %v4730_v22, %s5512_s25 }
0x1297   :  { %v1669_v2 = vpop.permute.xlu2 %1668 }
0x129f   :  { %v1617_v18 = vpop.permute.xlu0 %1616 }
0x12a7   :  { %v1643_v58 = vpop.permute.xlu1 %1642  ;;  %v1619_v62 = vpop.permute.xlu0 %1618 }
0x12a8   :  { %v1700_v63 = vsel %vm269_vm1, %v1596_v36, %v1619_v62 }
0x12af   :  { %v1631_v30 = vpop.permute.xlu0 %1630 }
0x12b0   :  { %v1704_v13 = vsel %vm111_vm0, %v1700_v63, %v1631_v30  ;;  %v1633_v46 = vpop.permute.xlu1 %1632 }
0x12b1   :  { %v1708_v5 = vsel %vm278_vm2, %v1704_v13, %v1643_v58 }
0x12b7   :  { %v1621_v0 = vpop.permute.xlu0 %1620 }
0x12b8   :  { %v1645_v15 = vpop.permute.xlu1 %1644  ;;  %v1701_v4 = vsel %vm269_vm1, %v1597_v39, %v1621_v0  ;;  %v1699_v39 = vsel %vm269_vm1, %v4732_v35, %v1617_v18 }
0x12b9   :  { %v1705_v3 = vsel %vm111_vm0, %v1701_v4, %v1633_v46 }
0x12ba   :  { %v1709_v51 = vsel %vm278_vm2, %v1705_v3, %v1645_v15 }
0x12bf   :  { %v1629_v29 = vpop.permute.xlu0 %1628 }
0x12c0   :  { %v1657_v16 = vpop.permute.xlu1 %1656  ;;  %v1703_v0 = vsel %vm111_vm0, %v1699_v39, %v1629_v29  ;;  %v1804_v39 = vmul.f32 %v4722_v10, %v3802_v31 }
0x12c1   :  { %v1713_v4 = vsel %vm283_vm3, %v1709_v51, %v1657_v16 }
0x12c2   :  { %v1717_v35 = vsel %vm288_vm4, %v1713_v4, %v1669_v2  ;;  %v1798_v4 = vmul.f32 %v4722_v10, %v3988_v50 }
0x12c7   :  { %v1641_v11 = vpop.permute.xlu0 %1640 }
0x12c8   :  { %v1655_v14 = vpop.permute.xlu1 %1654  ;;  %v1707_v15 = vsel %vm278_vm2, %v1703_v0, %v1641_v11  ;;  %v1799_v0 = vmul.f32 %v4726_v56, %v3818_v42 }
0x12c9   :  { %v1712_v3 = vsel %vm283_vm3, %v1708_v5, %v1655_v14 }
0x12cf   :  { %v1653_v7 = vpop.permute.xlu0 %1652 }
0x12d0   :  { %v1615_v36 = vpop.permute.xlu1 %1614  ;;  %v1711_v41 = vsel %vm283_vm3, %v1707_v15, %v1653_v7 }
0x12d7   :  { %v1639_v62 = vpop.permute.xlu0 %1638 }
0x12d8   :  { %v1667_v54 = vpop.permute.xlu1 %1666 }
0x12d9   :  { %v1716_v40 = vsel %vm288_vm4, %v1712_v3, %v1667_v54  ;;  %v1698_v54 = vsel %vm269_vm1, %v4730_v22, %v1615_v36  ;;  %v3294_v3 = vpack.i.bf16 %v1798_v4, %v1799_v0 }
0x12df   :  { %v1691_v63 = vpop.permute.xlu0 %1690 }
0x12e0   :  { %v1627_v30 = vpop.permute.xlu1 %1626 }
0x12e7   :  { %v1677_v1 = vpop.permute.xlu0 %1676 }
0x12e8   :  { %v1679_v58 = vpop.permute.xlu1 %1678 }
0x12e9   :  { %v1720_v38 = vsel %vm293_vm5, %v1716_v40, %v1679_v58  ;;  %v1702_v40 = vsel %vm111_vm0, %v1698_v54, %v1627_v30  ;;  %v1809_v30 = vmul.f32 %v4726_v56, %v3751_v34  ;;  %v1805_v58 = vmul.f32 %v4726_v56, %v3957_v26 }
0x12ea   :  { %v1724_v51 = vsel %vm298_vm6, %v1720_v38, %v1691_v63 }
0x12ef   :  { %v1689_v13 = vpop.permute.xlu0 %1688 }
0x12f0   :  { %v1665_v6 = vpop.permute.xlu1 %1664 }
0x12f1   :  { %v1715_v44 = vsel %vm288_vm4, %v1711_v41, %v1665_v6 }
0x12f2   :  { %v1719_v18 = vsel %vm293_vm5, %v1715_v44, %v1677_v1  ;;  %v1728_v44 = vmul.f32 %v4352_v60, %v1724_v51  ;;  %v1706_v1 = vsel %vm278_vm2, %v1702_v40, %v1639_v62 }
0x12f3   :  { %v1723_v41 = vsel %vm298_vm6, %v1719_v18, %v1689_v13 }
0x12f7   :  { %v1681_v33 = vpop.permute.xlu0 %1680 }
0x12f8   :  { %v1651_v46 = vpop.permute.xlu1 %1650  ;;  %v1721_v29 = vsel %vm293_vm5, %v1717_v35, %v1681_v33  ;;  %v1727_v33 = vmul.f32 %v4358_v12, %v1723_v41 }
0x12f9   :  { %v1710_v6 = vsel %vm283_vm3, %v1706_v1, %v1651_v46  ;;  %v1796_v46 = vmul.f32 %v4722_v10, %v3820_v43 }
0x12ff   :  { %v1693_v11 = vpop.permute.xlu0 %1692 }
0x1300   :  { %v1663_v16 = vpop.permute.xlu1 %1662  ;;  %v1725_v5 = vsel %vm298_vm6, %v1721_v29, %v1693_v11 }
0x1301   :  { %v1729_v7 = vmul.f32 %v4344_v59, %v1725_v5  ;;  %v1714_v59 = vsel %vm288_vm4, %v1710_v6, %v1663_v16 }
0x1303   :  { %1746 = vmatpush.msra.mxu1 %v1729_v7 }
0x1305   :  { %1747 = vmatpush.msra.mxu1 %v1728_v44 }
0x1307   :  { %1748 = vmatpush.msra.mxu1 %v1727_v33  ;;  %v1687_v38 = vpop.permute.xlu0 %1686 }
0x1308   :  { %v1675_v2 = vpop.permute.xlu1 %1674 }
0x1309   :  { %v1718_v22 = vsel %vm293_vm5, %v1714_v59, %v1675_v2 }
0x130a   :  { %v1722_v14 = vsel %vm298_vm6, %v1718_v22, %v1687_v38 }
0x130b   :  { %v1726_v36 = vmul.f32 %v4367_v49, %v1722_v14  ;;  %v1808_v49 = vmul.f32 %v4722_v10, %v3753_v37 }
0x130d   :  { %1749 = vmatpush.msra.mxu1 %v1726_v36  ;;  %v3269_v13 = vpack.i.bf16 %v1808_v49, %v1809_v30 }
0x130e   :  { %3052 = vmatmul.msk.f32.vlgmr.msra.gmra.mxu1 %vm111_vm0, %v4722_v10 }
0x1316   :  { %3053 = vmatmul.msk.f32.gmra.mxu1 %vm111_vm0, %v4726_v56 }
0x138b   :  { %v1751_v60 = vpop.f32.mrf.mxu1 }
0x138c   :  { %v1752_v12 = vadd.f32 %v4377_v20, %v1751_v60  ;;  %v3279_v20 = vpack.i.bf16 %v1804_v39, %v1805_v58 }
0x138e   :  { %1757 = vmax.xlane.f32.xlu1 %v1752_v12 }
0x1393   :  { %v1754_v62 = vpop.f32.mrf.mxu1 }
0x1394   :  { %v1755_v63 = vadd.f32 %v4383_v25, %v1754_v62  ;;  %v1797_v25 = vmul.f32 %v4726_v56, %v3983_v48  ;;  %v3276_v56 = vpop.permute.xlu2 %3275 }
0x1395   :  { %v3277_v44 = vunpack.i.l.bf16 %v3276_v56  ;;  %v3278_v1 = vunpack.i.h.bf16 %v3276_v56 }
0x1396   :  { %1759 = vmax.xlane.f32.xlu0 %v1755_v63  ;;  %v3299_v15 = vpack.i.bf16 %v1796_v46, %v1797_v25  ;;  %v3056_v25 = vld [vmem:[%s5505_s26 + $0x50] sm:$0xff]  ;;  %v3055_v46 = vld [vmem:[%s5505_s26 + $0x48] sm:$0xff] }
0x139c   :  { %v3286_v40 = vpop.permute.xlu2 %3285 }
0x139d   :  { %v3287_v59 = vunpack.i.l.bf16 %v3286_v40  ;;  %v3288_v22 = vunpack.i.h.bf16 %v3286_v40 }
0x13a4   :  { %v3291_v2 = vpop.permute.xlu2 %3290 }
0x13a5   :  { %v3292_v14 = vunpack.i.l.bf16 %v3291_v2  ;;  %v3293_v60 = vunpack.i.h.bf16 %v3291_v2 }
0x13a7   :  { %3270 = vrot.lane.b32.xlu1 %v3269_v13, %s5507_s3 }
0x13aa   :  { %3280 = vrot.lane.b32.xlu0 %v3279_v20, %s5507_s3  ;;  %v3057_v20 = vld [vmem:[%s5505_s26 + $0x58] sm:$0xff] }
0x13ab   :  { %1925 = vmatpush.msrb.mxu2 %v3057_v20 }
0x13ac   :  { %v3306_v49 = vpop.permute.xlu2 %3305 }
0x13ad   :  { %v3307_v13 = vunpack.i.l.bf16 %v3306_v49  ;;  %v3308_v39 = vunpack.i.h.bf16 %v3306_v49  ;;  %1926 = vmatpush.msrb.mxu2 %v3056_v25  ;;  %v3063_v49 = vld [vmem:[%s5446_s7 + $0x80] sm:$0xff]  ;;  %v3091_v25 = vld [vmem:[%s5448_s9 + $0x278] sm:$0xff] }
0x13af   :  { %3300 = vrot.lane.b32.xlu1 %v3299_v15, %s5507_s3  ;;  %1927 = vmatpush.msrb.mxu2 %v3055_v46  ;;  %v3107_v46 = vld [vmem:[%s5448_s9 + $0x2f8] sm:$0xff] }
0x13b0   :  { %2129 = vmatpush.msra.mxu0 %v3107_v46  ;;  %v3096_v46 = vld [vmem:[%s5448_s9 + $0x2a0] sm:$0xff] }
0x13b2   :  { %3295 = vrot.lane.b32.xlu0 %v3294_v3, %s5507_s3 }
0x1401   :  { %v1758_v35 = vpop.xlane.xlu1 %1757 }
0x1402   :  { %v1761_v18 = vsub.f32 %v1752_v12, %v1758_v35 }
0x1404   :  { %v1763_v29 = vmul.f32 1.442695, %v1761_v18 }
0x1406   :  { %3413 = vpow2.f32 %v1763_v29  ;;  %v3054_v29 = vld [vmem:[%s5505_s26 + $0x40] sm:$0xff] }
0x1407   :  { %1928 = vmatpush.msrb.mxu2 %v3054_v29  ;;  %v3088_v29 = vld [vmem:[%s5448_s9 + $0x260] sm:$0xff] }
0x1409   :  { %v1760_v11 = vpop.xlane.xlu0 %1759 }
0x140a   :  { %v1762_v51 = vsub.f32 %v1755_v63, %v1760_v11 }
0x140c   :  { %v3414_v16 = vpop.eup %3413  ;;  %v1765_v5 = vmul.f32 1.442695, %v1762_v51 }
0x140d   :  { %1783 = vmatmul.f32.vlgmr.msrb.gmra.mxu0 %v3414_v16 }
0x140e   :  { %3415 = vpow2.f32 %v1765_v5 }
0x1414   :  { %v3416_v7 = vpop.eup %3415 }
0x1415   :  { %1786 = vmatmul.f32.gmra.mxu0 %v3416_v7 }
0x1419   :  { %v3271_v54 = vpop.permute.xlu1 %3270 }
0x141a   :  { %v3272_v10 = vunpack.i.l.bf16 %v3271_v54  ;;  %v3273_v41 = vunpack.i.h.bf16 %v3271_v54 }
0x141c   :  { %1874 = vmatpush.msrb.mxu1 %v3272_v10  ;;  %v3281_v33 = vpop.permute.xlu0 %3280 }
0x141d   :  { %v3282_v6 = vunpack.i.l.bf16 %v3281_v33  ;;  %v3283_v38 = vunpack.i.h.bf16 %v3281_v33 }
0x141e   :  { %1875 = vmatpush.msrb.mxu1 %v3273_v41 }
0x1420   :  { %1876 = vmatpush.msrb.mxu1 %v3277_v44 }
0x1421   :  { %v3301_v62 = vpop.permute.xlu1 %3300 }
0x1422   :  { %1877 = vmatpush.msrb.mxu1 %v3278_v1  ;;  %v3302_v30 = vunpack.i.l.bf16 %v3301_v62  ;;  %v3303_v58 = vunpack.i.h.bf16 %v3301_v62  ;;  %v3068_v62 = vld [vmem:[%s5446_s7 + $0xa8] sm:$0xff] }
0x1424   :  { %1878 = vmatpush.msrb.mxu1 %v3282_v6  ;;  %v3296_v36 = vpop.permute.xlu0 %3295 }
0x1425   :  { %v3297_v12 = vunpack.i.l.bf16 %v3296_v36  ;;  %v3298_v63 = vunpack.i.h.bf16 %v3296_v36  ;;  %v3069_v36 = vld [vmem:[%s5446_s7 + $0xb0] sm:$0xff] }
0x1426   :  { %1879 = vmatpush.msrb.mxu1 %v3283_v38  ;;  %2030 = vmatpush.msrb.mxu3 %v3069_v36 }
0x1428   :  { %1880 = vmatpush.msrb.mxu1 %v3287_v59 }
0x142a   :  { %1881 = vmatpush.msrb.mxu1 %v3288_v22 }
0x142c   :  { %1882 = vmatpush.msrb.mxu1 %v3292_v14 }
0x142e   :  { %1883 = vmatpush.msrb.mxu1 %v3293_v60  ;;  %v3070_v60 = vld [vmem:[%s5446_s7 + $0xb8] sm:$0xff] }
0x142f   :  { %2053 = vmatpush.msra.mxu2 %v3070_v60 }
0x1430   :  { %1884 = vmatpush.msrb.mxu1 %v3297_v12  ;;  %v3067_v12 = vld [vmem:[%s5446_s7 + $0xa0] sm:$0xff] }
0x1431   :  { %2031 = vmatpush.msrb.mxu3 %v3067_v12  ;;  %2054 = vmatpush.msra.mxu2 %v3068_v62  ;;  %v3082_v12 = vld [vmem:[%s5448_s9 + $0x230] sm:$0xff] }
0x1432   :  { %1885 = vmatpush.msrb.mxu1 %v3298_v63  ;;  %v3065_v63 = vld [vmem:[%s5446_s7 + $0x90] sm:$0xff] }
0x1433   :  { %2032 = vmatpush.msrb.mxu3 %v3065_v63  ;;  %v3098_v62 = vld [vmem:[%s5448_s9 + $0x2b0] sm:$0xff] }
0x1434   :  { %1886 = vmatpush.msrb.mxu1 %v3302_v30  ;;  %v3066_v30 = vld [vmem:[%s5446_s7 + $0x98] sm:$0xff] }
0x1435   :  { %2055 = vmatpush.msra.mxu2 %v3066_v30  ;;  %2033 = vmatpush.msrb.mxu3 %v3063_v49 }
0x1436   :  { %1887 = vmatpush.msrb.mxu1 %v3303_v58  ;;  %v3064_v58 = vld [vmem:[%s5446_s7 + $0x88] sm:$0xff] }
0x1437   :  { %2056 = vmatpush.msra.mxu2 %v3064_v58  ;;  %2106 = vmatpush.msra.mxu3 %v3091_v25  ;;  %v3366_v58 = vld [vmem:[%s5445_s6 + $0x2] ss:$0 sm:$0xff] }
0x1438   :  { %1888 = vmatpush.msrb.mxu1 %v3307_v13 }
0x143a   :  { %1889 = vmatpush.msrb.mxu1 %v3308_v39 }
0x148a   :  { %v1784_v0 = vpop.f32.mrf.mxu0 }
0x148b   :  { %3417 = vrcp.f32 %v1784_v0  ;;  %v3090_v0 = vld [vmem:[%s5448_s9 + $0x270] sm:$0xff] }
0x148c   :  { %2107 = vmatpush.msra.mxu3 %v3090_v0 }
0x1491   :  { %v3418_v15 = vpop.eup %3417 }
0x1492   :  { %v1787_v4 = vpop.f32.mrf.mxu0  ;;  %v1792_v3 = vmul.f32 %v3418_v15, %v3414_v16  ;;  %v3364_v16 = vld [vmem:[%s5443_s4 + $0x2] ss:$0 sm:$0xff]  ;;  %v3106_v15 = vld [vmem:[%s5448_s9 + $0x2f0] sm:$0xff] }
0x1493   :  { %3419 = vrcp.f32 %v1787_v4  ;;  %v3089_v4 = vld [vmem:[%s5448_s9 + $0x268] sm:$0xff]  ;;  %2130 = vmatpush.msra.mxu0 %v3106_v15 }
0x1494   :  { %1890 = vmatmul.f32.vlgmr.msrb.gmra.mxu1 %v1792_v3  ;;  %v3105_v3 = vld [vmem:[%s5448_s9 + $0x2e8] sm:$0xff]  ;;  %2108 = vmatpush.msra.mxu3 %v3089_v4  ;;  %v3079_v4 = vld [vmem:[%s5448_s9 + $0x218] sm:$0xff] }
0x1495   :  { %2131 = vmatpush.msra.mxu0 %v3105_v3  ;;  %v3095_v3 = vld [vmem:[%s5448_s9 + $0x298] sm:$0xff] }
0x1496   :  { %2109 = vmatpush.msra.mxu3 %v3088_v29 }
0x1499   :  { %v3420_v35 = vpop.eup %3419 }
0x149a   :  { %v1793_v18 = vmul.f32 %v3420_v35, %v3416_v7 }
0x149c   :  { %1893 = vmatmul.f32.gmra.mxu1 %v1793_v18 }
0x1511   :  { %v1891_v11 = vpop.f32.mrf.mxu1 }
0x1512   :  { %3059 = vmatmul.msk.f32.vlgmr.msrb.gmra.mxu2 %vm111_vm0, %v1891_v11  ;;  %v3104_v11 = vld [vmem:[%s5448_s9 + $0x2e0] sm:$0xff] }
0x1513   :  { %2132 = vmatpush.msra.mxu0 %v3104_v11 }
0x1519   :  { %v1894_v51 = vpop.f32.mrf.mxu1 }
0x151a   :  { %3060 = vmatmul.msk.f32.gmra.mxu2 %vm111_vm0, %v1894_v51 }
0x1595   :  { %v1930_v5 = vpop.f32.mrf.mxu2 }
0x1596   :  { %v1931_v56 = vadd.f32 %v3364_v16, %v1930_v5  ;;  %v3087_v5 = vld [vmem:[%s5448_s9 + $0x258] sm:$0xff] }
0x1597   :  { %2110 = vmatpush.msra.mxu3 %v3087_v5  ;;  %v3094_v5 = vld [vmem:[%s5448_s9 + $0x290] sm:$0xff] }
0x1598   :  { %v1936_v7 = vadd.f32 %v1931_v56, %v4704_v52  ;;  %v3103_v56 = vld [vmem:[%s5448_s9 + $0x2d8] sm:$0xff] }
0x1599   :  { %2133 = vmatpush.msra.mxu0 %v3103_v56  ;;  %v3093_v56 = vld [vmem:[%s5448_s9 + $0x288] sm:$0xff] }
0x159a   :  { %v1942_v54 = vsel %vm111_vm0, %v1936_v7, 0.0 }
0x159b   :  { %1943 = vadd.xlane.f32.xlu0 %v1942_v54  ;;  %v3086_v54 = vld [vmem:[%s5448_s9 + $0x250] sm:$0xff] }
0x159c   :  { %2111 = vmatpush.msra.mxu3 %v3086_v54  ;;  %v3092_v54 = vld [vmem:[%s5448_s9 + $0x280] sm:$0xff] }
0x159d   :  { %v1933_v10 = vpop.f32.mrf.mxu2 }
0x159e   :  { %v1934_v41 = vadd.f32 %v3364_v16, %v1933_v10  ;;  %v3102_v10 = vld [vmem:[%s5448_s9 + $0x2d0] sm:$0xff] }
0x159f   :  { %2134 = vmatpush.msra.mxu0 %v3102_v10  ;;  %v3071_v10 = vld [vmem:[%s5447_s8 + $0x4] sm:$0x3] }
0x15a0   :  { %v1937_v40 = vadd.f32 %v1934_v41, %v4715_v19 }
0x15a2   :  { %v1945_v44 = vsel %vm111_vm0, %v1937_v40, 0.0 }
0x15a3   :  { %1946 = vadd.xlane.f32.xlu1 %v1945_v44  ;;  %v3101_v44 = vld [vmem:[%s5448_s9 + $0x2c8] sm:$0xff] }
0x15a4   :  { %2135 = vmatpush.msra.mxu0 %v3101_v44 }
0x160e   :  { %v1944_v33 = vpop.xlane.xlu0 %1943 }
0x160f   :  { %v1948_v1 = vmul.f32 %v1944_v33, %v4030_v47 }
0x1611   :  { %v4878_v6 = vsub.f32 %v1936_v7, %v1948_v1  ;;  %v3084_v1 = vld [vmem:[%s5448_s9 + $0x240] sm:$0xff] }
0x1613   :  { %v1952_v38 = vmul.f32 %v4878_v6, %v4878_v6 }
0x1615   :  { %v1954_v52 = vsel %vm111_vm0, %v1952_v38, 0.0  ;;  %v3100_v38 = vld [vmem:[%s5448_s9 + $0x2c0] sm:$0xff] }
0x1616   :  { %1955 = vadd.xlane.f32.xlu2 %v1954_v52  ;;  %v1947_v59 = vpop.xlane.xlu1 %1946  ;;  %2136 = vmatpush.msra.mxu0 %v3100_v38 }
0x1617   :  { %v1949_v2 = vmul.f32 %v1947_v59, %v4030_v47 }
0x1619   :  { %v4884_v22 = vsub.f32 %v1937_v40, %v1949_v2  ;;  %v3085_v40 = vld [vmem:[%s5448_s9 + $0x248] sm:$0xff]  ;;  %v3083_v2 = vld [vmem:[%s5448_s9 + $0x238] sm:$0xff] }
0x161a   :  { %2112 = vmatpush.msra.mxu3 %v3085_v40  ;;  %v2009_v40 = vperm.slane %v3071_v10, 1 }
0x161b   :  { %v1953_v19 = vmul.f32 %v4884_v22, %v4884_v22 }
0x161c   :  { %2113 = vmatpush.msra.mxu3 %v3084_v1 }
0x161d   :  { %v1957_v14 = vsel %vm111_vm0, %v1953_v19, 0.0  ;;  %v3099_v19 = vld [vmem:[%s5448_s9 + $0x2b8] sm:$0xff] }
0x161e   :  { %1958 = vadd.xlane.f32.xlu2 %v1957_v14  ;;  %v3365_v14 = vld [vmem:[%s5444_s5 + $0x2] ss:$0 sm:$0xff]  ;;  %2114 = vmatpush.msra.mxu3 %v3083_v2 }
0x161f   :  { %2137 = vmatpush.msra.mxu0 %v3099_v19 }
0x1620   :  { %2115 = vmatpush.msra.mxu3 %v3082_v12 }
0x1621   :  { %2138 = vmatpush.msra.mxu0 %v3098_v62  ;;  %v3367_v62 = vld [vmem:[%s5449_s10 + $0x2] ss:$0 sm:$0xff] }
0x1689   :  { %v1956_v13 = vpop.xlane.xlu2 %1955 }
0x168a   :  { %v1960_v39 = vmul.f32 %v1956_v13, %v4030_v47  ;;  %v3081_v13 = vld [vmem:[%s5448_s9 + $0x228] sm:$0xff] }
0x168b   :  { %2116 = vmatpush.msra.mxu3 %v3081_v13 }
0x168c   :  { %v1962_v20 = vadd.f32 1e-05, %v1960_v39  ;;  %v3097_v39 = vld [vmem:[%s5448_s9 + $0x2a8] sm:$0xff] }
0x168d   :  { %2139 = vmatpush.msra.mxu0 %v3097_v39 }
0x168e   :  { %3421 = vrsqrt.f32 %v1962_v20  ;;  %vm1970_vm15 = vweird.f32 %v1962_v20 }
0x168f   :  { %2140 = vmatpush.msra.mxu0 %v3096_v46 }
0x1691   :  { %v1959_v35 = vpop.xlane.xlu2 %1958  ;;  %2141 = vmatpush.msra.mxu0 %v3095_v3 }
0x1692   :  { %v1961_v18 = vmul.f32 %v1959_v35, %v4030_v47 }
0x1693   :  { %2142 = vmatpush.msra.mxu0 %v3094_v5 }
0x1694   :  { %v3422_v51 = vpop.eup %3421  ;;  %v1963_v16 = vadd.f32 1e-05, %v1961_v18 }
0x1695   :  { %v1965_v7 = vmul.f32 %v3422_v51, %v1962_v20  ;;  %vm1971_vm14 = vweird.f32 %v3422_v51  ;;  %2143 = vmatpush.msra.mxu0 %v3093_v56  ;;  %v3114_v56 = vld [vmem:[%s5494_s20 + $0x78] sm:$0xff] }
0x1696   :  { %3423 = vrsqrt.f32 %v1963_v16  ;;  %vm1972_vm7 = vmor %vm1970_vm15, %vm1971_vm14  ;;  %vm1980_vm9 = vweird.f32 %v1963_v16  ;;  %2240 = vmatpush.msra.mxu1 %v3114_v56 }
0x1697   :  { %v1966_v41 = vmul.f32 %v3422_v51, %v1965_v7  ;;  %v3076_v7 = vld [vmem:[%s5448_s9 + $0x200] sm:$0xff]  ;;  %2144 = vmatpush.msra.mxu0 %v3092_v54  ;;  %v3112_v54 = vld [vmem:[%s5494_s20 + $0x68] sm:$0xff] }
0x1699   :  { %v1967_v33 = vmul.f32 0.5, %v1966_v41  ;;  %v2008_v41 = vperm.slane %v3071_v10, 0  ;;  %v3111_v10 = vld [vmem:[%s5494_s20 + $0x60] sm:$0xff] }
0x169b   :  { %v1968_v52 = vsub.f32 1.5, %v1967_v33 }
0x169c   :  { %v3424_v59 = vpop.eup %3423 }
0x169d   :  { %v1969_v36 = vmul.f32 %v3422_v51, %v1968_v52  ;;  %v1975_v60 = vmul.f32 %v3424_v59, %v1963_v16  ;;  %vm1981_vm8 = vweird.f32 %v3424_v59  ;;  %v3078_v16 = vld [vmem:[%s5448_s9 + $0x210] sm:$0xff] }
0x169e   :  { %vm1982_vm10 = vmor %vm1980_vm9, %vm1981_vm8 }
0x169f   :  { %v1973_v63 = vsel %vm1972_vm7, %v3422_v51, %v1969_v36  ;;  %v1976_v30 = vmul.f32 %v3424_v59, %v1975_v60 }
0x16a0   :  { %v1984_v49 = vmul.f32 %v1973_v63, %v4878_v6  ;;  %v3080_v6 = vld [vmem:[%s5448_s9 + $0x220] sm:$0xff] }
0x16a1   :  { %v1977_v20 = vmul.f32 0.5, %v1976_v30  ;;  %2117 = vmatpush.msra.mxu3 %v3080_v6 }
0x16a2   :  { %v1989_v25 = vmul.f32 %v3365_v14, %v1984_v49 }
0x16a3   :  { %v1978_v0 = vsub.f32 1.5, %v1977_v20  ;;  %2118 = vmatpush.msra.mxu3 %v3079_v4 }
0x16a4   :  { %v1994_v15 = vadd.f32 %v3366_v58, %v1989_v25 }
0x16a5   :  { %v1979_v35 = vmul.f32 %v3424_v59, %v1978_v0  ;;  %2119 = vmatpush.msra.mxu3 %v3078_v16 }
0x16a6   :  { %3072 = vmatmul.msk.f32.vlgmr.msrb.gmra.mxu3 %vm111_vm0, %v1994_v15  ;;  %3074 = vmatmul.msk.f32.vlgmr.msra.gmra.mxu2 %vm111_vm0, %v1994_v15 }
0x16a7   :  { %v1983_v18 = vsel %vm1982_vm10, %v3424_v59, %v1979_v35 }
0x16a8   :  { %v1985_v29 = vmul.f32 %v1983_v18, %v4884_v22  ;;  %v3077_v22 = vld [vmem:[%s5448_s9 + $0x208] sm:$0xff] }
0x16a9   :  { %2120 = vmatpush.msra.mxu3 %v3077_v22 }
0x16aa   :  { %v1990_v11 = vmul.f32 %v3365_v14, %v1985_v29 }
0x16ab   :  { %2121 = vmatpush.msra.mxu3 %v3076_v7  ;;  %v3113_v7 = vld [vmem:[%s5494_s20 + $0x70] sm:$0xff] }
0x16ac   :  { %v1995_v51 = vadd.f32 %v3366_v58, %v1990_v11  ;;  %2241 = vmatpush.msra.mxu1 %v3113_v7  ;;  %v5521_v7 = vld [vmem:[#allocation12_spill] sm:$0xff] }
0x16ae   :  { %3073 = vmatmul.msk.f32.gmra.mxu3 %vm111_vm0, %v1995_v51  ;;  %3075 = vmatmul.msk.f32.gmra.mxu2 %vm111_vm0, %v1995_v51 }
0x16af   :  { %2242 = vmatpush.msra.mxu1 %v3112_v54 }
0x16b1   :  { %2243 = vmatpush.msra.mxu1 %v3111_v10  ;;  %v5522_v10 = vld [vmem:[#allocation11_spill] sm:$0xff] }
0x16b3   :  { %2448 = vmatpush.msrb.mxu1 %v4608_v24 }
0x16b5   :  { %2449 = vmatpush.msrb.mxu1 %v4614_v53 }
0x16b7   :  { %2450 = vmatpush.msrb.mxu1 %v4621_v61 }
0x16b9   :  { %2451 = vmatpush.msrb.mxu1 %v4627_v17 }
0x16bb   :  { %2452 = vmatpush.msrb.mxu1 %v4633_v9 }
0x16bd   :  { %2453 = vmatpush.msrb.mxu1 %v4639_v55 }
0x16bf   :  { %2454 = vmatpush.msrb.mxu1 %v4646_v23 }
0x16c1   :  { %2455 = vmatpush.msrb.mxu1 %v4652_v21  ;;  %v3368_v21 = vld [vmem:[%s5450_s11 + $0x2] ss:$0 sm:$0xff] }
0x16c3   :  { %2456 = vmatpush.msrb.mxu1 %v4658_v27 }
0x16c5   :  { %2457 = vmatpush.msrb.mxu1 %v4664_v28 }
0x16c7   :  { %2458 = vmatpush.msrb.mxu1 %v4670_v32  ;;  %v3369_v32 = vld [vmem:[%s5451_s12 + $0x2] ss:$0 sm:$0xff] }
0x16c9   :  { %2459 = vmatpush.msrb.mxu1 %v4676_v8 }
0x16cb   :  { %2460 = vmatpush.msrb.mxu1 %v4685_v45 }
0x16cd   :  { %2461 = vmatpush.msrb.mxu1 %v4695_v57 }
0x1729   :  { %v2035_v44 = vpop.f32.mrf.mxu3  ;;  %v2058_v33 = vpop.f32.mrf.mxu2 }
0x172a   :  { %v2036_v1 = vadd.f32 %v2035_v44, %v2008_v41  ;;  %v2059_v38 = vadd.f32 %v2058_v33, %v2009_v40 }
0x172c   :  { %v2064_v52 = vmax.f32 %v2036_v1, 0.0  ;;  %v2065_v59 = vmax.f32 %v2059_v38, 0.0 }
0x172e   :  { %2122 = vmatmul.f32.vlgmr.msra.gmra.mxu3 %v2064_v52  ;;  %2145 = vmatmul.f32.vlgmr.msra.gmra.mxu0 %v2065_v59 }
0x1731   :  { %v2038_v2 = vpop.f32.mrf.mxu3  ;;  %v2061_v19 = vpop.f32.mrf.mxu2 }
0x1732   :  { %v2039_v14 = vadd.f32 %v2038_v2, %v2008_v41  ;;  %v2062_v36 = vadd.f32 %v2061_v19, %v2009_v40  ;;  %v5515_v19 = vld [vmem:[#allocation13_spill] sm:$0xff] }
0x1733   :  { %2462 = vmatpush.msrb.mxu1 %v5515_v19 }
0x1734   :  { %v2066_v60 = vmax.f32 %v2039_v14, 0.0  ;;  %v2067_v12 = vmax.f32 %v2062_v36, 0.0 }
0x1736   :  { %2125 = vmatmul.f32.gmra.mxu3 %v2066_v60  ;;  %2148 = vmatmul.f32.gmra.mxu0 %v2067_v12  ;;  %v5516_v60 = vld [vmem:[#allocation14_spill] sm:$0xff] }
0x1737   :  { %2463 = vmatpush.msrb.mxu1 %v5516_v60 }
0x17ab   :  { %v2146_v63 = vpop.f32.mrf.mxu0 }
0x17b1   :  { %v2123_v30 = vpop.f32.mrf.mxu3 }
0x17b2   :  { %v2124_v49 = vadd.f32 %v3367_v62, %v2123_v30  ;;  %v3370_v30 = vld [vmem:[%s5496_s30 + $0x3] ss:$0 sm:$0xff]  ;;  %s3512_s30 = smov 128  }
0x17b3   :  { %v2149_v6 = vpop.f32.mrf.mxu0 }
0x17b4   :  { %v2147_v58 = vadd.f32 %v2146_v63, %v2124_v49 }
0x17b6   :  { %v2152_v13 = vadd.f32 %v2147_v58, %v1994_v15 }
0x17b8   :  { %v2158_v39 = vsel %vm111_vm0, %v2152_v13, 0.0 }
0x17b9   :  { %2159 = vadd.xlane.f32.xlu0 %v2158_v39  ;;  %v2126_v20 = vpop.f32.mrf.mxu3 }
0x17ba   :  { %v2127_v25 = vadd.f32 %v3367_v62, %v2126_v20 }
0x17bc   :  { %v2150_v46 = vadd.f32 %v2149_v6, %v2127_v25 }
0x17be   :  { %v2153_v0 = vadd.f32 %v2150_v46, %v1995_v51 }
0x17c0   :  { %v2161_v4 = vsel %vm111_vm0, %v2153_v0, 0.0 }
0x17c1   :  { %2162 = vadd.xlane.f32.xlu1 %v2161_v4 }
0x182c   :  { %v2160_v3 = vpop.xlane.xlu0 %2159 }
0x182d   :  { %v2164_v35 = vmul.f32 %v2160_v3, %v4030_v47 }
0x182f   :  { %v2166_v18 = vsub.f32 %v2152_v13, %v2164_v35 }
0x1831   :  { %v2168_v29 = vmul.f32 %v2166_v18, %v2166_v18 }
0x1833   :  { %v2170_v11 = vsel %vm111_vm0, %v2168_v29, 0.0  ;;  %v5517_v29 = vld [vmem:[#allocation10_spill] sm:$0xff] }
0x1834   :  { %2171 = vadd.xlane.f32.xlu2 %v2170_v11  ;;  %v2163_v15 = vpop.xlane.xlu1 %2162 }
0x1835   :  { %v2165_v16 = vmul.f32 %v2163_v15, %v4030_v47  ;;  %v5518_v15 = vld [vmem:[#allocation7_spill] sm:$0xff] }
0x1837   :  { %v5034_v5 = vsub.f32 %v2153_v0, %v2165_v16 }
0x1839   :  { %v2169_v22 = vmul.f32 %v5034_v5, %v5034_v5 }
0x183b   :  { %v2173_v51 = vsel %vm111_vm0, %v2169_v22, 0.0  ;;  %v5520_v22 = vld [vmem:[#allocation9_spill] sm:$0xff] }
0x183c   :  { %2174 = vadd.xlane.f32.xlu0 %v2173_v51 }
0x18a7   :  { %v2172_v41 = vpop.xlane.xlu2 %2171 }
0x18a8   :  { %v2176_v40 = vmul.f32 %v2172_v41, %v4030_v47 }
0x18aa   :  { %v2178_v44 = vadd.f32 1e-05, %v2176_v40 }
0x18ac   :  { %3425 = vrsqrt.f32 %v2178_v44  ;;  %vm2186_vm12 = vweird.f32 %v2178_v44 }
0x18af   :  { %v2175_v33 = vpop.xlane.xlu0 %2174 }
0x18b0   :  { %v2177_v1 = vmul.f32 %v2175_v33, %v4030_v47 }
0x18b2   :  { %v3426_v24 = vpop.eup %3425  ;;  %v2179_v53 = vadd.f32 1e-05, %v2177_v1 }
0x18b3   :  { %v2181_v38 = vmul.f32 %v3426_v24, %v2178_v44  ;;  %vm2187_vm11 = vweird.f32 %v3426_v24 }
0x18b4   :  { %3427 = vrsqrt.f32 %v2179_v53  ;;  %vm2188_vm13 = vmor %vm2186_vm12, %vm2187_vm11  ;;  %vm2196_vm15 = vweird.f32 %v2179_v53 }
0x18b5   :  { %v2182_v61 = vmul.f32 %v3426_v24, %v2181_v38 }
0x18b7   :  { %v2183_v17 = vmul.f32 0.5, %v2182_v61 }
0x18b9   :  { %v2184_v9 = vsub.f32 1.5, %v2183_v17 }
0x18ba   :  { %v3428_v55 = vpop.eup %3427 }
0x18bb   :  { %v2185_v23 = vmul.f32 %v3426_v24, %v2184_v9  ;;  %v2191_v52 = vmul.f32 %v3428_v55, %v2179_v53  ;;  %vm2197_vm14 = vweird.f32 %v3428_v55 }
0x18bc   :  { %vm2198_vm7 = vmor %vm2196_vm15, %vm2197_vm14 }
0x18bd   :  { %v2189_v27 = vsel %vm2188_vm13, %v3426_v24, %v2185_v23  ;;  %v2192_v28 = vmul.f32 %v3428_v55, %v2191_v52 }
0x18be   :  { %v2200_v59 = vmul.f32 %v2189_v27, %v2166_v18 }
0x18bf   :  { %v2193_v8 = vmul.f32 0.5, %v2192_v28 }
0x18c0   :  { %v2205_v2 = vmul.f32 %v3368_v21, %v2200_v59 }
0x18c1   :  { %v2194_v14 = vsub.f32 1.5, %v2193_v8 }
0x18c2   :  { %v5074_v36 = vadd.f32 %v3369_v32, %v2205_v2 }
0x18c3   :  { %v2195_v45 = vmul.f32 %v3428_v55, %v2194_v14 }
0x18c4   :  { %3116 = vmatmul.msk.f32.vlgmr.msra.gmra.mxu1 %vm111_vm0, %v5074_v36 }
0x18c5   :  { %v2199_v12 = vsel %vm2198_vm7, %v3428_v55, %v2195_v45 }
0x18c6   :  { %v2201_v62 = vmul.f32 %v2199_v12, %v5034_v5 }
0x18c8   :  { %v2206_v57 = vmul.f32 %v3368_v21, %v2201_v62 }
0x18ca   :  { %v5080_v63 = vadd.f32 %v3369_v32, %v2206_v57 }
0x18cc   :  { %3117 = vmatmul.msk.f32.gmra.mxu1 %vm111_vm0, %v5080_v63 }
0x1941   :  { %v2245_v49 = vpop.f32.mrf.mxu1 }
0x1942   :  { %v5087_v58 = vadd.f32 %v3370_v30, %v2245_v49 }
0x1944   :  { %2253 = vrot.lane.b32.xlu1 %v5087_v58, %s5512_s25  ;;  %v2485_v35 = vmul.f32 %v5087_v58, %v3802_v31  ;;  %v2483_v16 = vmul.f32 %v5087_v58, %v5518_v15  ;;  %v5519_v31 = vld [vmem:[#allocation8_spill] sm:$0xff]  ;;  %v2481_v51 = vmul.f32 %v5087_v58, %v5520_v22  ;;  %v2475_v41 = vmul.f32 %v5087_v58, %v5522_v10 }
0x1949   :  { %v2248_v13 = vpop.f32.mrf.mxu1 }
0x194a   :  { %v5091_v39 = vadd.f32 %v3370_v30, %v2248_v13 }
0x194c   :  { %2255 = vrot.lane.b32.xlu2 %v5091_v39, %s5512_s25  ;;  %v2486_v3 = vmul.f32 %v5091_v39, %v3957_v26  ;;  %v2484_v11 = vmul.f32 %v5091_v39, %v5517_v29  ;;  %v2482_v26 = vmul.f32 %v5091_v39, %v5519_v31  ;;  %v2476_v54 = vmul.f32 %v5091_v39, %v5521_v7 }
0x194e   :  { %v3319_v18 = vpack.i.bf16 %v2485_v35, %v2486_v3  ;;  %v3324_v5 = vpack.i.bf16 %v2483_v16, %v2484_v11  ;;  %v3329_v56 = vpack.i.bf16 %v2481_v51, %v2482_v26  ;;  %v3344_v40 = vpack.i.bf16 %v2475_v41, %v2476_v54 }
0x19a6   :  { %v2256_v25 = vpop.permute.xlu2 %2255 }
0x19b6   :  { %v2254_v20 = vpop.permute.xlu1 %2253 }
0x19b7   :  { %2259 = vxpose.xlu0.b32.start [1/2] (short) (narrow) %v2254_v20, 32 }
0x19bf   :  { %2260 = vxpose.xlu0.b32.end [2/2] (short) (narrow) %v2256_v25, 32 }
0x1a5b   :  { %v5095_v6 = vpop.trf.xlu0 }
0x1a63   :  { %v5097_v46 = vpop.trf.xlu0 }
0x1a64   :  { %2297 = vrot.lane.b32.xlu1 %v5097_v46, %s5513_s16 }
0x1a6b   :  { %v2277_v0 = vpop.trf.xlu0 }
0x1a6c   :  { %2323 = vrot.lane.b32.xlu2 %v2277_v0, %s5514_s23  ;;  %2299 = vrot.lane.b32.xlu1 %v2277_v0, %s5513_s16 }
0x1a73   :  { %v2278_v4 = vpop.trf.xlu0 }
0x1a74   :  { %2311 = vrot.lane.b32.xlu1 %v2277_v0, %s5506_s0  ;;  %2349 = vrot.lane.b32.xlu0 %v2278_v4, %s5508_s28 }
0x1a75   :  { %2313 = vrot.lane.b32.xlu2 %v2278_v4, %s5506_s0 }
0x1a7c   :  { %3320 = vrot.lane.b32.xlu0 %v3319_v18, %s5507_s3  ;;  %2301 = vrot.lane.b32.xlu1 %v2278_v4, %s5513_s16 }
0x1a7d   :  { %2325 = vrot.lane.b32.xlu2 %v2278_v4, %s5514_s23 }
0x1a84   :  { %3325 = vrot.lane.b32.xlu0 %v3324_v5, %s5507_s3  ;;  %2309 = vrot.lane.b32.xlu1 %v5097_v46, %s5506_s0 }
0x1a85   :  { %2337 = vrot.lane.b32.xlu2 %v2278_v4, %s5507_s3 }
0x1a8c   :  { %3330 = vrot.lane.b32.xlu0 %v3329_v56, %s5507_s3  ;;  %2321 = vrot.lane.b32.xlu1 %v5097_v46, %s5514_s23  ;;  %v3471_v56 = vld [vmem:[%s5454_s15 + $0x18] sm:$0xff] }
0x1a8d   :  { %2335 = vrot.lane.b32.xlu2 %v2277_v0, %s5507_s3 }
0x1a94   :  { %3345 = vrot.lane.b32.xlu0 %v3344_v40, %s5507_s3  ;;  %2333 = vrot.lane.b32.xlu1 %v5097_v46, %s5507_s3  ;;  %v3472_v40 = vld [vmem:[%s5454_s15 + $0x10] sm:$0xff] }
0x1a95   :  { %2295 = vrot.lane.b32.xlu2 %v5095_v6, %s5513_s16 }
0x1a9c   :  { %2319 = vrot.lane.b32.xlu1 %v5095_v6, %s5514_s23 }
0x1a9d   :  { %2347 = vrot.lane.b32.xlu2 %v2277_v0, %s5508_s28 }
0x1aa4   :  { %2371 = vrot.lane.b32.xlu1 %v2277_v0, %s5509_s2 }
0x1aa5   :  { %2307 = vrot.lane.b32.xlu2 %v5095_v6, %s5506_s0 }
0x1aac   :  { %2357 = vrot.lane.b32.xlu1 %v5097_v46, %s5512_s25 }
0x1aad   :  { %2359 = vrot.lane.b32.xlu2 %v2277_v0, %s5512_s25 }
0x1ab4   :  { %2369 = vrot.lane.b32.xlu1 %v5097_v46, %s5509_s2 }
0x1ab5   :  { %2345 = vrot.lane.b32.xlu2 %v5097_v46, %s5508_s28 }
0x1abc   :  { %2361 = vrot.lane.b32.xlu1 %v2278_v4, %s5512_s25 }
0x1abd   :  { %2331 = vrot.lane.b32.xlu2 %v5095_v6, %s5507_s3 }
0x1ac4   :  { %2373 = vrot.lane.b32.xlu1 %v2278_v4, %s5509_s2 }
0x1ac5   :  { %2343 = vrot.lane.b32.xlu2 %v5095_v6, %s5508_s28 }
0x1ac6   :  { %v2324_v44 = vpop.permute.xlu2 %2323 }
0x1acc   :  { %2367 = vrot.lane.b32.xlu1 %v5095_v6, %s5509_s2 }
0x1acd   :  { %2355 = vrot.lane.b32.xlu2 %v5095_v6, %s5512_s25 }
0x1acf   :  { %v2314_v33 = vpop.permute.xlu2 %2313 }
0x1ad6   :  { %v2298_v1 = vpop.permute.xlu1 %2297 }
0x1ad7   :  { %v2326_v24 = vpop.permute.xlu2 %2325 }
0x1ade   :  { %v2300_v53 = vpop.permute.xlu1 %2299 }
0x1adf   :  { %v2338_v38 = vpop.permute.xlu2 %2337  ;;  %v2381_v61 = vsel %vm269_vm1, %v2277_v0, %v2300_v53  ;;  %v2380_v0 = vsel %vm269_vm1, %v5097_v46, %v2298_v1  ;;  %v3473_v53 = vld [vmem:[%s5454_s15 + $0x8] sm:$0xff] }
0x1ae6   :  { %v2312_v17 = vpop.permute.xlu1 %2311 }
0x1ae7   :  { %v2385_v9 = vsel %vm111_vm0, %v2381_v61, %v2312_v17  ;;  %v2336_v23 = vpop.permute.xlu2 %2335 }
0x1ae8   :  { %v2389_v55 = vsel %vm278_vm2, %v2385_v9, %v2324_v44 }
0x1ae9   :  { %v2393_v3 = vsel %vm283_vm3, %v2389_v55, %v2336_v23  ;;  %v3474_v55 = vld [vmem:[%s5454_s15] sm:$0xff] }
0x1aee   :  { %v2302_v52 = vpop.permute.xlu1 %2301 }
0x1aef   :  { %v2382_v21 = vsel %vm269_vm1, %v2278_v4, %v2302_v52  ;;  %v2296_v59 = vpop.permute.xlu2 %2295  ;;  %v2350_v4 = vpop.permute.xlu0 %2349 }
0x1af0   :  { %v2386_v27 = vsel %vm111_vm0, %v2382_v21, %v2314_v33  ;;  %v2379_v54 = vsel %vm269_vm1, %v5095_v6, %v2296_v59  ;;  %v3475_v21 = vld [vmem:[%s5457_s18] sm:$0xff]  ;;  %v3476_v59 = vld [vmem:[%s5457_s18 + $0x8] sm:$0xff]  ;;  %s5525_s18 = sld [smem:[#allocation19_spill]] }
0x1af1   :  { %v2390_v28 = vsel %vm278_vm2, %v2386_v27, %v2326_v24 }
0x1af2   :  { %v2394_v25 = vsel %vm283_vm3, %v2390_v28, %v2338_v38 }
0x1af3   :  { %v2398_v11 = vsel %vm288_vm4, %v2394_v25, %v2350_v4 }
0x1af6   :  { %v2310_v32 = vpop.permute.xlu1 %2309 }
0x1af7   :  { %v2348_v2 = vpop.permute.xlu2 %2347  ;;  %v2384_v35 = vsel %vm111_vm0, %v2380_v0, %v2310_v32 }
0x1af8   :  { %v2397_v18 = vsel %vm288_vm4, %v2393_v3, %v2348_v2  ;;  %v2489_v2 = vmul.f32 %v5087_v58, %v3753_v37  ;;  %v2478_v37 = vmul.f32 %v5091_v39, %v3983_v48 }
0x1afe   :  { %v2322_v8 = vpop.permute.xlu1 %2321 }
0x1aff   :  { %v2308_v14 = vpop.permute.xlu2 %2307  ;;  %v2388_v29 = vsel %vm278_vm2, %v2384_v35, %v2322_v8  ;;  %v2490_v8 = vmul.f32 %v5091_v39, %v3751_v34 }
0x1b00   :  { %v2383_v41 = vsel %vm111_vm0, %v2379_v54, %v2308_v14  ;;  %v2480_v14 = vmul.f32 %v5091_v39, %v3818_v42  ;;  %v2477_v42 = vmul.f32 %v5087_v58, %v3820_v43  ;;  %v3321_v43 = vpop.permute.xlu0 %3320 }
0x1b06   :  { %v2334_v19 = vpop.permute.xlu1 %2333 }
0x1b07   :  { %v2360_v45 = vpop.permute.xlu2 %2359  ;;  %v2392_v16 = vsel %vm283_vm3, %v2388_v29, %v2334_v19  ;;  %v3309_v19 = vpack.i.bf16 %v2489_v2, %v2490_v8 }
0x1b08   :  { %v2401_v15 = vsel %vm293_vm5, %v2397_v18, %v2360_v45 }
0x1b0e   :  { %v2320_v60 = vpop.permute.xlu1 %2319 }
0x1b0f   :  { %v2346_v62 = vpop.permute.xlu2 %2345  ;;  %v2387_v33 = vsel %vm278_vm2, %v2383_v41, %v2320_v60  ;;  %v5523_v60 = vld [vmem:[#allocation5_spill] sm:$0xff] }
0x1b10   :  { %v2396_v46 = vsel %vm288_vm4, %v2392_v16, %v2346_v62  ;;  %v2488_v45 = vmul.f32 %v5091_v39, %v5523_v60  ;;  %v5524_v62 = vld [vmem:[#allocation6_spill] sm:$0xff]  ;;  %v3322_v16 = vunpack.i.l.bf16 %v3321_v43 }
0x1b16   :  { %v2372_v12 = vpop.permute.xlu1 %2371 }
0x1b17   :  { %v2332_v49 = vpop.permute.xlu2 %2331  ;;  %v2405_v26 = vsel %vm298_vm6, %v2401_v15, %v2372_v12  ;;  %v2479_v12 = vmul.f32 %v5087_v58, %v3988_v50 }
0x1b18   :  { %v2409_v44 = vmul.f32 %v3472_v40, %v2405_v26  ;;  %v2391_v24 = vsel %vm283_vm3, %v2387_v33, %v2332_v49  ;;  %v3339_v49 = vpack.i.bf16 %v2477_v42, %v2478_v37 }
0x1b1e   :  { %v2358_v57 = vpop.permute.xlu1 %2357 }
0x1b1f   :  { %v2344_v20 = vpop.permute.xlu2 %2343  ;;  %v2400_v51 = vsel %vm293_vm5, %v2396_v46, %v2358_v57  ;;  %v2487_v57 = vmul.f32 %v5087_v58, %v5524_v62 }
0x1b20   :  { %v2395_v38 = vsel %vm288_vm4, %v2391_v24, %v2344_v20  ;;  %v3123_v24 = vld [vmem:[%s5505_s26 + $0x78] sm:$0xff] }
0x1b21   :  { %v3314_v34 = vpack.i.bf16 %v2487_v57, %v2488_v45  ;;  %2606 = vmatpush.msrb.mxu3 %v3123_v24  ;;  %v3150_v24 = vld [vmem:[%s5448_s9 + $0x340] sm:$0xff] }
0x1b26   :  { %v2370_v30 = vpop.permute.xlu1 %2369 }
0x1b27   :  { %v2404_v10 = vsel %vm298_vm6, %v2400_v51, %v2370_v30  ;;  %v2356_v1 = vpop.permute.xlu2 %2355  ;;  %v3334_v30 = vpack.i.bf16 %v2479_v12, %v2480_v14 }
0x1b28   :  { %v2408_v6 = vmul.f32 %v3473_v53, %v2404_v10  ;;  %v2399_v61 = vsel %vm293_vm5, %v2395_v38, %v2356_v1  ;;  %v3122_v53 = vld [vmem:[%s5505_s26 + $0x70] sm:$0xff] }
0x1b29   :  { %2607 = vmatpush.msrb.mxu3 %v3122_v53 }
0x1b2e   :  { %v2362_v13 = vpop.permute.xlu1 %2361 }
0x1b2f   :  { %v2402_v5 = vsel %vm293_vm5, %v2398_v11, %v2362_v13 }
0x1b36   :  { %v2374_v31 = vpop.permute.xlu1 %2373 }
0x1b37   :  { %v2406_v22 = vsel %vm298_vm6, %v2402_v5, %v2374_v31  ;;  %v3323_v5 = vunpack.i.h.bf16 %v3321_v43  ;;  %v3157_v43 = vld [vmem:[%s5448_s9 + $0x378] sm:$0xff] }
0x1b38   :  { %v2410_v7 = vmul.f32 %v3471_v56, %v2406_v22 }
0x1b3a   :  { %2427 = vmatpush.msrb.mxu2 %v2410_v7 }
0x1b3c   :  { %2428 = vmatpush.msrb.mxu2 %v2409_v44 }
0x1b3e   :  { %2429 = vmatpush.msrb.mxu2 %v2408_v6  ;;  %v2368_v17 = vpop.permute.xlu1 %2367  ;;  %v3121_v6 = vld [vmem:[%s5505_s26 + $0x68] sm:$0xff] }
0x1b3f   :  { %v2403_v9 = vsel %vm298_vm6, %v2399_v61, %v2368_v17  ;;  %2608 = vmatpush.msrb.mxu3 %v3121_v6  ;;  %v3166_v6 = vld [vmem:[%s5448_s9 + $0x3c0] sm:$0xff] }
0x1b40   :  { %v2407_v23 = vmul.f32 %v3474_v55, %v2403_v9 }
0x1b42   :  { %2430 = vmatpush.msrb.mxu2 %v2407_v23 }
0x1b43   :  { %3118 = vmatmul.msk.f32.vlgmr.msrb.gmra.mxu2 %vm111_vm0, %v5087_v58  ;;  %v3326_v58 = vpop.permute.xlu0 %3325 }
0x1b44   :  { %v3327_v31 = vunpack.i.l.bf16 %v3326_v58  ;;  %v3328_v26 = vunpack.i.h.bf16 %v3326_v58  ;;  %v3156_v58 = vld [vmem:[%s5448_s9 + $0x370] sm:$0xff] }
0x1b4b   :  { %3119 = vmatmul.msk.f32.gmra.mxu2 %vm111_vm0, %v5091_v39  ;;  %v3331_v46 = vpop.permute.xlu0 %3330 }
0x1b4c   :  { %v3332_v22 = vunpack.i.l.bf16 %v3331_v46  ;;  %v3333_v56 = vunpack.i.h.bf16 %v3331_v46  ;;  %v3154_v46 = vld [vmem:[%s5448_s9 + $0x360] sm:$0xff] }
0x1b53   :  { %v3346_v40 = vpop.permute.xlu0 %3345 }
0x1b54   :  { %v3347_v33 = vunpack.i.l.bf16 %v3346_v40  ;;  %v3348_v1 = vunpack.i.h.bf16 %v3346_v40  ;;  %v3168_v40 = vld [vmem:[%s5448_s9 + $0x3d0] sm:$0xff] }
0x1bc6   :  { %v2432_v52 = vpop.f32.mrf.mxu2 }
0x1bc7   :  { %v2433_v27 = vadd.f32 %v3475_v21, %v2432_v52  ;;  %v3120_v52 = vld [vmem:[%s5505_s26 + $0x60] sm:$0xff] }
0x1bc8   :  { %2609 = vmatpush.msrb.mxu3 %v3120_v52  ;;  %v3148_v52 = vld [vmem:[%s5448_s9 + $0x330] sm:$0xff] }
0x1bc9   :  { %2438 = vmax.xlane.f32.xlu2 %v2433_v27 }
0x1bce   :  { %v2435_v28 = vpop.f32.mrf.mxu2 }
0x1bcf   :  { %v2436_v32 = vadd.f32 %v3476_v59, %v2435_v28  ;;  %v3371_v28 = vld [vmem:[%s5443_s4 + $0x3] ss:$0 sm:$0xff]  ;;  %s3513_s4 = smov 8  }
0x1bd1   :  { %2440 = vmax.xlane.f32.xlu1 %v2436_v32 }
0x1be1   :  { %3310 = vrot.lane.b32.xlu2 %v3309_v19, %s5507_s3 }
0x1be9   :  { %3335 = vrot.lane.b32.xlu2 %v3334_v30, %s5507_s3 }
0x1bea   :  { %3315 = vrot.lane.b32.xlu1 %v3314_v34, %s5507_s3 }
0x1bf2   :  { %3340 = vrot.lane.b32.xlu1 %v3339_v49, %s5507_s3 }
0x1c3c   :  { %v2439_v13 = vpop.xlane.xlu2 %2438 }
0x1c3d   :  { %v2442_v50 = vsub.f32 %v2433_v27, %v2439_v13  ;;  %v3136_v13 = vld [vmem:[%s5446_s7 + $0xf8] sm:$0xff] }
0x1c3e   :  { %2734 = vmatpush.msra.mxu3 %v3136_v13  ;;  %v3142_v13 = vld [vmem:[%s5448_s9 + $0x300] sm:$0xff] }
0x1c3f   :  { %v2444_v20 = vmul.f32 1.442695, %v2442_v50  ;;  %v3135_v50 = vld [vmem:[%s5446_s7 + $0xf0] sm:$0xff] }
0x1c40   :  { %2711 = vmatpush.msrb.mxu0 %v3135_v50  ;;  %v3161_v50 = vld [vmem:[%s5448_s9 + $0x398] sm:$0xff] }
0x1c41   :  { %3429 = vpow2.f32 %v2444_v20  ;;  %v3133_v20 = vld [vmem:[%s5446_s7 + $0xe0] sm:$0xff] }
0x1c42   :  { %2712 = vmatpush.msrb.mxu0 %v3133_v20  ;;  %v3160_v20 = vld [vmem:[%s5448_s9 + $0x390] sm:$0xff] }
0x1c44   :  { %v2441_v25 = vpop.xlane.xlu1 %2440  ;;  %v3311_v0 = vpop.permute.xlu2 %3310 }
0x1c45   :  { %v2443_v4 = vsub.f32 %v2436_v32, %v2441_v25  ;;  %v3312_v3 = vunpack.i.l.bf16 %v3311_v0  ;;  %v3313_v29 = vunpack.i.h.bf16 %v3311_v0  ;;  %v3134_v25 = vld [vmem:[%s5446_s7 + $0xe8] sm:$0xff]  ;;  %v3131_v0 = vld [vmem:[%s5446_s7 + $0xd0] sm:$0xff] }
0x1c46   :  { %2735 = vmatpush.msra.mxu3 %v3134_v25  ;;  %2713 = vmatpush.msrb.mxu0 %v3131_v0  ;;  %v3159_v25 = vld [vmem:[%s5448_s9 + $0x388] sm:$0xff]  ;;  %v3158_v0 = vld [vmem:[%s5448_s9 + $0x380] sm:$0xff] }
0x1c47   :  { %v3430_v35 = vpop.eup %3429  ;;  %v2446_v18 = vmul.f32 1.442695, %v2443_v4  ;;  %2555 = vmatpush.msra.mxu2 %v3312_v3  ;;  %v3132_v4 = vld [vmem:[%s5446_s7 + $0xd8] sm:$0xff]  ;;  %v3129_v3 = vld [vmem:[%s5446_s7 + $0xc0] sm:$0xff] }
0x1c48   :  { %2464 = vmatmul.f32.vlgmr.msrb.gmra.mxu1 %v3430_v35  ;;  %2736 = vmatpush.msra.mxu3 %v3132_v4  ;;  %v3137_v4 = vld [vmem:[%s5447_s8 + $0x6] sm:$0x3] }
0x1c49   :  { %3431 = vpow2.f32 %v2446_v18  ;;  %2556 = vmatpush.msra.mxu2 %v3313_v29  ;;  %2714 = vmatpush.msrb.mxu0 %v3129_v3  ;;  %v2689_v3 = vperm.slane %v3137_v4, 0 }
0x1c4b   :  { %2787 = vmatpush.msra.mxu0 %v3157_v43 }
0x1c4c   :  { %v3336_v51 = vpop.permute.xlu2 %3335 }
0x1c4d   :  { %v3337_v7 = vunpack.i.l.bf16 %v3336_v51  ;;  %v3338_v10 = vunpack.i.h.bf16 %v3336_v51  ;;  %2788 = vmatpush.msra.mxu0 %v3156_v58 }
0x1c4f   :  { %v3432_v48 = vpop.eup %3431 }
0x1c50   :  { %2467 = vmatmul.f32.gmra.mxu1 %v3432_v48 }
0x1c5c   :  { %v3316_v39 = vpop.permute.xlu1 %3315 }
0x1c5d   :  { %v3317_v11 = vunpack.i.l.bf16 %v3316_v39  ;;  %v3318_v15 = vunpack.i.h.bf16 %v3316_v39  ;;  %v3173_v39 = vld [vmem:[%s5448_s9 + $0x3f8] sm:$0xff] }
0x1c5e   :  { %2810 = vmatpush.msra.mxu1 %v3173_v39 }
0x1c5f   :  { %2557 = vmatpush.msra.mxu2 %v3317_v11  ;;  %v3155_v11 = vld [vmem:[%s5448_s9 + $0x368] sm:$0xff] }
0x1c60   :  { %2789 = vmatpush.msra.mxu0 %v3155_v11 }
0x1c61   :  { %2558 = vmatpush.msra.mxu2 %v3318_v15  ;;  %v3172_v15 = vld [vmem:[%s5448_s9 + $0x3f0] sm:$0xff] }
0x1c62   :  { %2811 = vmatpush.msra.mxu1 %v3172_v15  ;;  %2790 = vmatpush.msra.mxu0 %v3154_v46 }
0x1c63   :  { %2559 = vmatpush.msra.mxu2 %v3322_v16 }
0x1c64   :  { %v3341_v54 = vpop.permute.xlu1 %3340 }
0x1c65   :  { %2560 = vmatpush.msra.mxu2 %v3323_v5  ;;  %v3342_v41 = vunpack.i.l.bf16 %v3341_v54  ;;  %v3343_v44 = vunpack.i.h.bf16 %v3341_v54  ;;  %v3171_v5 = vld [vmem:[%s5448_s9 + $0x3e8] sm:$0xff]  ;;  %v3169_v54 = vld [vmem:[%s5448_s9 + $0x3d8] sm:$0xff] }
0x1c66   :  { %2812 = vmatpush.msra.mxu1 %v3171_v5 }
0x1c67   :  { %2561 = vmatpush.msra.mxu2 %v3327_v31 }
0x1c69   :  { %2562 = vmatpush.msra.mxu2 %v3328_v26  ;;  %v3170_v26 = vld [vmem:[%s5448_s9 + $0x3e0] sm:$0xff] }
0x1c6a   :  { %2813 = vmatpush.msra.mxu1 %v3170_v26 }
0x1c6b   :  { %2563 = vmatpush.msra.mxu2 %v3332_v22 }
0x1c6c   :  { %2814 = vmatpush.msra.mxu1 %v3169_v54 }
0x1c6d   :  { %2564 = vmatpush.msra.mxu2 %v3333_v56  ;;  %v3153_v56 = vld [vmem:[%s5448_s9 + $0x358] sm:$0xff] }
0x1c6e   :  { %2791 = vmatpush.msra.mxu0 %v3153_v56  ;;  %2815 = vmatpush.msra.mxu1 %v3168_v40 }
0x1c6f   :  { %2565 = vmatpush.msra.mxu2 %v3337_v7 }
0x1c71   :  { %2566 = vmatpush.msra.mxu2 %v3338_v10  ;;  %v3152_v10 = vld [vmem:[%s5448_s9 + $0x350] sm:$0xff] }
0x1c72   :  { %2792 = vmatpush.msra.mxu0 %v3152_v10 }
0x1c73   :  { %2567 = vmatpush.msra.mxu2 %v3342_v41 }
0x1c75   :  { %2568 = vmatpush.msra.mxu2 %v3343_v44  ;;  %v3151_v44 = vld [vmem:[%s5448_s9 + $0x348] sm:$0xff] }
0x1c76   :  { %2793 = vmatpush.msra.mxu0 %v3151_v44 }
0x1c77   :  { %2569 = vmatpush.msra.mxu2 %v3347_v33 }
0x1c78   :  { %2794 = vmatpush.msra.mxu0 %v3150_v24 }
0x1c79   :  { %2570 = vmatpush.msra.mxu2 %v3348_v1  ;;  %v3167_v1 = vld [vmem:[%s5448_s9 + $0x3c8] sm:$0xff] }
0x1c7a   :  { %2816 = vmatpush.msra.mxu1 %v3167_v1 }
0x1c7c   :  { %2817 = vmatpush.msra.mxu1 %v3166_v6 }
0x1cc5   :  { %v2465_v38 = vpop.f32.mrf.mxu1 }
0x1cc6   :  { %3433 = vrcp.f32 %v2465_v38 }
0x1ccc   :  { %v3434_v61 = vpop.eup %3433 }
0x1ccd   :  { %v2468_v17 = vpop.f32.mrf.mxu1  ;;  %v2473_v9 = vmul.f32 %v3434_v61, %v3430_v35  ;;  %v3130_v35 = vld [vmem:[%s5446_s7 + $0xc8] sm:$0xff]  ;;  %v3149_v61 = vld [vmem:[%s5448_s9 + $0x338] sm:$0xff]  ;;  %s2957_s7 = sshll.u32 %s5527_s1, 4  ;;  %s2958_s7 = int_to_ptr.hbm [resolvable:$true] %s2957_s7 }
0x1cce   :  { %3435 = vrcp.f32 %v2468_v17  ;;  %2737 = vmatpush.msra.mxu3 %v3130_v35  ;;  %2795 = vmatpush.msra.mxu0 %v3149_v61 }
0x1ccf   :  { %2571 = vmatmul.f32.vlgmr.msra.gmra.mxu2 %v2473_v9 }
0x1cd0   :  { %2796 = vmatpush.msra.mxu0 %v3148_v52 }
0x1cd4   :  { %v3436_v55 = vpop.eup %3435 }
0x1cd5   :  { %v2474_v23 = vmul.f32 %v3436_v55, %v3432_v48  ;;  %v3165_v55 = vld [vmem:[%s5448_s9 + $0x3b8] sm:$0xff] }
0x1cd6   :  { %2818 = vmatpush.msra.mxu1 %v3165_v55 }
0x1cd7   :  { %2574 = vmatmul.f32.gmra.mxu2 %v2474_v23  ;;  %v3372_v23 = vld [vmem:[%s5444_s5 + $0x3] ss:$0 sm:$0xff] }
0x1d52   :  { %v2572_v21 = vpop.f32.mrf.mxu2 }
0x1d53   :  { %3125 = vmatmul.msk.f32.vlgmr.msrb.gmra.mxu3 %vm111_vm0, %v2572_v21 }
0x1d5a   :  { %v2575_v27 = vpop.f32.mrf.mxu2 }
0x1d5b   :  { %3126 = vmatmul.msk.f32.gmra.mxu3 %vm111_vm0, %v2575_v27 }
0x1dd6   :  { %v2611_v59 = vpop.f32.mrf.mxu3 }
0x1dd7   :  { %v2612_v32 = vadd.f32 %v3371_v28, %v2611_v59 }
0x1dd9   :  { %v2617_v8 = vadd.f32 %v2612_v32, %v5074_v36  ;;  %v3373_v32 = vld [vmem:[%s5445_s6 + $0x3] ss:$0 sm:$0xff]  ;;  %s5526_s6 = sld [smem:[#allocation20_spill]] }
0x1ddb   :  { %v2623_v2 = vsel %vm111_vm0, %v2617_v8, 0.0 }
0x1ddc   :  { %2624 = vadd.xlane.f32.xlu2 %v2623_v2 }
0x1dde   :  { %v2614_v19 = vpop.f32.mrf.mxu3 }
0x1ddf   :  { %v2615_v14 = vadd.f32 %v3371_v28, %v2614_v19  ;;  %v3164_v28 = vld [vmem:[%s5448_s9 + $0x3b0] sm:$0xff] }
0x1de0   :  { %2819 = vmatpush.msra.mxu1 %v3164_v28 }
0x1de1   :  { %v2618_v60 = vadd.f32 %v2615_v14, %v5080_v63  ;;  %v3146_v14 = vld [vmem:[%s5448_s9 + $0x320] sm:$0xff] }
0x1de3   :  { %v2626_v45 = vsel %vm111_vm0, %v2618_v60, 0.0 }
0x1de4   :  { %2627 = vadd.xlane.f32.xlu1 %v2626_v45 }
0x1e4f   :  { %v2625_v12 = vpop.xlane.xlu2 %2624 }
0x1e50   :  { %v2629_v62 = vmul.f32 %v2625_v12, %v4030_v47  ;;  %v3145_v12 = vld [vmem:[%s5448_s9 + $0x318] sm:$0xff] }
0x1e52   :  { %v5255_v57 = vsub.f32 %v2617_v8, %v2629_v62  ;;  %v3147_v8 = vld [vmem:[%s5448_s9 + $0x328] sm:$0xff] }
0x1e53   :  { %2797 = vmatpush.msra.mxu0 %v3147_v8 }
0x1e54   :  { %v2633_v30 = vmul.f32 %v5255_v57, %v5255_v57 }
0x1e55   :  { %2798 = vmatpush.msra.mxu0 %v3146_v14 }
0x1e56   :  { %v2635_v36 = vsel %vm111_vm0, %v2633_v30, 0.0 }
0x1e57   :  { %2636 = vadd.xlane.f32.xlu0 %v2635_v36  ;;  %v2628_v34 = vpop.xlane.xlu1 %2627  ;;  %2799 = vmatpush.msra.mxu0 %v3145_v12 }
0x1e58   :  { %v2630_v37 = vmul.f32 %v2628_v34, %v4030_v47 }
0x1e5a   :  { %v5261_v42 = vsub.f32 %v2618_v60, %v2630_v37  ;;  %v3144_v37 = vld [vmem:[%s5448_s9 + $0x310] sm:$0xff] }
0x1e5b   :  { %2800 = vmatpush.msra.mxu0 %v3144_v37 }
0x1e5c   :  { %v2634_v63 = vmul.f32 %v5261_v42, %v5261_v42 }
0x1e5e   :  { %v2638_v49 = vsel %vm111_vm0, %v2634_v63, 0.0  ;;  %v3163_v63 = vld [vmem:[%s5448_s9 + $0x3a8] sm:$0xff] }
0x1e5f   :  { %2639 = vadd.xlane.f32.xlu2 %v2638_v49  ;;  %2820 = vmatpush.msra.mxu1 %v3163_v63  ;;  %v3162_v49 = vld [vmem:[%s5448_s9 + $0x3a0] sm:$0xff] }
0x1e61   :  { %2821 = vmatpush.msra.mxu1 %v3162_v49 }
0x1e63   :  { %2822 = vmatpush.msra.mxu1 %v3161_v50 }
0x1e65   :  { %2823 = vmatpush.msra.mxu1 %v3160_v20 }
0x1e67   :  { %2824 = vmatpush.msra.mxu1 %v3159_v25 }
0x1e69   :  { %2825 = vmatpush.msra.mxu1 %v3158_v0 }
0x1eca   :  { %v2637_v18 = vpop.xlane.xlu0 %2636 }
0x1ecb   :  { %v2641_v29 = vmul.f32 %v2637_v18, %v4030_v47 }
0x1ecd   :  { %v2643_v48 = vadd.f32 1e-05, %v2641_v29 }
0x1ecf   :  { %3437 = vrsqrt.f32 %v2643_v48  ;;  %vm2651_vm2 = vweird.f32 %v2643_v48 }
0x1ed2   :  { %v2640_v16 = vpop.xlane.xlu2 %2639 }
0x1ed3   :  { %v2642_v31 = vmul.f32 %v2640_v16, %v4030_v47 }
0x1ed5   :  { %v3438_v22 = vpop.eup %3437  ;;  %v2644_v51 = vadd.f32 1e-05, %v2642_v31 }
0x1ed6   :  { %v2646_v7 = vmul.f32 %v3438_v22, %v2643_v48  ;;  %vm2652_vm1 = vweird.f32 %v3438_v22  ;;  %v2690_v48 = vperm.slane %v3137_v4, 1 }
0x1ed7   :  { %3439 = vrsqrt.f32 %v2644_v51  ;;  %vm2653_vm3 = vmor %vm2651_vm2, %vm2652_vm1  ;;  %vm2661_vm5 = vweird.f32 %v2644_v51 }
0x1ed8   :  { %v2647_v41 = vmul.f32 %v3438_v22, %v2646_v7 }
0x1eda   :  { %v2648_v33 = vmul.f32 0.5, %v2647_v41 }
0x1edc   :  { %v2649_v53 = vsub.f32 1.5, %v2648_v33 }
0x1edd   :  { %v3440_v38 = vpop.eup %3439 }
0x1ede   :  { %v2650_v17 = vmul.f32 %v3438_v22, %v2649_v53  ;;  %v2656_v9 = vmul.f32 %v3440_v38, %v2644_v51  ;;  %vm2662_vm4 = vweird.f32 %v3440_v38 }
0x1edf   :  { %vm2663_vm6 = vmor %vm2661_vm5, %vm2662_vm4 }
0x1ee0   :  { %v2654_v21 = vsel %vm2653_vm3, %v3438_v22, %v2650_v17  ;;  %v2657_v27 = vmul.f32 %v3440_v38, %v2656_v9  ;;  %v3374_v22 = vld [vmem:[%s5449_s10 + $0x3] ss:$0 sm:$0xff] }
0x1ee1   :  { %v2665_v59 = vmul.f32 %v2654_v21, %v5255_v57 }
0x1ee2   :  { %v2658_v2 = vmul.f32 0.5, %v2657_v27 }
0x1ee3   :  { %v2670_v19 = vmul.f32 %v3372_v23, %v2665_v59 }
0x1ee4   :  { %v2659_v60 = vsub.f32 1.5, %v2658_v2 }
0x1ee5   :  { %v2675_v45 = vadd.f32 %v3373_v32, %v2670_v19 }
0x1ee6   :  { %v2660_v62 = vmul.f32 %v3440_v38, %v2659_v60 }
0x1ee7   :  { %3138 = vmatmul.msk.f32.vlgmr.msrb.gmra.mxu0 %vm111_vm0, %v2675_v45  ;;  %3140 = vmatmul.msk.f32.vlgmr.msra.gmra.mxu3 %vm111_vm0, %v2675_v45 }
0x1ee8   :  { %v2664_v57 = vsel %vm2663_vm6, %v3440_v38, %v2660_v62 }
0x1ee9   :  { %v2666_v30 = vmul.f32 %v2664_v57, %v5261_v42  ;;  %v3143_v42 = vld [vmem:[%s5448_s9 + $0x308] sm:$0xff] }
0x1eea   :  { %2801 = vmatpush.msra.mxu0 %v3143_v42  ;;  %v3376_v42 = vld [vmem:[%s5451_s12 + $0x3] ss:$0 sm:$0xff] }
0x1eeb   :  { %v2671_v36 = vmul.f32 %v3372_v23, %v2666_v30 }
0x1eec   :  { %2802 = vmatpush.msra.mxu0 %v3142_v13 }
0x1eed   :  { %v2676_v34 = vadd.f32 %v3373_v32, %v2671_v36  ;;  %v3375_v36 = vld [vmem:[%s5450_s11 + $0x3] ss:$0 sm:$0xff] }
0x1eef   :  { %3139 = vmatmul.msk.f32.gmra.mxu0 %vm111_vm0, %v2676_v34  ;;  %3141 = vmatmul.msk.f32.gmra.mxu3 %vm111_vm0, %v2676_v34 }
0x1f64   :  { %v2716_v35 = vpop.f32.mrf.mxu0 }
0x1f65   :  { %v2717_v18 = vadd.f32 %v2716_v35, %v2689_v3 }
0x1f67   :  { %v2745_v29 = vmax.f32 %v2717_v18, 0.0 }
0x1f69   :  { %2803 = vmatmul.f32.vlgmr.msra.gmra.mxu0 %v2745_v29 }
0x1f6a   :  { %v2739_v43 = vpop.f32.mrf.mxu3 }
0x1f6b   :  { %v2740_v58 = vadd.f32 %v2739_v43, %v2690_v48 }
0x1f6c   :  { %v2719_v39 = vpop.f32.mrf.mxu0 }
0x1f6d   :  { %v2746_v11 = vmax.f32 %v2740_v58, 0.0  ;;  %v2720_v15 = vadd.f32 %v2719_v39, %v2689_v3 }
0x1f6f   :  { %v2747_v16 = vmax.f32 %v2720_v15, 0.0  ;;  %2826 = vmatmul.f32.vlgmr.msra.gmra.mxu1 %v2746_v11 }
0x1f71   :  { %2806 = vmatmul.f32.gmra.mxu0 %v2747_v16 }
0x1f72   :  { %v2742_v5 = vpop.f32.mrf.mxu3 }
0x1f73   :  { %v2743_v31 = vadd.f32 %v2742_v5, %v2690_v48 }
0x1f75   :  { %v2748_v46 = vmax.f32 %v2743_v31, 0.0 }
0x1f77   :  { %2829 = vmatmul.f32.gmra.mxu1 %v2748_v46 }
0x1fe6   :  { %v2804_v26 = vpop.f32.mrf.mxu0 }
0x1fe7   :  { %v2805_v51 = vadd.f32 %v3374_v22, %v2804_v26 }
0x1fec   :  { %v2827_v56 = vpop.f32.mrf.mxu1 }
0x1fed   :  { %v2828_v7 = vadd.f32 %v2827_v56, %v2805_v51 }
0x1fee   :  { %v2807_v10 = vpop.f32.mrf.mxu0 }
0x1fef   :  { %v2833_v54 = vadd.f32 %v2828_v7, %v2675_v45  ;;  %v2808_v40 = vadd.f32 %v3374_v22, %v2807_v10 }
0x1ff1   :  { %v2839_v41 = vsel %vm111_vm0, %v2833_v54, 0.0 }
0x1ff2   :  { %2840 = vadd.xlane.f32.xlu1 %v2839_v41 }
0x1ff4   :  { %v2830_v44 = vpop.f32.mrf.mxu1 }
0x1ff5   :  { %v2831_v33 = vadd.f32 %v2830_v44, %v2808_v40 }
0x1ff7   :  { %v2834_v1 = vadd.f32 %v2831_v33, %v2676_v34 }
0x1ff9   :  { %v2842_v24 = vsel %vm111_vm0, %v2834_v1, 0.0 }
0x1ffa   :  { %2843 = vadd.xlane.f32.xlu0 %v2842_v24 }
0x2065   :  { %v2841_v53 = vpop.xlane.xlu1 %2840 }
0x2066   :  { %v2845_v6 = vmul.f32 %v2841_v53, %v4030_v47 }
0x2068   :  { %v2847_v38 = vsub.f32 %v2833_v54, %v2845_v6  ;;  %v3377_v6 = vld [vmem:[%s5525_s18] ss:$0 sm:$0xff] }
0x206a   :  { %v2849_v61 = vmul.f32 %v2847_v38, %v2847_v38 }
0x206c   :  { %v2851_v17 = vsel %vm111_vm0, %v2849_v61, 0.0 }
0x206d   :  { %2852 = vadd.xlane.f32.xlu2 %v2851_v17  ;;  %v2844_v9 = vpop.xlane.xlu0 %2843  ;;  %v3378_v17 = vld [vmem:[%s5526_s6] ss:$0 sm:$0xff] }
0x206e   :  { %v2846_v55 = vmul.f32 %v2844_v9, %v4030_v47 }
0x2070   :  { %v2848_v23 = vsub.f32 %v2834_v1, %v2846_v55 }
0x2072   :  { %v2850_v52 = vmul.f32 %v2848_v23, %v2848_v23 }
0x2074   :  { %v2854_v21 = vsel %vm111_vm0, %v2850_v52, 0.0 }
0x2075   :  { %2855 = vadd.xlane.f32.xlu1 %v2854_v21 }
0x20e0   :  { %v2853_v27 = vpop.xlane.xlu2 %2852 }
0x20e1   :  { %v2857_v28 = vmul.f32 %v2853_v27, %v4030_v47 }
0x20e3   :  { %v2859_v59 = vadd.f32 1e-05, %v2857_v28 }
0x20e5   :  { %3441 = vrsqrt.f32 %v2859_v59  ;;  %vm2867_vm9 = vweird.f32 %v2859_v59 }
0x20e8   :  { %v2856_v32 = vpop.xlane.xlu1 %2855 }
0x20e9   :  { %v2858_v8 = vmul.f32 %v2856_v32, %v4030_v47 }
0x20eb   :  { %v3442_v2 = vpop.eup %3441  ;;  %v2860_v19 = vadd.f32 1e-05, %v2858_v8 }
0x20ec   :  { %v2862_v14 = vmul.f32 %v3442_v2, %v2859_v59  ;;  %vm2868_vm8 = vweird.f32 %v3442_v2 }
0x20ed   :  { %3443 = vrsqrt.f32 %v2860_v19  ;;  %vm2869_vm10 = vmor %vm2867_vm9, %vm2868_vm8  ;;  %vm2877_vm12 = vweird.f32 %v2860_v19 }
0x20ee   :  { %v2863_v60 = vmul.f32 %v3442_v2, %v2862_v14 }
0x20f0   :  { %v2864_v45 = vmul.f32 0.5, %v2863_v60 }
0x20f2   :  { %v2865_v12 = vsub.f32 1.5, %v2864_v45 }
0x20f3   :  { %v3444_v62 = vpop.eup %3443 }
0x20f4   :  { %v2866_v57 = vmul.f32 %v3442_v2, %v2865_v12  ;;  %v2872_v30 = vmul.f32 %v3444_v62, %v2860_v19  ;;  %vm2878_vm11 = vweird.f32 %v3444_v62 }
0x20f5   :  { %vm2879_vm13 = vmor %vm2877_vm12, %vm2878_vm11 }
0x20f6   :  { %v2873_v34 = vmul.f32 %v3444_v62, %v2872_v30  ;;  %v2870_v37 = vsel %vm2869_vm10, %v3442_v2, %v2866_v57 }
0x20f7   :  { %v2881_v63 = vmul.f32 %v2870_v37, %v2847_v38 }
0x20f8   :  { %v2874_v49 = vmul.f32 0.5, %v2873_v34 }
0x20f9   :  { %v2886_v13 = vmul.f32 %v3375_v36, %v2881_v63 }
0x20fa   :  { %v2875_v50 = vsub.f32 1.5, %v2874_v49 }
0x20fb   :  { %v2891_v20 = vadd.f32 %v3376_v42, %v2886_v13 }
0x20fc   :  { %v2876_v25 = vmul.f32 %v3444_v62, %v2875_v50 }
0x20fd   :  { %v2895_v0 = vsel %vm111_vm0, %v2891_v20, 0.0 }
0x20fe   :  { %2896 = vadd.xlane.f32.xlu0 %v2895_v0  ;;  %v2880_v4 = vsel %vm2879_vm13, %v3444_v62, %v2876_v25 }
0x20ff   :  { %v2882_v3 = vmul.f32 %v2880_v4, %v2848_v23 }
0x2101   :  { %v2887_v35 = vmul.f32 %v3375_v36, %v2882_v3 }
0x2103   :  { %v2892_v18 = vadd.f32 %v3376_v42, %v2887_v35 }
0x2105   :  { %v2898_v29 = vsel %vm111_vm0, %v2892_v18, 0.0 }
0x2106   :  { %2899 = vadd.xlane.f32.xlu2 %v2898_v29 }
0x2171   :  { %v2897_v48 = vpop.xlane.xlu0 %2896 }
0x2172   :  { %v2901_v43 = vmul.f32 %v2897_v48, %v4030_v47 }
0x2174   :  { %v2903_v58 = vsub.f32 %v2891_v20, %v2901_v43 }
0x2176   :  { %v2905_v39 = vmul.f32 %v2903_v58, %v2903_v58 }
0x2178   :  { %v2907_v11 = vsel %vm111_vm0, %v2905_v39, 0.0 }
0x2179   :  { %v2900_v15 = vpop.xlane.xlu2 %2899  ;;  %2908 = vadd.xlane.f32.xlu1 %v2907_v11 }
0x217a   :  { %v2902_v16 = vmul.f32 %v2900_v15, %v4030_v47 }
0x217c   :  { %v2904_v5 = vsub.f32 %v2892_v18, %v2902_v16 }
0x217e   :  { %v2906_v31 = vmul.f32 %v2904_v5, %v2904_v5 }
0x2180   :  { %v2910_v46 = vsel %vm111_vm0, %v2906_v31, 0.0 }
0x2181   :  { %2911 = vadd.xlane.f32.xlu0 %v2910_v46 }
0x21ec   :  { %v2909_v26 = vpop.xlane.xlu1 %2908 }
0x21ed   :  { %v2913_v22 = vmul.f32 %v2909_v26, %v4030_v47 }
0x21ef   :  { %v2915_v51 = vadd.f32 1e-05, %v2913_v22 }
0x21f1   :  { %3445 = vrsqrt.f32 %v2915_v51  ;;  %vm2923_vm15 = vweird.f32 %v2915_v51 }
0x21f4   :  { %v2912_v56 = vpop.xlane.xlu0 %2911 }
0x21f5   :  { %v2914_v7 = vmul.f32 %v2912_v56, %v4030_v47 }
0x21f7   :  { %v3446_v54 = vpop.eup %3445  ;;  %v2916_v10 = vadd.f32 1e-05, %v2914_v7 }
0x21f8   :  { %v2918_v41 = vmul.f32 %v3446_v54, %v2915_v51  ;;  %vm2924_vm14 = vweird.f32 %v3446_v54 }
0x21f9   :  { %3447 = vrsqrt.f32 %v2916_v10  ;;  %vm2925_vm7 = vmor %vm2923_vm15, %vm2924_vm14  ;;  %vm2933_vm2 = vweird.f32 %v2916_v10 }
0x21fa   :  { %v2919_v40 = vmul.f32 %v3446_v54, %v2918_v41 }
0x21fc   :  { %v2920_v44 = vmul.f32 0.5, %v2919_v40 }
0x21fe   :  { %v2921_v33 = vsub.f32 1.5, %v2920_v44 }
0x21ff   :  { %v3448_v1 = vpop.eup %3447 }
0x2200   :  { %v2922_v24 = vmul.f32 %v3446_v54, %v2921_v33  ;;  %v2928_v53 = vmul.f32 %v3448_v1, %v2916_v10  ;;  %vm2934_vm1 = vweird.f32 %v3448_v1 }
0x2201   :  { %vm2935_vm3 = vmor %vm2933_vm2, %vm2934_vm1 }
0x2202   :  { %v2926_v38 = vsel %vm2925_vm7, %v3446_v54, %v2922_v24  ;;  %v2929_v61 = vmul.f32 %v3448_v1, %v2928_v53 }
0x2203   :  { %v2937_v47 = vmul.f32 %v2926_v38, %v2903_v58 }
0x2204   :  { %v2930_v9 = vmul.f32 0.5, %v2929_v61 }
0x2205   :  { %v2942_v55 = vmul.f32 %v3377_v6, %v2937_v47 }
0x2206   :  { %v2931_v23 = vsub.f32 1.5, %v2930_v9 }
0x2207   :  { %v2947_v52 = vadd.f32 %v3378_v17, %v2942_v55 }
0x2208   :  { %v2932_v21 = vmul.f32 %v3448_v1, %v2931_v23 }
0x2209   :  { %2949 = vst.msk [vmem:[#allocation2] sm:$0xff] %vm111_vm0, %v2947_v52 }
0x220a   :  { %v2936_v27 = vsel %vm2935_vm3, %v3448_v1, %v2932_v21 }
0x220b   :  { %v2938_v28 = vmul.f32 %v2936_v27, %v2904_v5 }
0x220d   :  { %v2943_v59 = vmul.f32 %v3377_v6, %v2938_v28 }
0x220f   :  { %v2948_v32 = vadd.f32 %v3378_v17, %v2943_v59 }
0x2211   :  { %2950 = vst.msk [vmem:[#allocation2 + $0x8] sm:$0xff] %vm111_vm0, %v2948_v32 }
0x2212   :  { %2963 = dma.vmem_to_hbm [thread:$0]  %s2956_s14, 256, %s2958_s7, [#allocation3], %s3512_s30, %s3512_s30, %s3513_s4  }
0x2213   :  { %3501 = dma.done.wait [#allocation3], 256  }
0x2214   :  { %3502 = vsyncadd [#allocation3], 4294967040 }
0x2215   :  { %2968 = vsyncpa [#allocation3], 1 }

</bundles_post_ra>
